<compile_context>
chip_gen: v6e
topology: v6e:2x2x1
jax: 0.10.0
libtpu: 0.0.40
codegen_flags: <defaults>
</compile_context>

<pallas_src>
from functools import partial

import jax
import jax.numpy as jnp
from jax import lax
from jax.experimental import pallas as pl
from jax.experimental.pallas import tpu as pltpu


def _round_up(x, m):
    return (x + m - 1) // m * m


def _encoder_conv_kernel(x_ref, xh0_ref, xh1_ref, w_ref, gmat_ref, b_ref, g_ref, be_ref,
                         o_ref, slab_ref, sum_ref, sq_ref, scale_ref, shift_ref,
                         *, td, cinp, cout, W, WP, HPW, SPW, eps, n_pos, n_grp):
    """Grid = (N, phase, depth_tile).

    x_ref   : (1, td, cinp, PLANE)   td padded depth planes of this tile (plane flattened)
    xh0/xh1 : (1, 1,  cinp, PLANE)   halo planes at padded depth (t+1)*td, (t+1)*td + 1
    w_ref   : (9, cout, 3*cinp)      taps: [kd*3+kw] -> rows (kh, ci) matching the slab
    gmat    : (cout, cout)           GN group-membership matrix (1 if same group)
    b/g/be  : (cout, 1)              conv bias / GN gamma / GN beta (f32)
    o_ref   : (1, cout, td*SPW)      SPW-strided output planes (cols >= HPW are scratch)
    slab_ref: (3*cinp, (td+2)*SPW + 128)  kh-shifted im2col slab (+128 col OOB-read guard)
    sum/sq  : (cout, 1)              per-channel sum / sum-of-squares of bias-free conv
    scale/shift : (cout, 1)          per-sample GN scale/shift cache
    """
    p = pl.program_id(1)
    t = pl.program_id(2)

    # Zero the slab's guard tail once per sample (never overwritten; masked/dropped cols
    # are the only consumers, this just keeps uninitialized VMEM NaNs out of the matmul).
    @pl.when((p == 0) & (t == 0))
    def _zero_tail():
        tail = slab_ref.shape[1] - (td + 2) * SPW
        slab_ref[:, (td + 2) * SPW:] = jnp.zeros((slab_ref.shape[0], tail), slab_ref.dtype)

    # ---- build the 3x (kh-shifted) slab: rows kh*cinp..+cinp, plane-major columns ----
    for r in range(td + 2):
        for kh in range(3):
            if r < td:
                piece = x_ref[0, r, :, kh * WP: kh * WP + SPW]
            elif r == td:
                piece = xh0_ref[0, 0, :, kh * WP: kh * WP + SPW]
            else:
                piece = xh1_ref[0, 0, :, kh * WP: kh * WP + SPW]
            slab_ref[kh * cinp:(kh + 1) * cinp, r * SPW:(r + 1) * SPW] = piece

    def conv_tile():
        # Fused conv over all td output planes of this tile: 9 accumulated matmuls
        # (kd x kw), each K = 3*cinp, N = td*SPW.  Bias is NOT added here.
        acc = None
        for kd in range(3):
            for kw in range(3):
                start = kd * SPW + kw
                rhs = slab_ref[:, start:start + td * SPW]          # (3*cinp, td*SPW)
                part = jnp.dot(w_ref[kd * 3 + kw], rhs,
                               preferred_element_type=jnp.float32)
                acc = part if acc is None else acc + part
        return acc                                                  # (cout, td*SPW) f32

    # ---- phase 0: per-channel statistics of the bias-free conv (masked scratch cols) ----
    @pl.when(p == 0)
    def _stats():
        @pl.when(t == 0)
        def _init():
            sum_ref[...] = jnp.zeros_like(sum_ref)
            sq_ref[...] = jnp.zeros_like(sq_ref)

        z = conv_tile()
        col = lax.broadcasted_iota(jnp.int32, (1, td * SPW), 1)
        c = col % SPW
        valid = (c < HPW) & ((c % WP) < W)
        zm = jnp.where(valid, z, 0.0)
        sum_ref[...] = sum_ref[...] + jnp.sum(zm, axis=1, keepdims=True)
        sq_ref[...] = sq_ref[...] + jnp.sum(zm * zm, axis=1, keepdims=True)

    # ---- phase 1: GN scale/shift once per sample, then affine + ReLU, lane-dense store ----
    @pl.when(p == 1)
    def _normalize():
        @pl.when(t == 0)
        def _scale_shift():
            s = sum_ref[...]                         # per-channel sum of z (bias-free)
            q = sq_ref[...]                          # per-channel sum of z^2
            b = b_ref[...]
            gmat = gmat_ref[...]
            inv_ng = 1.0 / float(n_grp)
            # group mean of y = z + b
            mean = jnp.dot(gmat, s + float(n_pos) * b,
                           preferred_element_type=jnp.float32) * inv_ng
            d = b - mean
            # group variance, centered around the per-channel bias (less cancellation)
            terms = q + 2.0 * d * s + float(n_pos) * (d * d)
            var = jnp.dot(gmat, terms, preferred_element_type=jnp.float32) * inv_ng
            var = jnp.maximum(var, 0.0)
            rstd = lax.rsqrt(var + eps)
            scale = g_ref[...] * rstd
            scale_ref[...] = scale
            shift_ref[...] = be_ref[...] + d * scale

        z = conv_tile()
        y = jnp.maximum(z * scale_ref[...] + shift_ref[...], 0.0)
        o_ref[0] = y.astype(o_ref.dtype)


def _vmem_capacity_bytes():
    try:
        info = pltpu.get_tpu_info()
        for attr in ("vmem_capacity_bytes", "vmem_bytes", "vmem_size_bytes"):
            v = getattr(info, attr, None)
            if v:
                return int(v)
    except Exception:
        pass
    return 64 << 20     # conservative fallback (v7x per-TC VMEM)


def _pick_td(D, cinp, cout, plane, spw, in_esize, out_esize, budget):
    """Largest depth tile (divisor of D) whose per-step working set fits the VMEM budget."""
    best = 1
    for cand in range(1, D + 1):
        if D % cand:
            continue
        need = (2 * cand * cinp * plane * in_esize            # main input block (dbl buf)
                + 4 * cinp * plane * in_esize                 # two 1-plane halo blocks
                + 2 * cout * cand * spw * out_esize           # output block (dbl buf)
                + 3 * cinp * ((cand + 2) * spw + 128) * in_esize   # im2col slab scratch
                + 2 * cout * cand * spw * 4)                  # f32 conv accumulator
        if need <= budget:
            best = cand
    return best


def encoder_conv(x, weight, bias, gamma, beta, *, eps=1e-5, td=None, compute_dtype=None):
    """x: (N, Cin, D, H, W); weight: (Cout, Cin, 3, 3, 3); bias/gamma/beta: (Cout,)."""
    N, Cin, D, H, W = x.shape
    Cout = weight.shape[0]
    assert weight.shape == (Cout, Cin, 3, 3, 3)
    assert Cout % 4 == 0, "GroupNorm(out_ch // 4, out_ch) requires out_ch % 4 == 0"
    groups = Cout // 4
    gs = 4                                           # channels per group

    cdtype = jnp.dtype(compute_dtype) if compute_dtype is not None else jnp.dtype(x.dtype)
    in_esize = cdtype.itemsize
    out_esize = jnp.dtype(x.dtype).itemsize
    sub = 8 if in_esize == 4 else (16 if in_esize == 2 else 32)
    CinP = _round_up(Cin, sub)                       # sublane-aligned channel count

    WP = W + 2                                       # padded row width
    HPW = H * WP                                     # flattened output plane (valid part)
    SPW = _round_up(HPW + 2, 128)                    # lane-aligned per-plane column stride
    PLANE = _round_up(2 * WP + SPW, 128)             # padded input plane, covers max tap read

    vmem_cap = _vmem_capacity_bytes()
    limit_cap = int(0.75 * vmem_cap)                 # ~48 MiB on v7x, ~96 MiB on v5e/v6e
    if td is None:
        td = _pick_td(D, CinP, Cout, PLANE, SPW, in_esize, out_esize, budget=limit_cap // 2)
    assert D % td == 0, f"depth tile {td} must divide D={D}"
    T = D // td

    # --- layout glue only (no FLOPs): pad channels/space, flatten planes ---
    xp = jnp.pad(x.astype(cdtype), ((0, 0), (0, CinP - Cin), (1, 1), (1, 1), (1, 1)))
    xp = jnp.transpose(xp, (0, 2, 1, 3, 4)).reshape(N, D + 2, CinP, (H + 2) * WP)
    xp = jnp.pad(xp, ((0, 0), (0, 0), (0, 0), (0, PLANE - (H + 2) * WP)))

    # weights: (9 = kd*3+kw, Cout, 3*CinP = kh*CinP + ci), zero rows for padded channels.
    wt = jnp.transpose(weight, (2, 4, 0, 3, 1)).astype(cdtype)      # (kd, kw, co, kh, ci)
    wt = jnp.pad(wt, ((0, 0), (0, 0), (0, 0), (0, 0), (0, CinP - Cin)))
    w9 = wt.reshape(9, Cout, 3 * CinP)

    b2 = bias.reshape(Cout, 1).astype(jnp.float32)
    g2 = gamma.reshape(Cout, 1).astype(jnp.float32)
    be2 = beta.reshape(Cout, 1).astype(jnp.float32)
    cid = jnp.arange(Cout)
    gmat = (cid[:, None] // gs == cid[None, :] // gs).astype(jnp.float32)

    n_pos = D * H * W                               # positions per channel
    n_grp = gs * n_pos                              # elements per GroupNorm group

    need = (2 * td * CinP * PLANE * in_esize + 4 * CinP * PLANE * in_esize
            + 2 * Cout * td * SPW * out_esize
            + 3 * CinP * ((td + 2) * SPW + 128) * in_esize
            + 2 * Cout * td * SPW * 4
            + 2 * 9 * Cout * 3 * CinP * in_esize)
    vmem_limit = int(min(limit_cap, max(32 << 20, need + (8 << 20))))

    kern = partial(_encoder_conv_kernel, td=td, cinp=CinP, cout=Cout,
                   W=W, WP=WP, HPW=HPW, SPW=SPW, eps=float(eps),
                   n_pos=n_pos, n_grp=n_grp)

    out = pl.pallas_call(
        kern,
        out_shape=jax.ShapeDtypeStruct((N, Cout, D * SPW), x.dtype),
        grid_spec=pltpu.PrefetchScalarGridSpec(
            num_scalar_prefetch=0,
            grid=(N, 2, T),
            in_specs=[
                pl.BlockSpec((1, td, CinP, PLANE), lambda n, p, t: (n, t, 0, 0)),
                pl.BlockSpec((1, 1, CinP, PLANE),
                             lambda n, p, t, td=td: (n, (t + 1) * td, 0, 0)),
                pl.BlockSpec((1, 1, CinP, PLANE),
                             lambda n, p, t, td=td: (n, (t + 1) * td + 1, 0, 0)),
                pl.BlockSpec((9, Cout, 3 * CinP), lambda n, p, t: (0, 0, 0)),
                pl.BlockSpec((Cout, Cout), lambda n, p, t: (0, 0)),
                pl.BlockSpec((Cout, 1), lambda n, p, t: (0, 0)),
                pl.BlockSpec((Cout, 1), lambda n, p, t: (0, 0)),
                pl.BlockSpec((Cout, 1), lambda n, p, t: (0, 0)),
            ],
            # phase 0 parks on block (n, 0) and never writes it, so the single write-back
            # per output block happens after phase 1 filled it.
            out_specs=pl.BlockSpec((1, Cout, td * SPW), lambda n, p, t: (n, 0, p * t)),
            scratch_shapes=[
                pltpu.VMEM((3 * CinP, (td + 2) * SPW + 128), cdtype),  # im2col slab
                pltpu.VMEM((Cout, 1), jnp.float32),                    # per-channel sum
                pltpu.VMEM((Cout, 1), jnp.float32),                    # per-channel sumsq
                pltpu.VMEM((Cout, 1), jnp.float32),                    # GN scale cache
                pltpu.VMEM((Cout, 1), jnp.float32),                    # GN shift cache
            ],
        ),
        compiler_params=pltpu.CompilerParams(
            dimension_semantics=("parallel", "arbitrary", "arbitrary"),
            vmem_limit_bytes=vmem_limit,
        ),
    )(xp, xp, xp, w9, gmat, b2, g2, be2)

    # (N, Cout, D*SPW) -> drop per-plane scratch columns -> NCDHW
    out = out.reshape(N, Cout, D, SPW)[..., :HPW]
    out = out.reshape(N, Cout, D, H, WP)[..., :W]
    return out


def _reference(x, weight, bias, gamma, beta, groups, eps=1e-5):
    out = lax.conv_general_dilated(
        x, weight, window_strides=(1, 1, 1),
        padding=((1, 1), (1, 1), (1, 1)),
        dimension_numbers=("NCDHW", "OIDHW", "NCDHW"))
    out = out + bias[None, :, None, None, None]
    N, C, D, H, W = out.shape
    g = out.reshape(N, groups, C // groups, D, H, W)
    m = g.mean(axis=(2, 3, 4, 5), keepdims=True)
    v = ((g - m) ** 2).mean(axis=(2, 3, 4, 5), keepdims=True)
    gn = ((g - m) / jnp.sqrt(v + eps)).reshape(N, C, D, H, W)
    gn = gn * gamma[None, :, None, None, None] + beta[None, :, None, None, None]
    return jnp.maximum(gn, 0.0)


if __name__ == "__main__":
    N, Cin, Cout, D, H, W = 2, 4, 8, 16, 8, 8

    key = jax.random.PRNGKey(0)
    k1, k2, k3, k4, k5 = jax.random.split(key, 5)
    x = jax.random.normal(k1, (N, Cin, D, H, W), jnp.float32)
    # Deterministic synthetic parameters (shapes per nn.Conv3d / nn.GroupNorm __init__).
    weight = jax.random.normal(k2, (Cout, Cin, 3, 3, 3), jnp.float32) * 0.1
    bias = jax.random.normal(k3, (Cout,), jnp.float32) * 0.1
    gamma = 1.0 + 0.5 * jax.random.normal(k4, (Cout,), jnp.float32)
    beta = 0.1 * jax.random.normal(k5, (Cout,), jnp.float32)

    # td=8 -> two depth tiles per sample, exercising the tiled two-pass GroupNorm path.
    out = encoder_conv(x, weight, bias, gamma, beta, td=8)
    out = jax.block_until_ready(out)

    ref = _reference(x, weight, bias, gamma, beta, groups=Cout // 4)
    assert out.shape == ref.shape == (N, Cout, D, H, W)
    max_err = float(jnp.max(jnp.abs(out - ref)))
    assert max_err < 1e-4, f"mismatch vs reference, max |err| = {max_err}"

    print("KERNEL_OK")
</pallas_src>

<mosaic_0001>
module attributes {stable_mosaic.version = 11 : i64} {
  func.func @_encoder_conv_kernel(%arg0: i32, %arg1: i32, %arg2: i32, %arg3: memref<1x8x8x256xf32, #tpu.memory_space<vmem>>, %arg4: memref<1x1x8x256xf32, #tpu.memory_space<vmem>>, %arg5: memref<1x1x8x256xf32, #tpu.memory_space<vmem>>, %arg6: memref<9x8x24xf32, #tpu.memory_space<vmem>>, %arg7: memref<8x8xf32, #tpu.memory_space<vmem>>, %arg8: memref<8x1xf32, #tpu.memory_space<vmem>>, %arg9: memref<8x1xf32, #tpu.memory_space<vmem>>, %arg10: memref<8x1xf32, #tpu.memory_space<vmem>>, %arg11: memref<1x8x1024xf32, #tpu.memory_space<vmem>>, %arg12: memref<24x1408xf32, #tpu.memory_space<vmem>>, %arg13: memref<8x1xf32, #tpu.memory_space<vmem>>, %arg14: memref<8x1xf32, #tpu.memory_space<vmem>>, %arg15: memref<8x1xf32, #tpu.memory_space<vmem>>, %arg16: memref<8x1xf32, #tpu.memory_space<vmem>>) attributes {dimension_semantics = [#tpu.dimension_semantics<parallel>, #tpu.dimension_semantics<arbitrary>, #tpu.dimension_semantics<arbitrary>], iteration_bounds = array<i64: 2, 2, 2>, scalar_prefetch = 0 : i64, scratch_operands = 5 : i64, tpu.core_type = #tpu.core_type<tc>, window_params = [{transform_indices = @transform_0, window_bounds = array<i64: 1, 8, 8, 256>}, {transform_indices = @transform_1, window_bounds = array<i64: 1, 1, 8, 256>}, {transform_indices = @transform_2, window_bounds = array<i64: 1, 1, 8, 256>}, {pipeline_mode = #tpu.pipeline_mode<synchronous>, transform_indices = @transform_3, window_bounds = array<i64: 9, 8, 24>}, {pipeline_mode = #tpu.pipeline_mode<synchronous>, transform_indices = @transform_4, window_bounds = array<i64: 8, 8>}, {pipeline_mode = #tpu.pipeline_mode<synchronous>, transform_indices = @transform_5, window_bounds = array<i64: 8, 1>}, {pipeline_mode = #tpu.pipeline_mode<synchronous>, transform_indices = @transform_6, window_bounds = array<i64: 8, 1>}, {pipeline_mode = #tpu.pipeline_mode<synchronous>, transform_indices = @transform_7, window_bounds = array<i64: 8, 1>}, {transform_indices = @transform_8, window_bounds = array<i64: 1, 8, 1024>}]} {
    %c0_i32 = arith.constant 0 : i32
    %0 = arith.cmpi eq, %arg1, %c0_i32 : i32
    %c0_i32_0 = arith.constant 0 : i32
    %1 = arith.cmpi eq, %arg2, %c0_i32_0 : i32
    %2 = arith.andi %0, %1 : i1
    %3 = arith.extui %2 : i1 to i32
    %c0_i32_1 = arith.constant 0 : i32
    %4 = arith.cmpi ne, %3, %c0_i32_1 : i32
    scf.if %4 {
      %cst = arith.constant 0.000000e+00 : f32
      %101 = vector.broadcast %cst : f32 to vector<24x128xf32>
      %c0_164 = arith.constant 0 : index
      %c1280 = arith.constant 1280 : index
      %102 = vector.load %arg12[%c0_164, %c1280] : memref<24x1408xf32, #tpu.memory_space<vmem>>, vector<24x128xf32>
      tpu.vector_store %arg12[%c0_164, %c1280], %101 {strides = array<i32>} : memref<24x1408xf32, #tpu.memory_space<vmem>>, vector<24x128xf32>,
    } else {
    }
    %c0 = arith.constant 0 : index
    %c0_2 = arith.constant 0 : index
    %c0_3 = arith.constant 0 : index
    %c0_4 = arith.constant 0 : index
    %5 = vector.load %arg3[%c0, %c0_2, %c0_3, %c0_4] : memref<1x8x8x256xf32, #tpu.memory_space<vmem>>, vector<1x1x8x128xf32>
    %6 = vector.shape_cast %5 : vector<1x1x8x128xf32> to vector<8x128xf32>
    %c0_5 = arith.constant 0 : index
    %c0_6 = arith.constant 0 : index
    %7 = vector.load %arg12[%c0_5, %c0_6] : memref<24x1408xf32, #tpu.memory_space<vmem>>, vector<8x128xf32>
    tpu.vector_store %arg12[%c0_5, %c0_6], %6 {strides = array<i32>} : memref<24x1408xf32, #tpu.memory_space<vmem>>, vector<8x128xf32>,
    %c0_7 = arith.constant 0 : index
    %c0_8 = arith.constant 0 : index
    %c0_9 = arith.constant 0 : index
    %c10 = arith.constant 10 : index
    %8 = vector.load %arg3[%c0_7, %c0_8, %c0_9, %c10] : memref<1x8x8x256xf32, #tpu.memory_space<vmem>>, vector<1x1x8x128xf32>
    %9 = vector.shape_cast %8 : vector<1x1x8x128xf32> to vector<8x128xf32>
    %c8 = arith.constant 8 : index
    %c0_10 = arith.constant 0 : index
    %10 = vector.load %arg12[%c8, %c0_10] : memref<24x1408xf32, #tpu.memory_space<vmem>>, vector<8x128xf32>
    tpu.vector_store %arg12[%c8, %c0_10], %9 {strides = array<i32>} : memref<24x1408xf32, #tpu.memory_space<vmem>>, vector<8x128xf32>,
    %c0_11 = arith.constant 0 : index
    %c0_12 = arith.constant 0 : index
    %c0_13 = arith.constant 0 : index
    %c20 = arith.constant 20 : index
    %11 = vector.load %arg3[%c0_11, %c0_12, %c0_13, %c20] : memref<1x8x8x256xf32, #tpu.memory_space<vmem>>, vector<1x1x8x128xf32>
    %12 = vector.shape_cast %11 : vector<1x1x8x128xf32> to vector<8x128xf32>
    %c16 = arith.constant 16 : index
    %c0_14 = arith.constant 0 : index
    %13 = vector.load %arg12[%c16, %c0_14] : memref<24x1408xf32, #tpu.memory_space<vmem>>, vector<8x128xf32>
    tpu.vector_store %arg12[%c16, %c0_14], %12 {strides = array<i32>} : memref<24x1408xf32, #tpu.memory_space<vmem>>, vector<8x128xf32>,
    %c0_15 = arith.constant 0 : index
    %c1 = arith.constant 1 : index
    %c0_16 = arith.constant 0 : index
    %c0_17 = arith.constant 0 : index
    %14 = vector.load %arg3[%c0_15, %c1, %c0_16, %c0_17] : memref<1x8x8x256xf32, #tpu.memory_space<vmem>>, vector<1x1x8x128xf32>
    %15 = vector.shape_cast %14 : vector<1x1x8x128xf32> to vector<8x128xf32>
    %c0_18 = arith.constant 0 : index
    %c128 = arith.constant 128 : index
    %16 = vector.load %arg12[%c0_18, %c128] : memref<24x1408xf32, #tpu.memory_space<vmem>>, vector<8x128xf32>
    tpu.vector_store %arg12[%c0_18, %c128], %15 {strides = array<i32>} : memref<24x1408xf32, #tpu.memory_space<vmem>>, vector<8x128xf32>,
    %c0_19 = arith.constant 0 : index
    %c1_20 = arith.constant 1 : index
    %c0_21 = arith.constant 0 : index
    %c10_22 = arith.constant 10 : index
    %17 = vector.load %arg3[%c0_19, %c1_20, %c0_21, %c10_22] : memref<1x8x8x256xf32, #tpu.memory_space<vmem>>, vector<1x1x8x128xf32>
    %18 = vector.shape_cast %17 : vector<1x1x8x128xf32> to vector<8x128xf32>
    %c8_23 = arith.constant 8 : index
    %c128_24 = arith.constant 128 : index
    %19 = vector.load %arg12[%c8_23, %c128_24] : memref<24x1408xf32, #tpu.memory_space<vmem>>, vector<8x128xf32>
    tpu.vector_store %arg12[%c8_23, %c128_24], %18 {strides = array<i32>} : memref<24x1408xf32, #tpu.memory_space<vmem>>, vector<8x128xf32>,
    %c0_25 = arith.constant 0 : index
    %c1_26 = arith.constant 1 : index
    %c0_27 = arith.constant 0 : index
    %c20_28 = arith.constant 20 : index
    %20 = vector.load %arg3[%c0_25, %c1_26, %c0_27, %c20_28] : memref<1x8x8x256xf32, #tpu.memory_space<vmem>>, vector<1x1x8x128xf32>
    %21 = vector.shape_cast %20 : vector<1x1x8x128xf32> to vector<8x128xf32>
    %c16_29 = arith.constant 16 : index
    %c128_30 = arith.constant 128 : index
    %22 = vector.load %arg12[%c16_29, %c128_30] : memref<24x1408xf32, #tpu.memory_space<vmem>>, vector<8x128xf32>
    tpu.vector_store %arg12[%c16_29, %c128_30], %21 {strides = array<i32>} : memref<24x1408xf32, #tpu.memory_space<vmem>>, vector<8x128xf32>,
    %c0_31 = arith.constant 0 : index
    %c2 = arith.constant 2 : index
    %c0_32 = arith.constant 0 : index
    %c0_33 = arith.constant 0 : index
    %23 = vector.load %arg3[%c0_31, %c2, %c0_32, %c0_33] : memref<1x8x8x256xf32, #tpu.memory_space<vmem>>, vector<1x1x8x128xf32>
    %24 = vector.shape_cast %23 : vector<1x1x8x128xf32> to vector<8x128xf32>
    %c0_34 = arith.constant 0 : index
    %c256 = arith.constant 256 : index
    %25 = vector.load %arg12[%c0_34, %c256] : memref<24x1408xf32, #tpu.memory_space<vmem>>, vector<8x128xf32>
    tpu.vector_store %arg12[%c0_34, %c256], %24 {strides = array<i32>} : memref<24x1408xf32, #tpu.memory_space<vmem>>, vector<8x128xf32>,
    %c0_35 = arith.constant 0 : index
    %c2_36 = arith.constant 2 : index
    %c0_37 = arith.constant 0 : index
    %c10_38 = arith.constant 10 : index
    %26 = vector.load %arg3[%c0_35, %c2_36, %c0_37, %c10_38] : memref<1x8x8x256xf32, #tpu.memory_space<vmem>>, vector<1x1x8x128xf32>
    %27 = vector.shape_cast %26 : vector<1x1x8x128xf32> to vector<8x128xf32>
    %c8_39 = arith.constant 8 : index
    %c256_40 = arith.constant 256 : index
    %28 = vector.load %arg12[%c8_39, %c256_40] : memref<24x1408xf32, #tpu.memory_space<vmem>>, vector<8x128xf32>
    tpu.vector_store %arg12[%c8_39, %c256_40], %27 {strides = array<i32>} : memref<24x1408xf32, #tpu.memory_space<vmem>>, vector<8x128xf32>,
    %c0_41 = arith.constant 0 : index
    %c2_42 = arith.constant 2 : index
    %c0_43 = arith.constant 0 : index
    %c20_44 = arith.constant 20 : index
    %29 = vector.load %arg3[%c0_41, %c2_42, %c0_43, %c20_44] : memref<1x8x8x256xf32, #tpu.memory_space<vmem>>, vector<1x1x8x128xf32>
    %30 = vector.shape_cast %29 : vector<1x1x8x128xf32> to vector<8x128xf32>
    %c16_45 = arith.constant 16 : index
    %c256_46 = arith.constant 256 : index
    %31 = vector.load %arg12[%c16_45, %c256_46] : memref<24x1408xf32, #tpu.memory_space<vmem>>, vector<8x128xf32>
    tpu.vector_store %arg12[%c16_45, %c256_46], %30 {strides = array<i32>} : memref<24x1408xf32, #tpu.memory_space<vmem>>, vector<8x128xf32>,
    %c0_47 = arith.constant 0 : index
    %c3 = arith.constant 3 : index
    %c0_48 = arith.constant 0 : index
    %c0_49 = arith.constant 0 : index
    %32 = vector.load %arg3[%c0_47, %c3, %c0_48, %c0_49] : memref<1x8x8x256xf32, #tpu.memory_space<vmem>>, vector<1x1x8x128xf32>
    %33 = vector.shape_cast %32 : vector<1x1x8x128xf32> to vector<8x128xf32>
    %c0_50 = arith.constant 0 : index
    %c384 = arith.constant 384 : index
    %34 = vector.load %arg12[%c0_50, %c384] : memref<24x1408xf32, #tpu.memory_space<vmem>>, vector<8x128xf32>
    tpu.vector_store %arg12[%c0_50, %c384], %33 {strides = array<i32>} : memref<24x1408xf32, #tpu.memory_space<vmem>>, vector<8x128xf32>,
    %c0_51 = arith.constant 0 : index
    %c3_52 = arith.constant 3 : index
    %c0_53 = arith.constant 0 : index
    %c10_54 = arith.constant 10 : index
    %35 = vector.load %arg3[%c0_51, %c3_52, %c0_53, %c10_54] : memref<1x8x8x256xf32, #tpu.memory_space<vmem>>, vector<1x1x8x128xf32>
    %36 = vector.shape_cast %35 : vector<1x1x8x128xf32> to vector<8x128xf32>
    %c8_55 = arith.constant 8 : index
    %c384_56 = arith.constant 384 : index
    %37 = vector.load %arg12[%c8_55, %c384_56] : memref<24x1408xf32, #tpu.memory_space<vmem>>, vector<8x128xf32>
    tpu.vector_store %arg12[%c8_55, %c384_56], %36 {strides = array<i32>} : memref<24x1408xf32, #tpu.memory_space<vmem>>, vector<8x128xf32>,
    %c0_57 = arith.constant 0 : index
    %c3_58 = arith.constant 3 : index
    %c0_59 = arith.constant 0 : index
    %c20_60 = arith.constant 20 : index
    %38 = vector.load %arg3[%c0_57, %c3_58, %c0_59, %c20_60] : memref<1x8x8x256xf32, #tpu.memory_space<vmem>>, vector<1x1x8x128xf32>
    %39 = vector.shape_cast %38 : vector<1x1x8x128xf32> to vector<8x128xf32>
    %c16_61 = arith.constant 16 : index
    %c384_62 = arith.constant 384 : index
    %40 = vector.load %arg12[%c16_61, %c384_62] : memref<24x1408xf32, #tpu.memory_space<vmem>>, vector<8x128xf32>
    tpu.vector_store %arg12[%c16_61, %c384_62], %39 {strides = array<i32>} : memref<24x1408xf32, #tpu.memory_space<vmem>>, vector<8x128xf32>,
    %c0_63 = arith.constant 0 : index
    %c4 = arith.constant 4 : index
    %c0_64 = arith.constant 0 : index
    %c0_65 = arith.constant 0 : index
    %41 = vector.load %arg3[%c0_63, %c4, %c0_64, %c0_65] : memref<1x8x8x256xf32, #tpu.memory_space<vmem>>, vector<1x1x8x128xf32>
    %42 = vector.shape_cast %41 : vector<1x1x8x128xf32> to vector<8x128xf32>
    %c0_66 = arith.constant 0 : index
    %c512 = arith.constant 512 : index
    %43 = vector.load %arg12[%c0_66, %c512] : memref<24x1408xf32, #tpu.memory_space<vmem>>, vector<8x128xf32>
    tpu.vector_store %arg12[%c0_66, %c512], %42 {strides = array<i32>} : memref<24x1408xf32, #tpu.memory_space<vmem>>, vector<8x128xf32>,
    %c0_67 = arith.constant 0 : index
    %c4_68 = arith.constant 4 : index
    %c0_69 = arith.constant 0 : index
    %c10_70 = arith.constant 10 : index
    %44 = vector.load %arg3[%c0_67, %c4_68, %c0_69, %c10_70] : memref<1x8x8x256xf32, #tpu.memory_space<vmem>>, vector<1x1x8x128xf32>
    %45 = vector.shape_cast %44 : vector<1x1x8x128xf32> to vector<8x128xf32>
    %c8_71 = arith.constant 8 : index
    %c512_72 = arith.constant 512 : index
    %46 = vector.load %arg12[%c8_71, %c512_72] : memref<24x1408xf32, #tpu.memory_space<vmem>>, vector<8x128xf32>
    tpu.vector_store %arg12[%c8_71, %c512_72], %45 {strides = array<i32>} : memref<24x1408xf32, #tpu.memory_space<vmem>>, vector<8x128xf32>,
    %c0_73 = arith.constant 0 : index
    %c4_74 = arith.constant 4 : index
    %c0_75 = arith.constant 0 : index
    %c20_76 = arith.constant 20 : index
    %47 = vector.load %arg3[%c0_73, %c4_74, %c0_75, %c20_76] : memref<1x8x8x256xf32, #tpu.memory_space<vmem>>, vector<1x1x8x128xf32>
    %48 = vector.shape_cast %47 : vector<1x1x8x128xf32> to vector<8x128xf32>
    %c16_77 = arith.constant 16 : index
    %c512_78 = arith.constant 512 : index
    %49 = vector.load %arg12[%c16_77, %c512_78] : memref<24x1408xf32, #tpu.memory_space<vmem>>, vector<8x128xf32>
    tpu.vector_store %arg12[%c16_77, %c512_78], %48 {strides = array<i32>} : memref<24x1408xf32, #tpu.memory_space<vmem>>, vector<8x128xf32>,
    %c0_79 = arith.constant 0 : index
    %c5 = arith.constant 5 : index
    %c0_80 = arith.constant 0 : index
    %c0_81 = arith.constant 0 : index
    %50 = vector.load %arg3[%c0_79, %c5, %c0_80, %c0_81] : memref<1x8x8x256xf32, #tpu.memory_space<vmem>>, vector<1x1x8x128xf32>
    %51 = vector.shape_cast %50 : vector<1x1x8x128xf32> to vector<8x128xf32>
    %c0_82 = arith.constant 0 : index
    %c640 = arith.constant 640 : index
    %52 = vector.load %arg12[%c0_82, %c640] : memref<24x1408xf32, #tpu.memory_space<vmem>>, vector<8x128xf32>
    tpu.vector_store %arg12[%c0_82, %c640], %51 {strides = array<i32>} : memref<24x1408xf32, #tpu.memory_space<vmem>>, vector<8x128xf32>,
    %c0_83 = arith.constant 0 : index
    %c5_84 = arith.constant 5 : index
    %c0_85 = arith.constant 0 : index
    %c10_86 = arith.constant 10 : index
    %53 = vector.load %arg3[%c0_83, %c5_84, %c0_85, %c10_86] : memref<1x8x8x256xf32, #tpu.memory_space<vmem>>, vector<1x1x8x128xf32>
    %54 = vector.shape_cast %53 : vector<1x1x8x128xf32> to vector<8x128xf32>
    %c8_87 = arith.constant 8 : index
    %c640_88 = arith.constant 640 : index
    %55 = vector.load %arg12[%c8_87, %c640_88] : memref<24x1408xf32, #tpu.memory_space<vmem>>, vector<8x128xf32>
    tpu.vector_store %arg12[%c8_87, %c640_88], %54 {strides = array<i32>} : memref<24x1408xf32, #tpu.memory_space<vmem>>, vector<8x128xf32>,
    %c0_89 = arith.constant 0 : index
    %c5_90 = arith.constant 5 : index
    %c0_91 = arith.constant 0 : index
    %c20_92 = arith.constant 20 : index
    %56 = vector.load %arg3[%c0_89, %c5_90, %c0_91, %c20_92] : memref<1x8x8x256xf32, #tpu.memory_space<vmem>>, vector<1x1x8x128xf32>
    %57 = vector.shape_cast %56 : vector<1x1x8x128xf32> to vector<8x128xf32>
    %c16_93 = arith.constant 16 : index
    %c640_94 = arith.constant 640 : index
    %58 = vector.load %arg12[%c16_93, %c640_94] : memref<24x1408xf32, #tpu.memory_space<vmem>>, vector<8x128xf32>
    tpu.vector_store %arg12[%c16_93, %c640_94], %57 {strides = array<i32>} : memref<24x1408xf32, #tpu.memory_space<vmem>>, vector<8x128xf32>,
    %c0_95 = arith.constant 0 : index
    %c6 = arith.constant 6 : index
    %c0_96 = arith.constant 0 : index
    %c0_97 = arith.constant 0 : index
    %59 = vector.load %arg3[%c0_95, %c6, %c0_96, %c0_97] : memref<1x8x8x256xf32, #tpu.memory_space<vmem>>, vector<1x1x8x128xf32>
    %60 = vector.shape_cast %59 : vector<1x1x8x128xf32> to vector<8x128xf32>
    %c0_98 = arith.constant 0 : index
    %c768 = arith.constant 768 : index
    %61 = vector.load %arg12[%c0_98, %c768] : memref<24x1408xf32, #tpu.memory_space<vmem>>, vector<8x128xf32>
    tpu.vector_store %arg12[%c0_98, %c768], %60 {strides = array<i32>} : memref<24x1408xf32, #tpu.memory_space<vmem>>, vector<8x128xf32>,
    %c0_99 = arith.constant 0 : index
    %c6_100 = arith.constant 6 : index
    %c0_101 = arith.constant 0 : index
    %c10_102 = arith.constant 10 : index
    %62 = vector.load %arg3[%c0_99, %c6_100, %c0_101, %c10_102] : memref<1x8x8x256xf32, #tpu.memory_space<vmem>>, vector<1x1x8x128xf32>
    %63 = vector.shape_cast %62 : vector<1x1x8x128xf32> to vector<8x128xf32>
    %c8_103 = arith.constant 8 : index
    %c768_104 = arith.constant 768 : index
    %64 = vector.load %arg12[%c8_103, %c768_104] : memref<24x1408xf32, #tpu.memory_space<vmem>>, vector<8x128xf32>
    tpu.vector_store %arg12[%c8_103, %c768_104], %63 {strides = array<i32>} : memref<24x1408xf32, #tpu.memory_space<vmem>>, vector<8x128xf32>,
    %c0_105 = arith.constant 0 : index
    %c6_106 = arith.constant 6 : index
    %c0_107 = arith.constant 0 : index
    %c20_108 = arith.constant 20 : index
    %65 = vector.load %arg3[%c0_105, %c6_106, %c0_107, %c20_108] : memref<1x8x8x256xf32, #tpu.memory_space<vmem>>, vector<1x1x8x128xf32>
    %66 = vector.shape_cast %65 : vector<1x1x8x128xf32> to vector<8x128xf32>
    %c16_109 = arith.constant 16 : index
    %c768_110 = arith.constant 768 : index
    %67 = vector.load %arg12[%c16_109, %c768_110] : memref<24x1408xf32, #tpu.memory_space<vmem>>, vector<8x128xf32>
    tpu.vector_store %arg12[%c16_109, %c768_110], %66 {strides = array<i32>} : memref<24x1408xf32, #tpu.memory_space<vmem>>, vector<8x128xf32>,
    %c0_111 = arith.constant 0 : index
    %c7 = arith.constant 7 : index
    %c0_112 = arith.constant 0 : index
    %c0_113 = arith.constant 0 : index
    %68 = vector.load %arg3[%c0_111, %c7, %c0_112, %c0_113] : memref<1x8x8x256xf32, #tpu.memory_space<vmem>>, vector<1x1x8x128xf32>
    %69 = vector.shape_cast %68 : vector<1x1x8x128xf32> to vector<8x128xf32>
    %c0_114 = arith.constant 0 : index
    %c896 = arith.constant 896 : index
    %70 = vector.load %arg12[%c0_114, %c896] : memref<24x1408xf32, #tpu.memory_space<vmem>>, vector<8x128xf32>
    tpu.vector_store %arg12[%c0_114, %c896], %69 {strides = array<i32>} : memref<24x1408xf32, #tpu.memory_space<vmem>>, vector<8x128xf32>,
    %c0_115 = arith.constant 0 : index
    %c7_116 = arith.constant 7 : index
    %c0_117 = arith.constant 0 : index
    %c10_118 = arith.constant 10 : index
    %71 = vector.load %arg3[%c0_115, %c7_116, %c0_117, %c10_118] : memref<1x8x8x256xf32, #tpu.memory_space<vmem>>, vector<1x1x8x128xf32>
    %72 = vector.shape_cast %71 : vector<1x1x8x128xf32> to vector<8x128xf32>
    %c8_119 = arith.constant 8 : index
    %c896_120 = arith.constant 896 : index
    %73 = vector.load %arg12[%c8_119, %c896_120] : memref<24x1408xf32, #tpu.memory_space<vmem>>, vector<8x128xf32>
    tpu.vector_store %arg12[%c8_119, %c896_120], %72 {strides = array<i32>} : memref<24x1408xf32, #tpu.memory_space<vmem>>, vector<8x128xf32>,
    %c0_121 = arith.constant 0 : index
    %c7_122 = arith.constant 7 : index
    %c0_123 = arith.constant 0 : index
    %c20_124 = arith.constant 20 : index
    %74 = vector.load %arg3[%c0_121, %c7_122, %c0_123, %c20_124] : memref<1x8x8x256xf32, #tpu.memory_space<vmem>>, vector<1x1x8x128xf32>
    %75 = vector.shape_cast %74 : vector<1x1x8x128xf32> to vector<8x128xf32>
    %c16_125 = arith.constant 16 : index
    %c896_126 = arith.constant 896 : index
    %76 = vector.load %arg12[%c16_125, %c896_126] : memref<24x1408xf32, #tpu.memory_space<vmem>>, vector<8x128xf32>
    tpu.vector_store %arg12[%c16_125, %c896_126], %75 {strides = array<i32>} : memref<24x1408xf32, #tpu.memory_space<vmem>>, vector<8x128xf32>,
    %c0_127 = arith.constant 0 : index
    %c0_128 = arith.constant 0 : index
    %c0_129 = arith.constant 0 : index
    %c0_130 = arith.constant 0 : index
    %77 = vector.load %arg4[%c0_127, %c0_128, %c0_129, %c0_130] : memref<1x1x8x256xf32, #tpu.memory_space<vmem>>, vector<1x1x8x128xf32>
    %78 = vector.shape_cast %77 : vector<1x1x8x128xf32> to vector<8x128xf32>
    %c0_131 = arith.constant 0 : index
    %c1024 = arith.constant 1024 : index
    %79 = vector.load %arg12[%c0_131, %c1024] : memref<24x1408xf32, #tpu.memory_space<vmem>>, vector<8x128xf32>
    tpu.vector_store %arg12[%c0_131, %c1024], %78 {strides = array<i32>} : memref<24x1408xf32, #tpu.memory_space<vmem>>, vector<8x128xf32>,
    %c0_132 = arith.constant 0 : index
    %c0_133 = arith.constant 0 : index
    %c0_134 = arith.constant 0 : index
    %c10_135 = arith.constant 10 : index
    %80 = vector.load %arg4[%c0_132, %c0_133, %c0_134, %c10_135] : memref<1x1x8x256xf32, #tpu.memory_space<vmem>>, vector<1x1x8x128xf32>
    %81 = vector.shape_cast %80 : vector<1x1x8x128xf32> to vector<8x128xf32>
    %c8_136 = arith.constant 8 : index
    %c1024_137 = arith.constant 1024 : index
    %82 = vector.load %arg12[%c8_136, %c1024_137] : memref<24x1408xf32, #tpu.memory_space<vmem>>, vector<8x128xf32>
    tpu.vector_store %arg12[%c8_136, %c1024_137], %81 {strides = array<i32>} : memref<24x1408xf32, #tpu.memory_space<vmem>>, vector<8x128xf32>,
    %c0_138 = arith.constant 0 : index
    %c0_139 = arith.constant 0 : index
    %c0_140 = arith.constant 0 : index
    %c20_141 = arith.constant 20 : index
    %83 = vector.load %arg4[%c0_138, %c0_139, %c0_140, %c20_141] : memref<1x1x8x256xf32, #tpu.memory_space<vmem>>, vector<1x1x8x128xf32>
    %84 = vector.shape_cast %83 : vector<1x1x8x128xf32> to vector<8x128xf32>
    %c16_142 = arith.constant 16 : index
    %c1024_143 = arith.constant 1024 : index
    %85 = vector.load %arg12[%c16_142, %c1024_143] : memref<24x1408xf32, #tpu.memory_space<vmem>>, vector<8x128xf32>
    tpu.vector_store %arg12[%c16_142, %c1024_143], %84 {strides = array<i32>} : memref<24x1408xf32, #tpu.memory_space<vmem>>, vector<8x128xf32>,
    %c0_144 = arith.constant 0 : index
    %c0_145 = arith.constant 0 : index
    %c0_146 = arith.constant 0 : index
    %c0_147 = arith.constant 0 : index
    %86 = vector.load %arg5[%c0_144, %c0_145, %c0_146, %c0_147] : memref<1x1x8x256xf32, #tpu.memory_space<vmem>>, vector<1x1x8x128xf32>
    %87 = vector.shape_cast %86 : vector<1x1x8x128xf32> to vector<8x128xf32>
    %c0_148 = arith.constant 0 : index
    %c1152 = arith.constant 1152 : index
    %88 = vector.load %arg12[%c0_148, %c1152] : memref<24x1408xf32, #tpu.memory_space<vmem>>, vector<8x128xf32>
    tpu.vector_store %arg12[%c0_148, %c1152], %87 {strides = array<i32>} : memref<24x1408xf32, #tpu.memory_space<vmem>>, vector<8x128xf32>,
    %c0_149 = arith.constant 0 : index
    %c0_150 = arith.constant 0 : index
    %c0_151 = arith.constant 0 : index
    %c10_152 = arith.constant 10 : index
    %89 = vector.load %arg5[%c0_149, %c0_150, %c0_151, %c10_152] : memref<1x1x8x256xf32, #tpu.memory_space<vmem>>, vector<1x1x8x128xf32>
    %90 = vector.shape_cast %89 : vector<1x1x8x128xf32> to vector<8x128xf32>
    %c8_153 = arith.constant 8 : index
    %c1152_154 = arith.constant 1152 : index
    %91 = vector.load %arg12[%c8_153, %c1152_154] : memref<24x1408xf32, #tpu.memory_space<vmem>>, vector<8x128xf32>
    tpu.vector_store %arg12[%c8_153, %c1152_154], %90 {strides = array<i32>} : memref<24x1408xf32, #tpu.memory_space<vmem>>, vector<8x128xf32>,
    %c0_155 = arith.constant 0 : index
    %c0_156 = arith.constant 0 : index
    %c0_157 = arith.constant 0 : index
    %c20_158 = arith.constant 20 : index
    %92 = vector.load %arg5[%c0_155, %c0_156, %c0_157, %c20_158] : memref<1x1x8x256xf32, #tpu.memory_space<vmem>>, vector<1x1x8x128xf32>
    %93 = vector.shape_cast %92 : vector<1x1x8x128xf32> to vector<8x128xf32>
    %c16_159 = arith.constant 16 : index
    %c1152_160 = arith.constant 1152 : index
    %94 = vector.load %arg12[%c16_159, %c1152_160] : memref<24x1408xf32, #tpu.memory_space<vmem>>, vector<8x128xf32>
    tpu.vector_store %arg12[%c16_159, %c1152_160], %93 {strides = array<i32>} : memref<24x1408xf32, #tpu.memory_space<vmem>>, vector<8x128xf32>,
    %c0_i32_161 = arith.constant 0 : i32
    %95 = arith.cmpi eq, %arg1, %c0_i32_161 : i32
    %96 = arith.extui %95 : i1 to i32
    %c0_i32_162 = arith.constant 0 : i32
    %97 = arith.cmpi ne, %96, %c0_i32_162 : i32
    scf.if %97 {
      %c0_i32_164 = arith.constant 0 : i32
      %101 = arith.cmpi eq, %arg2, %c0_i32_164 : i32
      %102 = arith.extui %101 : i1 to i32
      %c0_i32_165 = arith.constant 0 : i32
      %103 = arith.cmpi ne, %102, %c0_i32_165 : i32
      scf.if %103 {
        %cst_236 = arith.constant 0.000000e+00 : f32
        %201 = vector.broadcast %cst_236 : f32 to vector<8x1xf32>
        %c0_237 = arith.constant 0 : index
        %c0_238 = arith.constant 0 : index
        %202 = vector.load %arg13[%c0_237, %c0_238] : memref<8x1xf32, #tpu.memory_space<vmem>>, vector<8x1xf32>
        tpu.vector_store %arg13[%c0_237, %c0_238], %201 {strides = array<i32>} : memref<8x1xf32, #tpu.memory_space<vmem>>, vector<8x1xf32>,
        %cst_239 = arith.constant 0.000000e+00 : f32
        %203 = vector.broadcast %cst_239 : f32 to vector<8x1xf32>
        %c0_240 = arith.constant 0 : index
        %c0_241 = arith.constant 0 : index
        %204 = vector.load %arg14[%c0_240, %c0_241] : memref<8x1xf32, #tpu.memory_space<vmem>>, vector<8x1xf32>
        tpu.vector_store %arg14[%c0_240, %c0_241], %203 {strides = array<i32>} : memref<8x1xf32, #tpu.memory_space<vmem>>, vector<8x1xf32>,
      } else {
      }
      %c0_166 = arith.constant 0 : index
      %c0_167 = arith.constant 0 : index
      %104 = vector.load %arg12[%c0_166, %c0_167] : memref<24x1408xf32, #tpu.memory_space<vmem>>, vector<24x1024xf32>
      %c0_168 = arith.constant 0 : index
      %c0_169 = arith.constant 0 : index
      %c0_170 = arith.constant 0 : index
      %105 = vector.load %arg6[%c0_168, %c0_169, %c0_170] : memref<9x8x24xf32, #tpu.memory_space<vmem>>, vector<1x8x24xf32>
      %106 = vector.shape_cast %105 : vector<1x8x24xf32> to vector<8x24xf32>
      %cst = arith.constant dense<0.000000e+00> : vector<8x1024xf32>
      %107 = tpu.matmul %106, %104, %cst {dimension_numbers = #tpu.dot_dimension_numbers<[1], [0], [0], [1], [0, 0, 1, 1], [], []>} : vector<8x24xf32>, vector<24x1024xf32>, vector<8x1024xf32> -> vector<8x1024xf32>
      %c0_171 = arith.constant 0 : index
      %c1_172 = arith.constant 1 : index
      %108 = vector.load %arg12[%c0_171, %c1_172] : memref<24x1408xf32, #tpu.memory_space<vmem>>, vector<24x1024xf32>
      %c1_173 = arith.constant 1 : index
      %c0_174 = arith.constant 0 : index
      %c0_175 = arith.constant 0 : index
      %109 = vector.load %arg6[%c1_173, %c0_174, %c0_175] : memref<9x8x24xf32, #tpu.memory_space<vmem>>, vector<1x8x24xf32>
      %110 = vector.shape_cast %109 : vector<1x8x24xf32> to vector<8x24xf32>
      %cst_176 = arith.constant dense<0.000000e+00> : vector<8x1024xf32>
      %111 = tpu.matmul %110, %108, %cst_176 {dimension_numbers = #tpu.dot_dimension_numbers<[1], [0], [0], [1], [0, 0, 1, 1], [], []>} : vector<8x24xf32>, vector<24x1024xf32>, vector<8x1024xf32> -> vector<8x1024xf32>
      %112 = arith.addf %107, %111 : vector<8x1024xf32>
      %c0_177 = arith.constant 0 : index
      %c2_178 = arith.constant 2 : index
      %113 = vector.load %arg12[%c0_177, %c2_178] : memref<24x1408xf32, #tpu.memory_space<vmem>>, vector<24x1024xf32>
      %c2_179 = arith.constant 2 : index
      %c0_180 = arith.constant 0 : index
      %c0_181 = arith.constant 0 : index
      %114 = vector.load %arg6[%c2_179, %c0_180, %c0_181] : memref<9x8x24xf32, #tpu.memory_space<vmem>>, vector<1x8x24xf32>
      %115 = vector.shape_cast %114 : vector<1x8x24xf32> to vector<8x24xf32>
      %cst_182 = arith.constant dense<0.000000e+00> : vector<8x1024xf32>
      %116 = tpu.matmul %115, %113, %cst_182 {dimension_numbers = #tpu.dot_dimension_numbers<[1], [0], [0], [1], [0, 0, 1, 1], [], []>} : vector<8x24xf32>, vector<24x1024xf32>, vector<8x1024xf32> -> vector<8x1024xf32>
      %117 = arith.addf %112, %116 : vector<8x1024xf32>
      %c0_183 = arith.constant 0 : index
      %c128_184 = arith.constant 128 : index
      %118 = vector.load %arg12[%c0_183, %c128_184] : memref<24x1408xf32, #tpu.memory_space<vmem>>, vector<24x1024xf32>
      %c3_185 = arith.constant 3 : index
      %c0_186 = arith.constant 0 : index
      %c0_187 = arith.constant 0 : index
      %119 = vector.load %arg6[%c3_185, %c0_186, %c0_187] : memref<9x8x24xf32, #tpu.memory_space<vmem>>, vector<1x8x24xf32>
      %120 = vector.shape_cast %119 : vector<1x8x24xf32> to vector<8x24xf32>
      %cst_188 = arith.constant dense<0.000000e+00> : vector<8x1024xf32>
      %121 = tpu.matmul %120, %118, %cst_188 {dimension_numbers = #tpu.dot_dimension_numbers<[1], [0], [0], [1], [0, 0, 1, 1], [], []>} : vector<8x24xf32>, vector<24x1024xf32>, vector<8x1024xf32> -> vector<8x1024xf32>
      %122 = arith.addf %117, %121 : vector<8x1024xf32>
      %c0_189 = arith.constant 0 : index
      %c129 = arith.constant 129 : index
      %123 = vector.load %arg12[%c0_189, %c129] : memref<24x1408xf32, #tpu.memory_space<vmem>>, vector<24x1024xf32>
      %c4_190 = arith.constant 4 : index
      %c0_191 = arith.constant 0 : index
      %c0_192 = arith.constant 0 : index
      %124 = vector.load %arg6[%c4_190, %c0_191, %c0_192] : memref<9x8x24xf32, #tpu.memory_space<vmem>>, vector<1x8x24xf32>
      %125 = vector.shape_cast %124 : vector<1x8x24xf32> to vector<8x24xf32>
      %cst_193 = arith.constant dense<0.000000e+00> : vector<8x1024xf32>
      %126 = tpu.matmul %125, %123, %cst_193 {dimension_numbers = #tpu.dot_dimension_numbers<[1], [0], [0], [1], [0, 0, 1, 1], [], []>} : vector<8x24xf32>, vector<24x1024xf32>, vector<8x1024xf32> -> vector<8x1024xf32>
      %127 = arith.addf %122, %126 : vector<8x1024xf32>
      %c0_194 = arith.constant 0 : index
      %c130 = arith.constant 130 : index
      %128 = vector.load %arg12[%c0_194, %c130] : memref<24x1408xf32, #tpu.memory_space<vmem>>, vector<24x1024xf32>
      %c5_195 = arith.constant 5 : index
      %c0_196 = arith.constant 0 : index
      %c0_197 = arith.constant 0 : index
      %129 = vector.load %arg6[%c5_195, %c0_196, %c0_197] : memref<9x8x24xf32, #tpu.memory_space<vmem>>, vector<1x8x24xf32>
      %130 = vector.shape_cast %129 : vector<1x8x24xf32> to vector<8x24xf32>
      %cst_198 = arith.constant dense<0.000000e+00> : vector<8x1024xf32>
      %131 = tpu.matmul %130, %128, %cst_198 {dimension_numbers = #tpu.dot_dimension_numbers<[1], [0], [0], [1], [0, 0, 1, 1], [], []>} : vector<8x24xf32>, vector<24x1024xf32>, vector<8x1024xf32> -> vector<8x1024xf32>
      %132 = arith.addf %127, %131 : vector<8x1024xf32>
      %c0_199 = arith.constant 0 : index
      %c256_200 = arith.constant 256 : index
      %133 = vector.load %arg12[%c0_199, %c256_200] : memref<24x1408xf32, #tpu.memory_space<vmem>>, vector<24x1024xf32>
      %c6_201 = arith.constant 6 : index
      %c0_202 = arith.constant 0 : index
      %c0_203 = arith.constant 0 : index
      %134 = vector.load %arg6[%c6_201, %c0_202, %c0_203] : memref<9x8x24xf32, #tpu.memory_space<vmem>>, vector<1x8x24xf32>
      %135 = vector.shape_cast %134 : vector<1x8x24xf32> to vector<8x24xf32>
      %cst_204 = arith.constant dense<0.000000e+00> : vector<8x1024xf32>
      %136 = tpu.matmul %135, %133, %cst_204 {dimension_numbers = #tpu.dot_dimension_numbers<[1], [0], [0], [1], [0, 0, 1, 1], [], []>} : vector<8x24xf32>, vector<24x1024xf32>, vector<8x1024xf32> -> vector<8x1024xf32>
      %137 = arith.addf %132, %136 : vector<8x1024xf32>
      %c0_205 = arith.constant 0 : index
      %c257 = arith.constant 257 : index
      %138 = vector.load %arg12[%c0_205, %c257] : memref<24x1408xf32, #tpu.memory_space<vmem>>, vector<24x1024xf32>
      %c7_206 = arith.constant 7 : index
      %c0_207 = arith.constant 0 : index
      %c0_208 = arith.constant 0 : index
      %139 = vector.load %arg6[%c7_206, %c0_207, %c0_208] : memref<9x8x24xf32, #tpu.memory_space<vmem>>, vector<1x8x24xf32>
      %140 = vector.shape_cast %139 : vector<1x8x24xf32> to vector<8x24xf32>
      %cst_209 = arith.constant dense<0.000000e+00> : vector<8x1024xf32>
      %141 = tpu.matmul %140, %138, %cst_209 {dimension_numbers = #tpu.dot_dimension_numbers<[1], [0], [0], [1], [0, 0, 1, 1], [], []>} : vector<8x24xf32>, vector<24x1024xf32>, vector<8x1024xf32> -> vector<8x1024xf32>
      %142 = arith.addf %137, %141 : vector<8x1024xf32>
      %c0_210 = arith.constant 0 : index
      %c258 = arith.constant 258 : index
      %143 = vector.load %arg12[%c0_210, %c258] : memref<24x1408xf32, #tpu.memory_space<vmem>>, vector<24x1024xf32>
      %c8_211 = arith.constant 8 : index
      %c0_212 = arith.constant 0 : index
      %c0_213 = arith.constant 0 : index
      %144 = vector.load %arg6[%c8_211, %c0_212, %c0_213] : memref<9x8x24xf32, #tpu.memory_space<vmem>>, vector<1x8x24xf32>
      %145 = vector.shape_cast %144 : vector<1x8x24xf32> to vector<8x24xf32>
      %cst_214 = arith.constant dense<0.000000e+00> : vector<8x1024xf32>
      %146 = tpu.matmul %145, %143, %cst_214 {dimension_numbers = #tpu.dot_dimension_numbers<[1], [0], [0], [1], [0, 0, 1, 1], [], []>} : vector<8x24xf32>, vector<24x1024xf32>, vector<8x1024xf32> -> vector<8x1024xf32>
      %147 = arith.addf %142, %146 : vector<8x1024xf32>
      %148 = tpu.iota {dimensions = array<i32: 1>} : vector<1x1024xi32>
      %c128_i32 = arith.constant 128 : i32
      %c0_i32_215 = arith.constant 0 : i32
      %149 = arith.cmpi eq, %c128_i32, %c0_i32_215 : i32
      %c1_i32_216 = arith.constant 1 : i32
      %150 = arith.select %149, %c1_i32_216, %c128_i32 : i32
      %151 = vector.broadcast %150 : i32 to vector<1x1024xi32>
      %152 = arith.remsi %148, %151 : vector<1x1024xi32>
      %c0_i32_217 = arith.constant 0 : i32
      %153 = vector.broadcast %c0_i32_217 : i32 to vector<1x1024xi32>
      %154 = arith.cmpi ne, %152, %153 : vector<1x1024xi32>
      %c0_i32_218 = arith.constant 0 : i32
      %155 = vector.broadcast %c0_i32_218 : i32 to vector<1x1024xi32>
      %156 = arith.cmpi slt, %152, %155 : vector<1x1024xi32>
      %c0_i32_219 = arith.constant 0 : i32
      %157 = arith.cmpi slt, %150, %c0_i32_219 : i32
      %158 = vector.broadcast %157 : i1 to vector<1x1024xi1>
      %159 = vector.broadcast %158 : vector<1x1024xi1> to vector<1x1024xi1>
      %160 = arith.xori %156, %159 : vector<1x1024xi1>
      %161 = arith.andi %160, %154 : vector<1x1024xi1>
      %162 = vector.broadcast %150 : i32 to vector<1x1024xi32>
      %163 = arith.addi %152, %162 : vector<1x1024xi32>
      %164 = arith.select %161, %163, %152 : vector<1x1024xi1>, vector<1x1024xi32>
      %c80_i32 = arith.constant 80 : i32
      %165 = vector.broadcast %c80_i32 : i32 to vector<1x1024xi32>
      %166 = arith.cmpi slt, %164, %165 : vector<1x1024xi32>
      %c10_i32 = arith.constant 10 : i32
      %c0_i32_220 = arith.constant 0 : i32
      %167 = arith.cmpi eq, %c10_i32, %c0_i32_220 : i32
      %c1_i32_221 = arith.constant 1 : i32
      %168 = arith.select %167, %c1_i32_221, %c10_i32 : i32
      %169 = vector.broadcast %168 : i32 to vector<1x1024xi32>
      %170 = arith.remsi %164, %169 : vector<1x1024xi32>
      %c0_i32_222 = arith.constant 0 : i32
      %171 = vector.broadcast %c0_i32_222 : i32 to vector<1x1024xi32>
      %172 = arith.cmpi ne, %170, %171 : vector<1x1024xi32>
      %c0_i32_223 = arith.constant 0 : i32
      %173 = vector.broadcast %c0_i32_223 : i32 to vector<1x1024xi32>
      %174 = arith.cmpi slt, %170, %173 : vector<1x1024xi32>
      %c0_i32_224 = arith.constant 0 : i32
      %175 = arith.cmpi slt, %168, %c0_i32_224 : i32
      %176 = vector.broadcast %175 : i1 to vector<1x1024xi1>
      %177 = vector.broadcast %176 : vector<1x1024xi1> to vector<1x1024xi1>
      %178 = arith.xori %174, %177 : vector<1x1024xi1>
      %179 = arith.andi %178, %172 : vector<1x1024xi1>
      %180 = vector.broadcast %168 : i32 to vector<1x1024xi32>
      %181 = arith.addi %170, %180 : vector<1x1024xi32>
      %182 = arith.select %179, %181, %170 : vector<1x1024xi1>, vector<1x1024xi32>
      %c8_i32 = arith.constant 8 : i32
      %183 = vector.broadcast %c8_i32 : i32 to vector<1x1024xi32>
      %184 = arith.cmpi slt, %182, %183 : vector<1x1024xi32>
      %185 = arith.andi %166, %184 : vector<1x1024xi1>
      %cst_225 = arith.constant 0.000000e+00 : f32
      %186 = vector.shape_cast %185 : vector<1x1024xi1> to vector<1x1024xi1>
      %187 = vector.broadcast %186 : vector<1x1024xi1> to vector<8x1024xi1>
      %188 = vector.broadcast %cst_225 : f32 to vector<8x1024xf32>
      %189 = arith.select %187, %147, %188 : vector<8x1024xi1>, vector<8x1024xf32>
      %c0_226 = arith.constant 0 : index
      %c0_227 = arith.constant 0 : index
      %190 = vector.load %arg13[%c0_226, %c0_227] : memref<8x1xf32, #tpu.memory_space<vmem>>, vector<8x1xf32>
      %cst_228 = arith.constant dense<0.000000e+00> : vector<8xf32>
      %191 = vector.multi_reduction <add>, %189, %cst_228 [1] : vector<8x1024xf32> to vector<8xf32>
      %192 = vector.shape_cast %191 : vector<8xf32> to vector<8x1xf32>
      %193 = arith.addf %190, %192 : vector<8x1xf32>
      %c0_229 = arith.constant 0 : index
      %c0_230 = arith.constant 0 : index
      %194 = vector.load %arg13[%c0_229, %c0_230] : memref<8x1xf32, #tpu.memory_space<vmem>>, vector<8x1xf32>
      tpu.vector_store %arg13[%c0_229, %c0_230], %193 {strides = array<i32>} : memref<8x1xf32, #tpu.memory_space<vmem>>, vector<8x1xf32>,
      %c0_231 = arith.constant 0 : index
      %c0_232 = arith.constant 0 : index
      %195 = vector.load %arg14[%c0_231, %c0_232] : memref<8x1xf32, #tpu.memory_space<vmem>>, vector<8x1xf32>
      %196 = arith.mulf %189, %189 : vector<8x1024xf32>
      %cst_233 = arith.constant dense<0.000000e+00> : vector<8xf32>
      %197 = vector.multi_reduction <add>, %196, %cst_233 [1] : vector<8x1024xf32> to vector<8xf32>
      %198 = vector.shape_cast %197 : vector<8xf32> to vector<8x1xf32>
      %199 = arith.addf %195, %198 : vector<8x1xf32>
      %c0_234 = arith.constant 0 : index
      %c0_235 = arith.constant 0 : index
      %200 = vector.load %arg14[%c0_234, %c0_235] : memref<8x1xf32, #tpu.memory_space<vmem>>, vector<8x1xf32>
      tpu.vector_store %arg14[%c0_234, %c0_235], %199 {strides = array<i32>} : memref<8x1xf32, #tpu.memory_space<vmem>>, vector<8x1xf32>,
    } else {
    }
    %c1_i32 = arith.constant 1 : i32
    %98 = arith.cmpi eq, %arg1, %c1_i32 : i32
    %99 = arith.extui %98 : i1 to i32
    %c0_i32_163 = arith.constant 0 : i32
    %100 = arith.cmpi ne, %99, %c0_i32_163 : i32
    scf.if %100 {
      %c0_i32_164 = arith.constant 0 : i32
      %101 = arith.cmpi eq, %arg2, %c0_i32_164 : i32
      %102 = arith.extui %101 : i1 to i32
      %c0_i32_165 = arith.constant 0 : i32
      %103 = arith.cmpi ne, %102, %c0_i32_165 : i32
      scf.if %103 {
        %c0_223 = arith.constant 0 : index
        %c0_224 = arith.constant 0 : index
        %159 = vector.load %arg13[%c0_223, %c0_224] : memref<8x1xf32, #tpu.memory_space<vmem>>, vector<8x1xf32>
        %c0_225 = arith.constant 0 : index
        %c0_226 = arith.constant 0 : index
        %160 = vector.load %arg14[%c0_225, %c0_226] : memref<8x1xf32, #tpu.memory_space<vmem>>, vector<8x1xf32>
        %c0_227 = arith.constant 0 : index
        %c0_228 = arith.constant 0 : index
        %161 = vector.load %arg8[%c0_227, %c0_228] : memref<8x1xf32, #tpu.memory_space<vmem>>, vector<8x1xf32>
        %c0_229 = arith.constant 0 : index
        %c0_230 = arith.constant 0 : index
        %162 = vector.load %arg7[%c0_229, %c0_230] : memref<8x8xf32, #tpu.memory_space<vmem>>, vector<8x8xf32>
        %cst_231 = arith.constant 1.024000e+03 : f32
        %163 = vector.broadcast %cst_231 : f32 to vector<8x1xf32>
        %164 = arith.mulf %163, %161 : vector<8x1xf32>
        %165 = arith.addf %159, %164 : vector<8x1xf32>
        %cst_232 = arith.constant dense<0.000000e+00> : vector<8x1xf32>
        %166 = tpu.matmul %162, %165, %cst_232 {dimension_numbers = #tpu.dot_dimension_numbers<[1], [0], [0], [1], [0, 0, 1, 1], [], []>} : vector<8x8xf32>, vector<8x1xf32>, vector<8x1xf32> -> vector<8x1xf32>
        %cst_233 = arith.constant 2.44140625E-4 : f32
        %167 = vector.broadcast %cst_233 : f32 to vector<8x1xf32>
        %168 = arith.mulf %166, %167 : vector<8x1xf32>
        %169 = arith.subf %161, %168 : vector<8x1xf32>
        %cst_234 = arith.constant 2.000000e+00 : f32
        %170 = vector.broadcast %cst_234 : f32 to vector<8x1xf32>
        %171 = arith.mulf %170, %169 : vector<8x1xf32>
        %172 = arith.mulf %171, %159 : vector<8x1xf32>
        %173 = arith.addf %160, %172 : vector<8x1xf32>
        %174 = arith.mulf %169, %169 : vector<8x1xf32>
        %cst_235 = arith.constant 1.024000e+03 : f32
        %175 = vector.broadcast %cst_235 : f32 to vector<8x1xf32>
        %176 = arith.mulf %175, %174 : vector<8x1xf32>
        %177 = arith.addf %173, %176 : vector<8x1xf32>
        %cst_236 = arith.constant dense<0.000000e+00> : vector<8x1xf32>
        %178 = tpu.matmul %162, %177, %cst_236 {dimension_numbers = #tpu.dot_dimension_numbers<[1], [0], [0], [1], [0, 0, 1, 1], [], []>} : vector<8x8xf32>, vector<8x1xf32>, vector<8x1xf32> -> vector<8x1xf32>
        %cst_237 = arith.constant 2.44140625E-4 : f32
        %179 = vector.broadcast %cst_237 : f32 to vector<8x1xf32>
        %180 = arith.mulf %178, %179 : vector<8x1xf32>
        %cst_238 = arith.constant 0.000000e+00 : f32
        %181 = vector.broadcast %cst_238 : f32 to vector<8x1xf32>
        %182 = arith.maximumf %180, %181 : vector<8x1xf32>
        %cst_239 = arith.constant 9.99999974E-6 : f32
        %183 = vector.broadcast %cst_239 : f32 to vector<8x1xf32>
        %184 = arith.addf %182, %183 : vector<8x1xf32>
        %185 = math.rsqrt %184 : vector<8x1xf32>
        %c0_240 = arith.constant 0 : index
        %c0_241 = arith.constant 0 : index
        %186 = vector.load %arg9[%c0_240, %c0_241] : memref<8x1xf32, #tpu.memory_space<vmem>>, vector<8x1xf32>
        %187 = arith.mulf %186, %185 : vector<8x1xf32>
        %c0_242 = arith.constant 0 : index
        %c0_243 = arith.constant 0 : index
        %188 = vector.load %arg15[%c0_242, %c0_243] : memref<8x1xf32, #tpu.memory_space<vmem>>, vector<8x1xf32>
        tpu.vector_store %arg15[%c0_242, %c0_243], %187 {strides = array<i32>} : memref<8x1xf32, #tpu.memory_space<vmem>>, vector<8x1xf32>,
        %c0_244 = arith.constant 0 : index
        %c0_245 = arith.constant 0 : index
        %189 = vector.load %arg10[%c0_244, %c0_245] : memref<8x1xf32, #tpu.memory_space<vmem>>, vector<8x1xf32>
        %190 = arith.mulf %169, %187 : vector<8x1xf32>
        %191 = arith.addf %189, %190 : vector<8x1xf32>
        %c0_246 = arith.constant 0 : index
        %c0_247 = arith.constant 0 : index
        %192 = vector.load %arg16[%c0_246, %c0_247] : memref<8x1xf32, #tpu.memory_space<vmem>>, vector<8x1xf32>
        tpu.vector_store %arg16[%c0_246, %c0_247], %191 {strides = array<i32>} : memref<8x1xf32, #tpu.memory_space<vmem>>, vector<8x1xf32>,
      } else {
      }
      %c0_166 = arith.constant 0 : index
      %c0_167 = arith.constant 0 : index
      %104 = vector.load %arg12[%c0_166, %c0_167] : memref<24x1408xf32, #tpu.memory_space<vmem>>, vector<24x1024xf32>
      %c0_168 = arith.constant 0 : index
      %c0_169 = arith.constant 0 : index
      %c0_170 = arith.constant 0 : index
      %105 = vector.load %arg6[%c0_168, %c0_169, %c0_170] : memref<9x8x24xf32, #tpu.memory_space<vmem>>, vector<1x8x24xf32>
      %106 = vector.shape_cast %105 : vector<1x8x24xf32> to vector<8x24xf32>
      %cst = arith.constant dense<0.000000e+00> : vector<8x1024xf32>
      %107 = tpu.matmul %106, %104, %cst {dimension_numbers = #tpu.dot_dimension_numbers<[1], [0], [0], [1], [0, 0, 1, 1], [], []>} : vector<8x24xf32>, vector<24x1024xf32>, vector<8x1024xf32> -> vector<8x1024xf32>
      %c0_171 = arith.constant 0 : index
      %c1_172 = arith.constant 1 : index
      %108 = vector.load %arg12[%c0_171, %c1_172] : memref<24x1408xf32, #tpu.memory_space<vmem>>, vector<24x1024xf32>
      %c1_173 = arith.constant 1 : index
      %c0_174 = arith.constant 0 : index
      %c0_175 = arith.constant 0 : index
      %109 = vector.load %arg6[%c1_173, %c0_174, %c0_175] : memref<9x8x24xf32, #tpu.memory_space<vmem>>, vector<1x8x24xf32>
      %110 = vector.shape_cast %109 : vector<1x8x24xf32> to vector<8x24xf32>
      %cst_176 = arith.constant dense<0.000000e+00> : vector<8x1024xf32>
      %111 = tpu.matmul %110, %108, %cst_176 {dimension_numbers = #tpu.dot_dimension_numbers<[1], [0], [0], [1], [0, 0, 1, 1], [], []>} : vector<8x24xf32>, vector<24x1024xf32>, vector<8x1024xf32> -> vector<8x1024xf32>
      %112 = arith.addf %107, %111 : vector<8x1024xf32>
      %c0_177 = arith.constant 0 : index
      %c2_178 = arith.constant 2 : index
      %113 = vector.load %arg12[%c0_177, %c2_178] : memref<24x1408xf32, #tpu.memory_space<vmem>>, vector<24x1024xf32>
      %c2_179 = arith.constant 2 : index
      %c0_180 = arith.constant 0 : index
      %c0_181 = arith.constant 0 : index
      %114 = vector.load %arg6[%c2_179, %c0_180, %c0_181] : memref<9x8x24xf32, #tpu.memory_space<vmem>>, vector<1x8x24xf32>
      %115 = vector.shape_cast %114 : vector<1x8x24xf32> to vector<8x24xf32>
      %cst_182 = arith.constant dense<0.000000e+00> : vector<8x1024xf32>
      %116 = tpu.matmul %115, %113, %cst_182 {dimension_numbers = #tpu.dot_dimension_numbers<[1], [0], [0], [1], [0, 0, 1, 1], [], []>} : vector<8x24xf32>, vector<24x1024xf32>, vector<8x1024xf32> -> vector<8x1024xf32>
      %117 = arith.addf %112, %116 : vector<8x1024xf32>
      %c0_183 = arith.constant 0 : index
      %c128_184 = arith.constant 128 : index
      %118 = vector.load %arg12[%c0_183, %c128_184] : memref<24x1408xf32, #tpu.memory_space<vmem>>, vector<24x1024xf32>
      %c3_185 = arith.constant 3 : index
      %c0_186 = arith.constant 0 : index
      %c0_187 = arith.constant 0 : index
      %119 = vector.load %arg6[%c3_185, %c0_186, %c0_187] : memref<9x8x24xf32, #tpu.memory_space<vmem>>, vector<1x8x24xf32>
      %120 = vector.shape_cast %119 : vector<1x8x24xf32> to vector<8x24xf32>
      %cst_188 = arith.constant dense<0.000000e+00> : vector<8x1024xf32>
      %121 = tpu.matmul %120, %118, %cst_188 {dimension_numbers = #tpu.dot_dimension_numbers<[1], [0], [0], [1], [0, 0, 1, 1], [], []>} : vector<8x24xf32>, vector<24x1024xf32>, vector<8x1024xf32> -> vector<8x1024xf32>
      %122 = arith.addf %117, %121 : vector<8x1024xf32>
      %c0_189 = arith.constant 0 : index
      %c129 = arith.constant 129 : index
      %123 = vector.load %arg12[%c0_189, %c129] : memref<24x1408xf32, #tpu.memory_space<vmem>>, vector<24x1024xf32>
      %c4_190 = arith.constant 4 : index
      %c0_191 = arith.constant 0 : index
      %c0_192 = arith.constant 0 : index
      %124 = vector.load %arg6[%c4_190, %c0_191, %c0_192] : memref<9x8x24xf32, #tpu.memory_space<vmem>>, vector<1x8x24xf32>
      %125 = vector.shape_cast %124 : vector<1x8x24xf32> to vector<8x24xf32>
      %cst_193 = arith.constant dense<0.000000e+00> : vector<8x1024xf32>
      %126 = tpu.matmul %125, %123, %cst_193 {dimension_numbers = #tpu.dot_dimension_numbers<[1], [0], [0], [1], [0, 0, 1, 1], [], []>} : vector<8x24xf32>, vector<24x1024xf32>, vector<8x1024xf32> -> vector<8x1024xf32>
      %127 = arith.addf %122, %126 : vector<8x1024xf32>
      %c0_194 = arith.constant 0 : index
      %c130 = arith.constant 130 : index
      %128 = vector.load %arg12[%c0_194, %c130] : memref<24x1408xf32, #tpu.memory_space<vmem>>, vector<24x1024xf32>
      %c5_195 = arith.constant 5 : index
      %c0_196 = arith.constant 0 : index
      %c0_197 = arith.constant 0 : index
      %129 = vector.load %arg6[%c5_195, %c0_196, %c0_197] : memref<9x8x24xf32, #tpu.memory_space<vmem>>, vector<1x8x24xf32>
      %130 = vector.shape_cast %129 : vector<1x8x24xf32> to vector<8x24xf32>
      %cst_198 = arith.constant dense<0.000000e+00> : vector<8x1024xf32>
      %131 = tpu.matmul %130, %128, %cst_198 {dimension_numbers = #tpu.dot_dimension_numbers<[1], [0], [0], [1], [0, 0, 1, 1], [], []>} : vector<8x24xf32>, vector<24x1024xf32>, vector<8x1024xf32> -> vector<8x1024xf32>
      %132 = arith.addf %127, %131 : vector<8x1024xf32>
      %c0_199 = arith.constant 0 : index
      %c256_200 = arith.constant 256 : index
      %133 = vector.load %arg12[%c0_199, %c256_200] : memref<24x1408xf32, #tpu.memory_space<vmem>>, vector<24x1024xf32>
      %c6_201 = arith.constant 6 : index
      %c0_202 = arith.constant 0 : index
      %c0_203 = arith.constant 0 : index
      %134 = vector.load %arg6[%c6_201, %c0_202, %c0_203] : memref<9x8x24xf32, #tpu.memory_space<vmem>>, vector<1x8x24xf32>
      %135 = vector.shape_cast %134 : vector<1x8x24xf32> to vector<8x24xf32>
      %cst_204 = arith.constant dense<0.000000e+00> : vector<8x1024xf32>
      %136 = tpu.matmul %135, %133, %cst_204 {dimension_numbers = #tpu.dot_dimension_numbers<[1], [0], [0], [1], [0, 0, 1, 1], [], []>} : vector<8x24xf32>, vector<24x1024xf32>, vector<8x1024xf32> -> vector<8x1024xf32>
      %137 = arith.addf %132, %136 : vector<8x1024xf32>
      %c0_205 = arith.constant 0 : index
      %c257 = arith.constant 257 : index
      %138 = vector.load %arg12[%c0_205, %c257] : memref<24x1408xf32, #tpu.memory_space<vmem>>, vector<24x1024xf32>
      %c7_206 = arith.constant 7 : index
      %c0_207 = arith.constant 0 : index
      %c0_208 = arith.constant 0 : index
      %139 = vector.load %arg6[%c7_206, %c0_207, %c0_208] : memref<9x8x24xf32, #tpu.memory_space<vmem>>, vector<1x8x24xf32>
      %140 = vector.shape_cast %139 : vector<1x8x24xf32> to vector<8x24xf32>
      %cst_209 = arith.constant dense<0.000000e+00> : vector<8x1024xf32>
      %141 = tpu.matmul %140, %138, %cst_209 {dimension_numbers = #tpu.dot_dimension_numbers<[1], [0], [0], [1], [0, 0, 1, 1], [], []>} : vector<8x24xf32>, vector<24x1024xf32>, vector<8x1024xf32> -> vector<8x1024xf32>
      %142 = arith.addf %137, %141 : vector<8x1024xf32>
      %c0_210 = arith.constant 0 : index
      %c258 = arith.constant 258 : index
      %143 = vector.load %arg12[%c0_210, %c258] : memref<24x1408xf32, #tpu.memory_space<vmem>>, vector<24x1024xf32>
      %c8_211 = arith.constant 8 : index
      %c0_212 = arith.constant 0 : index
      %c0_213 = arith.constant 0 : index
      %144 = vector.load %arg6[%c8_211, %c0_212, %c0_213] : memref<9x8x24xf32, #tpu.memory_space<vmem>>, vector<1x8x24xf32>
      %145 = vector.shape_cast %144 : vector<1x8x24xf32> to vector<8x24xf32>
      %cst_214 = arith.constant dense<0.000000e+00> : vector<8x1024xf32>
      %146 = tpu.matmul %145, %143, %cst_214 {dimension_numbers = #tpu.dot_dimension_numbers<[1], [0], [0], [1], [0, 0, 1, 1], [], []>} : vector<8x24xf32>, vector<24x1024xf32>, vector<8x1024xf32> -> vector<8x1024xf32>
      %147 = arith.addf %142, %146 : vector<8x1024xf32>
      %c0_215 = arith.constant 0 : index
      %c0_216 = arith.constant 0 : index
      %148 = vector.load %arg15[%c0_215, %c0_216] : memref<8x1xf32, #tpu.memory_space<vmem>>, vector<8x1xf32>
      %149 = vector.broadcast %148 : vector<8x1xf32> to vector<8x1024xf32>
      %150 = arith.mulf %147, %149 : vector<8x1024xf32>
      %c0_217 = arith.constant 0 : index
      %c0_218 = arith.constant 0 : index
      %151 = vector.load %arg16[%c0_217, %c0_218] : memref<8x1xf32, #tpu.memory_space<vmem>>, vector<8x1xf32>
      %152 = vector.broadcast %151 : vector<8x1xf32> to vector<8x1024xf32>
      %153 = arith.addf %150, %152 : vector<8x1024xf32>
      %cst_219 = arith.constant 0.000000e+00 : f32
      %154 = vector.broadcast %cst_219 : f32 to vector<8x1024xf32>
      %155 = arith.maximumf %153, %154 : vector<8x1024xf32>
      %c0_220 = arith.constant 0 : index
      %c0_221 = arith.constant 0 : index
      %c0_222 = arith.constant 0 : index
      %156 = vector.load %arg11[%c0_220, %c0_221, %c0_222] : memref<1x8x1024xf32, #tpu.memory_space<vmem>>, vector<1x8x1024xf32>
      %157 = vector.shape_cast %156 : vector<1x8x1024xf32> to vector<8x1024xf32>
      %158 = vector.shape_cast %155 : vector<8x1024xf32> to vector<1x8x1024xf32>
      tpu.vector_store %arg11[%c0_220, %c0_221, %c0_222], %158 {strides = array<i32>} : memref<1x8x1024xf32, #tpu.memory_space<vmem>>, vector<1x8x1024xf32>,
    } else {
    }
    return
  }
  func.func @transform_0(%arg0: i32, %arg1: i32, %arg2: i32) -> (i32, i32, i32, i32) {
    %c0_i32 = arith.constant 0 : i32
    %c0_i32_0 = arith.constant 0 : i32
    %c0_i32_1 = arith.constant 0 : i32
    return %arg0, %arg2, %c0_i32, %c0_i32_0 : i32, i32, i32, i32
  }
  func.func @transform_1(%arg0: i32, %arg1: i32, %arg2: i32) -> (i32, i32, i32, i32) {
    %c1_i32 = arith.constant 1 : i32
    %0 = arith.addi %arg2, %c1_i32 : i32
    %c8_i32 = arith.constant 8 : i32
    %1 = arith.muli %0, %c8_i32 : i32
    %c0_i32 = arith.constant 0 : i32
    %c0_i32_0 = arith.constant 0 : i32
    %c0_i32_1 = arith.constant 0 : i32
    return %arg0, %1, %c0_i32, %c0_i32_0 : i32, i32, i32, i32
  }
  func.func @transform_2(%arg0: i32, %arg1: i32, %arg2: i32) -> (i32, i32, i32, i32) {
    %c1_i32 = arith.constant 1 : i32
    %0 = arith.addi %arg2, %c1_i32 : i32
    %c8_i32 = arith.constant 8 : i32
    %1 = arith.muli %0, %c8_i32 : i32
    %c1_i32_0 = arith.constant 1 : i32
    %2 = arith.addi %1, %c1_i32_0 : i32
    %c0_i32 = arith.constant 0 : i32
    %c0_i32_1 = arith.constant 0 : i32
    %c0_i32_2 = arith.constant 0 : i32
    return %arg0, %2, %c0_i32, %c0_i32_1 : i32, i32, i32, i32
  }
  func.func @transform_3(%arg0: i32, %arg1: i32, %arg2: i32) -> (i32, i32, i32) {
    %c0_i32 = arith.constant 0 : i32
    %c0_i32_0 = arith.constant 0 : i32
    %c0_i32_1 = arith.constant 0 : i32
    %c0_i32_2 = arith.constant 0 : i32
    return %c0_i32, %c0_i32_0, %c0_i32_1 : i32, i32, i32
  }
  func.func @transform_4(%arg0: i32, %arg1: i32, %arg2: i32) -> (i32, i32) {
    %c0_i32 = arith.constant 0 : i32
    %c0_i32_0 = arith.constant 0 : i32
    %c0_i32_1 = arith.constant 0 : i32
    return %c0_i32, %c0_i32_0 : i32, i32
  }
  func.func @transform_5(%arg0: i32, %arg1: i32, %arg2: i32) -> (i32, i32) {
    %c0_i32 = arith.constant 0 : i32
    %c0_i32_0 = arith.constant 0 : i32
    %c0_i32_1 = arith.constant 0 : i32
    return %c0_i32, %c0_i32_0 : i32, i32
  }
  func.func @transform_6(%arg0: i32, %arg1: i32, %arg2: i32) -> (i32, i32) {
    %c0_i32 = arith.constant 0 : i32
    %c0_i32_0 = arith.constant 0 : i32
    %c0_i32_1 = arith.constant 0 : i32
    return %c0_i32, %c0_i32_0 : i32, i32
  }
  func.func @transform_7(%arg0: i32, %arg1: i32, %arg2: i32) -> (i32, i32) {
    %c0_i32 = arith.constant 0 : i32
    %c0_i32_0 = arith.constant 0 : i32
    %c0_i32_1 = arith.constant 0 : i32
    return %c0_i32, %c0_i32_0 : i32, i32
  }
  func.func @transform_8(%arg0: i32, %arg1: i32, %arg2: i32) -> (i32, i32, i32) {
    %0 = arith.muli %arg1, %arg2 : i32
    %c0_i32 = arith.constant 0 : i32
    %c0_i32_0 = arith.constant 0 : i32
    return %arg0, %c0_i32, %0 : i32, i32, i32
  }
}

</mosaic_0001>

<bundles_post_ra>
// kernel: tpu_custom_call.1
= control target key start
LH: loop header
LB: loop body
LE: loop exit
PB: predicated region body
PF: predicated region fallthrough
CT: control target
= control target key end

     0   :  { %s11576_s0 = inlined_call_operand.hbm [shape: f32[2,18,8,256], index: 0, kind: input, shape index: {}]   ;;  %s11577_s1 = inlined_call_operand.hbm [shape: f32[2,18,8,256], index: 1, kind: input, shape index: {}]   ;;  %s11578_s2 = inlined_call_operand.hbm [shape: f32[2,18,8,256], index: 2, kind: input, shape index: {}]   ;;  %s11579_s3 = inlined_call_operand.hbm [shape: f32[9,8,24], index: 3, kind: input, shape index: {}]   ;;  %s11580_s4 = inlined_call_operand.vmem [shape: f32[8,8], index: 4, kind: input, shape index: {}]   ;;  %s11581_s5 = inlined_call_operand.vmem [shape: f32[8,1], index: 5, kind: input, shape index: {}]   ;;  %s11582_s6 = inlined_call_operand.vmem [shape: f32[8,1], index: 6, kind: input, shape index: {}]   ;;  %s11583_s7 = inlined_call_operand.vmem [shape: f32[8,1], index: 7, kind: input, shape index: {}]   ;;  %s11584_s8 = inlined_call_operand.hbm [shape: f32[2,8,2048], index: 8, kind: output, shape index: {}]  }
   0x1   :  { %11611 = sst [smem:[#allocation52_spill]] %s11576_s0 }
   0x2   :  { %11612 = sst [smem:[#allocation53_spill]] %s11577_s1 }
   0x3   :  { %11613 = sst [smem:[#allocation54_spill]] %s11578_s2 }
   0x4   :  { %11614 = sst [smem:[#allocation55_spill]] %s11579_s3 }
   0x5   :  { %11615 = sst [smem:[#allocation56_spill]] %s11580_s4 }
   0x6   :  { %11616 = sst [smem:[#allocation57_spill]] %s11581_s5 }
   0x7   :  { %11617 = sst [smem:[#allocation58_spill]] %s11582_s6 }
   0x8   :  { %11618 = sst [smem:[#allocation59_spill]] %s11583_s7 }
   0x9   :  { %11619 = sst [smem:[#allocation60_spill]] %s11584_s8 }
   0xa   :  { %13 = vsyncpa [#allocation8], 0 }
   0xb   :  { %15 = vsyncpa [#allocation8 + $0x1], 0 }
   0xc   :  { %16 = vsyncpa [#allocation11], 0 }
   0xd   :  { %18 = vsyncpa [#allocation11 + $0x1], 0 }
   0xe   :  { %19 = vsyncpa [#allocation14], 0 }
   0xf   :  { %20 = vsyncpa [#allocation9], 0 }
  0x10   :  { %22 = vsyncpa [#allocation9 + $0x1], 0  ;;  %s9127_s27 = smov 0   ;;  %s9129_s28 = smov 0  }
  0x11   :  { %s9131_s29 = smov 0   ;;  %s9133_s30 = smov 0  }
  0x12   :  { %s9135_s9 = smov 0   ;;  %s9137_s10 = smov 0  }
  0x13   :  { %s9139_s11 = smov 0   ;;  %s9141_s12 = smov 0  }
  0x14   :  { %s9143_s13 = smov 0   ;;  %s9145_s14 = smov 0  }
  0x15   :  { %s9147_s15 = smov 0   ;;  %s9149_s16 = smov 0  }
  0x16   :  { %s9151_s17 = smov 0   ;;  %s9153_s18 = smov 0  }
  0x17   :  { %s9155_s19 = smov 0   ;;  %s9157_s20 = smov 0  }
  0x18   :  { %s9159_s21 = smov 0   ;;  %s9161_s22 = smov 0  }
  0x19   :  { %s9163_s23 = smov 0  }
  0x1a LB: > { %11620 = sst [smem:[#allocation21_spill]] %s8986_s27  ;;  %s9221_s24 = sadd.s32 4294967295, %s9058_s23   ;;  %s9058_s23 = sphi %s9163_s23, %s28_s23   ;;  %s9054_s22 = sphi %s9161_s22, %s11757_s22   ;;  %s9050_s21 = sphi %s9159_s21, %s11755_s21   ;;  %s9046_s20 = sphi %s9157_s20, %s11753_s20   ;;  %s9042_s19 = sphi %s9155_s19, %s11752_s19   ;;  %s9038_s18 = sphi %s9153_s18, %s11751_s18   ;;  %s9034_s17 = sphi %s9151_s17, %s11750_s17   ;;  %s9030_s16 = sphi %s9149_s16, %s11749_s16   ;;  %s9026_s15 = sphi %s9147_s15, %s11748_s15   ;;  %s9022_s14 = sphi %s9145_s14, %s11747_s14   ;;  %s9018_s13 = sphi %s9143_s13, %s11762_s13   ;;  %s9014_s12 = sphi %s9141_s12, %s11761_s12   ;;  %s9010_s11 = sphi %s9139_s11, %s11745_s11   ;;  %s9006_s10 = sphi %s9137_s10, %s11760_s10   ;;  %s9002_s9 = sphi %s9135_s9, %s11759_s9   ;;  %s8998_s30 = sphi %s9133_s30, %s11758_s30   ;;  %s8994_s29 = sphi %s9131_s29, %s11743_s29   ;;  %s8990_s28 = sphi %s9129_s28, %s11756_s28   ;;  %s8986_s27 = sphi %s9127_s27, %s11754_s27  }
  0x1b   : > { %11621 = sst [smem:[#allocation22_spill]] %s8994_s29  ;;  %s40_s26 = sadd.s32 1, %s9046_s20 }
  0x1c   : > { %11622 = sst [smem:[#allocation23_spill]] %s9014_s12  ;;  %s43_s8 = sadd.s32 1, %s9050_s21 }
  0x1d   : > { %11623 = sst [smem:[#allocation24_spill]] %s9026_s15  ;;  %p41_p0 = scmp.ge.s32.totalorder %s40_s26, 2 }
  0x1e   : > { %11624 = sst [smem:[#allocation25_spill]] %s9030_s16  ;;  %p63_p1 = scmp.ne.s32.totalorder %s9030_s16, %s9026_s15 }
  0x1f   : > { %11625 = sst [smem:[#allocation26_spill]] %s9034_s17  ;;  %s11764_s26 = smov (%p41_p0, %s40_s26), 0 }
  0x20   : > { %11626 = sst [smem:[#allocation27_spill]] %s9038_s18  ;;  %s11766_s8 = smov (!%p41_p0, %s43_s8), %s9050_s21 }
  0x21   : > { %11627 = sst [smem:[#allocation28_spill]] %s9042_s19  ;;  %s47_s19 = sadd.s32 1, %s9054_s22 }
  0x22   : > { %11628 = sst [smem:[#allocation29_spill]] %s9046_s20  ;;  %s52_s6 = ssub.s32 %s9046_s20, %s11764_s26 }
  0x23   : > { %11629 = sst [smem:[#allocation30_spill]] %s9050_s21  ;;  %p64_p2 = scmp.eq.s32.totalorder %s9058_s23, 0 }
  0x24   : > { %11630 = sst [smem:[#allocation31_spill]] %s9054_s22  ;;  %p45_p3 = scmp.ge.s32.totalorder %s11766_s8, 2 }
  0x25   : > { %11631 = sst [smem:[#allocation32_spill]] %s9058_s23  ;;  %p69_p4 = scmp.ne.s32.totalorder %s9026_s15, %s9022_s14 }
  0x26   : > { %11632 = sst [smem:[#allocation33_spill]] %s11764_s26  ;;  %p9239_p5 = por %p64_p2, %p63_p1 }
  0x27   : > { %p11591_p6 = scmp.eq.s32.totalorder %s9221_s24, 0  ;;  %s11768_s8 = smov (%p45_p3, %s11766_s8), 0 }
  0x28   : > { %11634 = sst [smem:[#allocation34_spill]] %s11768_s8  ;;  %s11770_s19 = smov (!%p45_p3, %s47_s19), %s9054_s22 }
  0x29   : > { %p9249_p7 = por %p11591_p6, %p69_p4  ;;  %s8474_s4 = sshll.u32 %s9046_s20, 3 }
  0x2a   : > { %p49_p8 = scmp.ge.s32.totalorder %s11770_s19, 2  ;;  %s8475_s14 = sadd.s32 8, %s8474_s4 }
  0x2b   : > { %s11635_s7 = scalar_select %p9249_p7, 1, 0 }
  0x2c   : > { %s8476_s5 = sshll.u32 %s11764_s26, 3  ;;  %s88_s17 = sadd.s32 1, %s9018_s13 }
  0x2d   : > { %11636 = sst [smem:[#allocation35_spill]] %s11635_s7  ;;  %s11772_s19 = smov (%p49_p8, %s11770_s19), 0 }
  0x2e   : > { %11637 = sst [smem:[#allocation36_spill]] %s11772_s19  ;;  %s8477_s18 = sadd.s32 8, %s8476_s5 }
  0x2f   : > { %p95_p9 = scmp.ne.s32.totalorder %s9018_s13, %s9014_s12  ;;  %s9262_s7 = ssub.s32 %s9054_s22, %s11772_s19 }
  0x30   : > { %s84_s15 = ssub.s32 %s8475_s14, %s8477_s18  ;;  %s53_s4 = sor.u32 %s52_s6, %s9262_s7 }
  0x31   : > { %s85_s2 = sor.u32 %s84_s15, %s9262_s7  ;;  %p54_p10 = scmp.eq.s32.totalorder %s53_s4, 0 }
  0x32   : > { %p86_p11 = scmp.eq.s32.totalorder %s85_s2, 0  ;;  %p9268_p12 = por %p95_p9, %p64_p2 }
  0x33   : > { %p101_p13 = scmp.ne.s32.totalorder %s9014_s12, %s9010_s11  ;;  %s11639_s19 = sadd.s32 1, %s9030_s16 }
  0x34   : > { %s11638_s5 = scalar_select %p9268_p12, 1, 0 }
  0x35   : > { %s9277_s1 = scalar_select %p54_p10, %s9030_s16, %s11639_s19  }
  0x36   : > { %s9280_s6 = scalar_select %p86_p11, %s9018_s13, %s88_s17  }
  0x37   : > { %11640 = sst [smem:[#allocation37_spill]] %s9277_s1  ;;  %p9284_p0 = por %p101_p13, %p11591_p6 }
  0x38   : > { %11641 = sst [smem:[#allocation38_spill]] %s9280_s6  ;;  %s113_s15 = sadd.s32 1, %s8475_s14 }
  0x39   : > { %s11642_s2 = scalar_select %p9284_p0, 1, 0 }
  0x3a   : > { %s116_s4 = sadd.s32 1, %s8477_s18  ;;  %s122_s11 = sadd.s32 1, %s9006_s10 }
  0x3b   : > { %s118_s12 = ssub.s32 %s113_s15, %s116_s4  ;;  %p129_p1 = scmp.ne.s32.totalorder %s9006_s10, %s9002_s9 }
  0x3c   : > { %s119_s19 = sor.u32 %s118_s12, %s9262_s7  ;;  %p135_p3 = scmp.ne.s32.totalorder %s9002_s9, %s8998_s30 }
  0x3d   : > { %p120_p4 = scmp.eq.s32.totalorder %s119_s19, 0  ;;  %p9296_p8 = por %p129_p1, %p64_p2 }
  0x3e   : > { %p9302_p9 = por %p135_p3, %p11591_p6  ;;  %s250_s14 = smul.u32 %s9046_s20, %s9050_s21 }
  0x3f   : > { %s11643_s17 = scalar_select %p9296_p8, 1, 0 }
  0x40   : > { %s11644_s18 = scalar_select %p9302_p9, 1, 0 }
  0x41   : > { %s9309_s15 = scalar_select %p120_p4, %s9006_s10, %s122_s11  }
  0x42   : > { %s251_s12 = smul.u32 %s11768_s8, %s11764_s26  ;;  %s257_s4 = sadd.s32 1, %s8994_s29 }
  0x43   : > { %11645 = sst [smem:[#allocation39_spill]] %s9309_s15  ;;  %p267_p10 = scmp.ne.s32.totalorder %s8994_s29, %s8990_s28 }
  0x44   : > { %p268_p11 = scmp.eq.s32.totalorder %s9221_s24, 7  ;;  %s253_s30 = ssub.s32 %s250_s14, %s251_s12 }
  0x45   : > { %p273_p13 = scmp.ne.s32.totalorder %s8990_s28, %s8986_s27  ;;  %s254_s19 = sor.u32 %s253_s30, %s9262_s7 }
  0x46   : > { %p9320_p2 = por %p268_p11, %p267_p10  ;;  %p255_p1 = scmp.eq.s32.totalorder %s254_s19, 0 }
  0x47   : > { %s11648_s6 = sadd.s32 4294967294, %s9058_s23   ;;  %p8330_p6 = scmp.ge.s32.totalorder %s9058_s23, 1 }
  0x48   : > { %s11646_s1 = scalar_select %p9320_p2, 1, 0 }
  0x49   : > { %p274_p3 = scmp.eq.s32.totalorder %s11648_s6, 7  ;;  %p281_p9 = scmp.lt.s32.totalorder %s9058_s23, 9 }
  0x4a   : > { %11647 = sst [smem:[#allocation40_spill]] %s11646_s1  ;;  %s9060_s7 = smov [#allocation13]  }
  0x4b   : > { %s9329_s21 = scalar_select %p255_p1, %s8994_s29, %s257_s4  }
  0x4c   : > { %p9331_p4 = por %p274_p3, %p273_p13  ;;  %p9335_p0 = pnand %p8330_p6, %p281_p9 }
  0x4d   : > { %11649 = sst [smem:[#allocation41_spill]] %s9329_s21  ;;  %s293_s14 = sshll.u32 %s9060_s7, 4  ;;  %s294_s14 = int_to_ptr.vmem [resolvable:$true] %s293_s14 }
  0x4e   : > { %s11650_s11 = scalar_select %p9331_p4, 1, 0 }
  0x4f   : > { %p8527_p10 = pneg %p9335_p0  ;;  %p11653_p11 = scmp.eq.s32.totalorder %s9221_s24, 0 }
  0x50   : > { %11651 = sst [smem:[#allocation42_spill]] %s11650_s11  ;;  %s8765_s6 = scalar_lea.vmem %s294_s14, 1152 }
  0x51   : > { %p8528_p2 = pnand %p8527_p10, %p11653_p11  ;;  %p8766_p1 = scmp.ne.s32.totalorder %s294_s14, %s8765_s6 }
  0x52   : > { %p8773_p3 = scmp.lt.s32.totalorder %s294_s14, %s294_s14  ;;  %p8774_p12 = scmp.lt.s32.totalorder %s8765_s6, %s8765_s6 }
  0x53   : > { %p8756_p7 = pneg %p8528_p2 }
  0x54   : > { %p8775_p4 = por %p8774_p12, %p8773_p3 }
  0x55   : > { %p8768_p8 = pnand %p8766_p1, %p8756_p7 }
  0x57   : > { %p8769_p13 = pneg %p8768_p8 }
  0x59   : > { %p8776_p6 = pnand %p8775_p4, %p8769_p13 }
  0x5b   : > { %8779 = shalt.err (!%p8776_p6)
}
  0x5c   : > { %s9061_s12 = smov 128   ;;  %s9062_s4 = smov 8  }
  0x5d   : > { %s11654_s3 = sld [smem:[#allocation55_spill]]  ;;  %p8332_p9 = scmp.ge.s32.totalorder %s9058_s23, 8 }
  0x5f   : > { %315 = sbr.rel (%p8332_p9) target bundleno = 164 (0xa4), region = 36 }
  0x63   : > { %8530 = dma.hbm_to_vmem [thread:$0]  (!%p8528_p2), %s11654_s3, 1152, %s294_s14, [#allocation14], %s9061_s12, %s9061_s12, %s9062_s4  }
  0x64   : > { %318 = sbr.rel (!%p9239_p5) target bundleno = 129 (0x81), region = 40  ;;  %s319_s7 = sand.u32 (%p9239_p5), 1, %s9030_s16  }
  0x65   : > { %s8333_s6 = sshll.u32 (%p9239_p5), %s319_s7, 7  ;;  %s9350_s26 = scalar_lea.sflag (%p9239_p5), [#allocation8], %s319_s7 }
  0x66   : > { %s323_s15 = scalar_lea.vmem (%p9239_p5), [#allocation7], %s8333_s6  ;;  %s8483_s21 = sshll.u32 (%p9239_p5), %s9046_s20, 4 }
  0x67   : > { %s8499_s29 = smul.u32 (%p9239_p5), 36, %s9054_s22  ;;  %s340_s11 = sshll.u32 (%p9239_p5), %s323_s15, 4  ;;  %s341_s11 = int_to_ptr.vmem [resolvable:$true] %s340_s11 }
  0x68   : > { %s11655_s0 = sld [smem:[#allocation52_spill]] (%p9239_p5) }
  0x69   : > { %s336_s30 = sadd.s32 %s8499_s29, %s8483_s21 }
  0x6a   : > { %s8339_s14 = sshll.u32 %s336_s30, 7 }
  0x6e   : > { %s338_s19 = scalar_lea.hbm %s11655_s0, %s8339_s14  ;;  %s8784_s16 = scalar_lea.hbm %s11655_s0, 9216 }
  0x6f   : > { %s8780_s25 = scalar_lea.hbm %s338_s19, 2048 }
  0x70   : > { %p8781_p5 = scmp.ne.s32.totalorder %s338_s19, %s8780_s25  ;;  %p8786_p7 = scmp.lt.s32.totalorder %s8784_s16, %s8780_s25 }
  0x72   : > { %p8788_p12 = pnand %p8786_p7, %p8781_p5 }
  0x74   : > { %8791 = shalt.err (!%p8788_p12)
}
  0x75   : > { %s8792_s7 = scalar_lea.vmem %s341_s11, 2048  ;;  %s9063_s6 = smov [#allocation7]  }
  0x76   : > { %p8793_p8 = scmp.ne.s32.totalorder %s341_s11, %s8792_s7  ;;  %s8796_s15 = sshll.u32 %s9063_s6, 4  ;;  %s8797_s15 = int_to_ptr.vmem [resolvable:$false] %s8796_s15 }
  0x77   : > { %s8798_s29 = scalar_lea.vmem %s8797_s15, 4096  ;;  %p8799_p2 = scmp.lt.s32.totalorder %s341_s11, %s8797_s15 }
  0x78   : > { %p8800_p4 = scmp.lt.s32.totalorder %s8798_s29, %s8792_s7 }
  0x7a   : > { %p8801_p10 = por %p8800_p4, %p8799_p2 }
  0x7c   : > { %p8802_p11 = pnand %p8801_p10, %p8793_p8 }
  0x7e   : > { %8805 = shalt.err (!%p8802_p11)
}
  0x7f   : > { %s9064_s21 = smov 256   ;;  %s9065_s30 = smov 16  }
  0x80   : > { %346 = dma.hbm_to_vmem [thread:$0]  %s338_s19, 2048, %s341_s11, %s9350_s26, %s9064_s21, %s9064_s21, %s9065_s30  }
  0x81 PF: > { %s350_s3 = sand.u32 1, %s9058_s23   ;;  %s352_s27 = sand.u32 1, %s9018_s13  }
  0x82   : > { %s8342_s16 = sshll.u32 %s352_s27, 4  ;;  %s8343_s14 = sshll.u32 %s9046_s20, 4 }
  0x83   : > { %s8209_s12 = smul.u32 36, %s9054_s22  ;;  %s354_s4 = scalar_lea.vmem [#allocation10], %s8342_s16 }
  0x84   : > { %s366_s25 = sshll.u32 %s354_s4, 4  ;;  %s375_s7 = sand.u32 1, %s9006_s10   ;;  %s367_s25 = int_to_ptr.vmem [resolvable:$true] %s366_s25 }
  0x85   : > { %s8210_s6 = sadd.s32 %s8343_s14, %s8209_s12  ;;  %s8345_s15 = sshll.u32 %s375_s7, 4 }
  0x86   : > { %s8344_s29 = sshll.u32 %s8210_s6, 7  ;;  %s11656_s19 = sld [smem:[#allocation53_spill]] }
  0x87   : > { %s11657_s1 = sld [smem:[#allocation54_spill]]  ;;  %s9375_s22 = scalar_lea.sflag [#allocation11], %s350_s3 }
  0x88   : > { %s8818_s16 = scalar_lea.vmem %s367_s25, 256  ;;  %p11658_p13 = scmp.ne.s32.totalorder %s11638_s5, 0 }
  0x89   : > { %p8819_p1 = scmp.ne.s32.totalorder %s367_s25, %s8818_s16  ;;  %s9066_s14 = smov [#allocation10]  }
  0x8a   : > { %s8822_s12 = sshll.u32 %s9066_s14, 4  ;;  %s8823_s12 = int_to_ptr.vmem [resolvable:$false] %s8822_s12 }
  0x8b   : > { %p8820_p3 = pnand %p8819_p1, %p11658_p13  ;;  %s8824_s4 = scalar_lea.vmem %s8823_s12, 512 }
  0x8c   : > { %s8212_s21 = scalar_lea.hbm %s11656_s19, %s8344_s29  ;;  %p8825_p9 = scmp.lt.s32.totalorder %s367_s25, %s8823_s12 }
  0x8d   : > { %s9372_s23 = scalar_lea.hbm %s11657_s1, %s8344_s29  ;;  %s8213_s27 = scalar_lea.hbm %s8212_s21, 2048 }
  0x8e   : > { %s8223_s20 = scalar_lea.hbm %s9372_s23, 2304  ;;  %p8821_p6 = pneg %p8820_p3 }
  0x8f   : > { %p8826_p5 = scmp.lt.s32.totalorder %s8824_s4, %s8818_s16 }
  0x91   : > { %p8827_p7 = por %p8826_p5, %p8825_p9 }
  0x93   : > { %p8828_p12 = pnand %p8827_p7, %p8821_p6 }
  0x95   : > { %8831 = shalt.err (!%p8828_p12)
}
  0x96   : > { %8518 = dma.hbm_to_vmem [thread:$0]  (%p11658_p13), %s8213_s27, 256, %s367_s25, %s9375_s22  }
  0x97   : > { %s377_s0 = scalar_lea.vmem [#allocation12], %s8345_s15  ;;  %p11659_p2 = scmp.ne.s32.totalorder %s11643_s17, 0 }
  0x98   : > { %s390_s1 = sshll.u32 %s377_s0, 4  ;;  %s9067_s7 = smov [#allocation12]   ;;  %s391_s1 = int_to_ptr.vmem [resolvable:$true] %s390_s1 }
  0x99   : > { %s8845_s3 = scalar_lea.vmem %s391_s1, 256  ;;  %s8849_s6 = sshll.u32 %s9067_s7, 4  ;;  %s8850_s6 = int_to_ptr.vmem [resolvable:$false] %s8849_s6 }
  0x9a   : > { %p8846_p8 = scmp.ne.s32.totalorder %s391_s1, %s8845_s3  ;;  %s8851_s29 = scalar_lea.vmem %s8850_s6, 512 }
  0x9b   : > { %p8852_p11 = scmp.lt.s32.totalorder %s391_s1, %s8850_s6  ;;  %p8853_p1 = scmp.lt.s32.totalorder %s8851_s29, %s8845_s3 }
  0x9c   : > { %p8847_p4 = pnand %p8846_p8, %p11659_p2 }
  0x9d   : > { %p8854_p3 = por %p8853_p1, %p8852_p11 }
  0x9e   : > { %p8848_p10 = pneg %p8847_p4 }
  0xa0   : > { %p8855_p6 = pnand %p8854_p3, %p8848_p10 }
  0xa2   : > { %8858 = shalt.err (!%p8855_p6)
}
  0xa3   : > { %8519 = dma.hbm_to_vmem [thread:$0]  (%p11659_p2), %s8223_s20, 256, %s391_s1, %s9375_s22  }
  0xa4 PF: > { %399 = sbr.rel (%p9335_p0) target bundleno = 2341 (0x925), region = 52  ;;  %s11660_s5 = sld [smem:[#allocation24_spill]] (!%p9335_p0) }
  0xa5   : > { %s11661_s25 = sld [smem:[#allocation35_spill]] (!%p9335_p0) }
  0xaa   : > { %s401_s15 = sand.u32 1, %s11660_s5  }
  0xab   : > { %s8350_s26 = sshll.u32 %s401_s15, 7  ;;  %s402_s11 = scalar_lea.sflag [#allocation8], %s401_s15 }
  0xac   : > { %s9392_s19 = scalar_lea.vmem [#allocation7], %s8350_s26  ;;  %p11662_p13 = scmp.ne.s32.totalorder %s11661_s25, 0 }
  0xae   : > { %8963 = dma.done.wait (%p11662_p13), %s402_s11, 2048  }
  0xaf   : > { %8965 = vsyncadd (%p11662_p13), %s402_s11, 4294965248  ;;  %s11663_s17 = sld [smem:[#allocation23_spill]]  ;;  %s410_s20 = sand.u32 1, %s9221_s24  }
  0xb0   : > { %s411_s8 = scalar_lea.sflag [#allocation11], %s410_s20  ;;  %p11664_p0 = scmp.ne.s32.totalorder %s11642_s2, 0 }
  0xb5   : > { %s412_s22 = sand.u32 1, %s11663_s17  }
  0xb6   : > { %s9400_s23 = sshll.u32 %s412_s22, 4 }
  0xb7   : > { %s414_s21 = scalar_lea.vmem [#allocation10], %s9400_s23 }
  0xb8   : > { %8967 = dma.done.wait (%p11664_p0), %s411_s8, 256  }
  0xb9   : > { %8969 = vsyncadd (%p11664_p0), %s411_s8, 4294967040  ;;  %s421_s30 = sand.u32 1, %s9002_s9   ;;  %p11665_p9 = scmp.ne.s32.totalorder %s11644_s18, 0 }
  0xba   : > { %s9408_s27 = sshll.u32 %s421_s30, 4 }
  0xbb   : > { %s423_s16 = scalar_lea.vmem [#allocation12], %s9408_s27 }
  0xbc   : > { %8971 = dma.done.wait (%p11665_p9), %s411_s8, 256  }
  0xbd   : > { %8973 = vsyncadd (%p11665_p9), %s411_s8, 4294967040  ;;  %p11666_p5 = scmp.eq.s32.totalorder %s9221_s24, 0 }
  0xbf   : > { %8975 = dma.done.wait (%p11666_p5), [#allocation14], 1152   ;;  %p11667_p7 = pmov %p11666_p5 }
  0xc0   : > { %s11668_s2 = sld [smem:[#allocation27_spill]]  ;;  %s467_s12 = sand.u32 1, %s8990_s28  }
  0xc1   : > { %8977 = vsyncadd (%p11667_p7), [#allocation14], 4294966144  ;;  %s11669_s14 = sld [smem:[#allocation26_spill]]  ;;  %s8354_s4 = sshll.u32 %s467_s12, 6 }
  0xc2   : > { %s9424_s0 = scalar_lea.vmem [#allocation15], %s8354_s4 }
  0xc6   : > { %p483_p12 = scmp.eq.s32.totalorder %s11668_s2, 0 }
  0xc7   : > { %p484_p8 = scmp.eq.s32.totalorder %s11669_s14, 0 }
  0xc9   : > { %p485_p2 = pnand %p484_p8, %p483_p12 }
  0xcb   : > { %488 = sbr.rel (%p485_p2) target bundleno = 211 (0xd3), region = 72 }
  0xd0   : > { %v9068_v0 = vmov 0.0  }
  0xd1   : > { %489 = vst [vmem:[#allocation2 + $0x88] sm:$0xff] %v9068_v0  ;;  %490 = vst [vmem:[#allocation2 + $0x50] sm:$0xff] %v9068_v0 }
  0xd2   : > { %491 = vst [vmem:[#allocation2 + $0x40] sm:$0xff] %v9068_v0 }
  0xd3 PF: > { %v506_v1 = vld [vmem:[%s9392_s19] sm:$0xff]  ;;  %s9069_s24 = smov 108   ;;  %s9070_s18 = smov 118   ;;  %v8356_v2 = vld [vmem:[%s9392_s19 + $0x10] sm:$0xff]  ;;  %v507_v3 = vld [vmem:[%s9392_s19 + $0x8] sm:$0xff]  ;;  %vm514_vm0 = vcmask 883712  }
  0xd4   : > { %510 = vrot.lane.b32.xlu1 %v506_v1, %s9069_s24  ;;  %498 = vrot.lane.b32.xlu0 %v506_v1, %s9070_s18  ;;  %493 = vst [vmem:[#allocation2] sm:$0xff] %v506_v1  ;;  %v8361_v4 = vld [vmem:[%s9392_s19 + $0x20] sm:$0xff]  ;;  %v8366_v5 = vld [vmem:[%s9392_s19 + $0x30] sm:$0xff]  ;;  %520 = vst [vmem:[#allocation2 + $0x8] sm:$0xff] %v8356_v2  ;;  %vm502_vm1 = vcmask 965632   ;;  %s11670_s1 = sld [smem:[#allocation27_spill]] }
  0xd5   : > { %v8371_v6 = vld [vmem:[%s9392_s19 + $0x40] sm:$0xff]  ;;  %545 = vst [vmem:[#allocation2 + $0xd0] sm:$0xff] %v8361_v4  ;;  %570 = vst [vmem:[#allocation2 + $0x38] sm:$0xff] %v8366_v5  ;;  %v8376_v7 = vld [vmem:[%s9392_s19 + $0x50] sm:$0xff] }
  0xd6   : > { %v8381_v8 = vld [vmem:[%s9392_s19 + $0x60] sm:$0xff]  ;;  %595 = vst [vmem:[#allocation2 + $0xe0] sm:$0xff] %v8371_v6  ;;  %v8386_v9 = vld [vmem:[%s9392_s19 + $0x70] sm:$0xff]  ;;  %620 = vst [vmem:[#allocation2 + $0x18] sm:$0xff] %v8376_v7 }
  0xd7   : > { %645 = vst [vmem:[#allocation2 + $0x58] sm:$0xff] %v8381_v8  ;;  %v8357_v10 = vld [vmem:[%s9392_s19 + $0x18] sm:$0xff]  ;;  %v695_v11 = vld [vmem:[%s414_s21] sm:$0xff]  ;;  %670 = vst [vmem:[#allocation2 + $0x90] sm:$0xff] %v8386_v9 }
  0xd8   : > { %512 = vrot.lane.b32.xlu1 %v507_v3, %s9069_s24  ;;  %500 = vrot.lane.b32.xlu0 %v507_v3, %s9070_s18  ;;  %v719_v12 = vld [vmem:[%s423_s16] sm:$0xff]  ;;  %694 = vst [vmem:[#allocation2 + $0x98] sm:$0xff] %v695_v11  ;;  %v8362_v13 = vld [vmem:[%s9392_s19 + $0x28] sm:$0xff] }
  0xd9   : > { %718 = vst [vmem:[#allocation2 + $0xc0] sm:$0xff] %v719_v12  ;;  %v8367_v14 = vld [vmem:[%s9392_s19 + $0x38] sm:$0xff]  ;;  %v8372_v15 = vld [vmem:[%s9392_s19 + $0x48] sm:$0xff] }
  0xda   : > { %v8377_v16 = vld [vmem:[%s9392_s19 + $0x58] sm:$0xff]  ;;  %v8382_v17 = vld [vmem:[%s9392_s19 + $0x68] sm:$0xff]  ;;  %p8390_p4 = scmp.ne.s32.totalorder %s11670_s1, 0 }
  0xdb   : > { %v8387_v18 = vld [vmem:[%s9392_s19 + $0x78] sm:$0xff] }
  0xdc   : > { %527 = vrot.lane.b32.xlu1 %v8357_v10, %s9070_s18  ;;  %525 = vrot.lane.b32.xlu0 %v8356_v2, %s9070_s18  ;;  %v696_v19 = vld [vmem:[%s414_s21 + $0x8] sm:$0xff] }
  0xdd   : > { %v720_v20 = vld [vmem:[%s423_s16 + $0x8] sm:$0xff] }
  0xe0   : > { %538 = vrot.lane.b32.xlu1 %v8357_v10, %s9069_s24  ;;  %536 = vrot.lane.b32.xlu0 %v8356_v2, %s9069_s24 }
  0xe4   : > { %552 = vrot.lane.b32.xlu1 %v8362_v13, %s9070_s18  ;;  %550 = vrot.lane.b32.xlu0 %v8361_v4, %s9070_s18 }
  0xe8   : > { %563 = vrot.lane.b32.xlu1 %v8362_v13, %s9069_s24  ;;  %561 = vrot.lane.b32.xlu0 %v8361_v4, %s9069_s24 }
  0xec   : > { %577 = vrot.lane.b32.xlu1 %v8367_v14, %s9070_s18  ;;  %575 = vrot.lane.b32.xlu0 %v8366_v5, %s9070_s18 }
  0xf0   : > { %588 = vrot.lane.b32.xlu1 %v8367_v14, %s9069_s24  ;;  %586 = vrot.lane.b32.xlu0 %v8366_v5, %s9069_s24 }
  0xf4   : > { %602 = vrot.lane.b32.xlu1 %v8372_v15, %s9070_s18  ;;  %600 = vrot.lane.b32.xlu0 %v8371_v6, %s9070_s18 }
  0xf8   : > { %613 = vrot.lane.b32.xlu1 %v8372_v15, %s9069_s24  ;;  %611 = vrot.lane.b32.xlu0 %v8371_v6, %s9069_s24 }
  0xfc   : > { %627 = vrot.lane.b32.xlu1 %v8377_v16, %s9070_s18  ;;  %625 = vrot.lane.b32.xlu0 %v8376_v7, %s9070_s18 }
 0x100   : > { %638 = vrot.lane.b32.xlu1 %v8377_v16, %s9069_s24  ;;  %636 = vrot.lane.b32.xlu0 %v8376_v7, %s9069_s24 }
 0x104   : > { %652 = vrot.lane.b32.xlu1 %v8382_v17, %s9070_s18  ;;  %650 = vrot.lane.b32.xlu0 %v8381_v8, %s9070_s18 }
 0x108   : > { %663 = vrot.lane.b32.xlu1 %v8382_v17, %s9069_s24  ;;  %661 = vrot.lane.b32.xlu0 %v8381_v8, %s9069_s24 }
 0x10c   : > { %677 = vrot.lane.b32.xlu1 %v8387_v18, %s9070_s18  ;;  %675 = vrot.lane.b32.xlu0 %v8386_v9, %s9070_s18 }
 0x110   : > { %688 = vrot.lane.b32.xlu1 %v8387_v18, %s9069_s24  ;;  %686 = vrot.lane.b32.xlu0 %v8386_v9, %s9069_s24 }
 0x114   : > { %701 = vrot.lane.b32.xlu1 %v696_v19, %s9070_s18  ;;  %699 = vrot.lane.b32.xlu0 %v695_v11, %s9070_s18 }
 0x118   : > { %712 = vrot.lane.b32.xlu1 %v696_v19, %s9069_s24  ;;  %710 = vrot.lane.b32.xlu0 %v695_v11, %s9069_s24 }
 0x11c   : > { %725 = vrot.lane.b32.xlu1 %v720_v20, %s9070_s18  ;;  %723 = vrot.lane.b32.xlu0 %v719_v12, %s9070_s18 }
 0x120   : > { %736 = vrot.lane.b32.xlu1 %v720_v20, %s9069_s24  ;;  %734 = vrot.lane.b32.xlu0 %v719_v12, %s9069_s24 }
 0x146   : > { %v511_v21 = vpop.permute.xlu1 %510  ;;  %v499_v22 = vpop.permute.xlu0 %498 }
 0x14a   : > { %v513_v23 = vpop.permute.xlu1 %512  ;;  %v501_v24 = vpop.permute.xlu0 %500 }
 0x14b   : > { %v515_v25 = vsel %vm514_vm0, %v511_v21, %v513_v23  ;;  %v503_v26 = vsel %vm502_vm1, %v499_v22, %v501_v24 }
 0x14c   : > { %517 = vst [vmem:[#allocation2 + $0x70] sm:$0xff] %v515_v25  ;;  %505 = vst [vmem:[#allocation2 + $0x68] sm:$0xff] %v503_v26 }
 0x14e   : > { %v528_v27 = vpop.permute.xlu1 %527  ;;  %v526_v28 = vpop.permute.xlu0 %525 }
 0x14f   : > { %v529_v29 = vsel %vm502_vm1, %v526_v28, %v528_v27 }
 0x150   : > { %531 = vst [vmem:[#allocation2 + $0x10] sm:$0xff] %v529_v29 }
 0x152   : > { %v539_v30 = vpop.permute.xlu1 %538  ;;  %v537_v31 = vpop.permute.xlu0 %536 }
 0x153   : > { %v540_v32 = vsel %vm514_vm0, %v537_v31, %v539_v30 }
 0x154   : > { %542 = vst [vmem:[#allocation2 + $0x78] sm:$0xff] %v540_v32 }
 0x156   : > { %v553_v33 = vpop.permute.xlu1 %552  ;;  %v551_v34 = vpop.permute.xlu0 %550 }
 0x157   : > { %v554_v35 = vsel %vm502_vm1, %v551_v34, %v553_v33 }
 0x158   : > { %556 = vst [vmem:[#allocation2 + $0xf0] sm:$0xff] %v554_v35 }
 0x15a   : > { %v564_v36 = vpop.permute.xlu1 %563  ;;  %v562_v37 = vpop.permute.xlu0 %561 }
 0x15b   : > { %v565_v38 = vsel %vm514_vm0, %v562_v37, %v564_v36 }
 0x15c   : > { %567 = vst [vmem:[#allocation2 + $0xf8] sm:$0xff] %v565_v38 }
 0x15e   : > { %v578_v39 = vpop.permute.xlu1 %577  ;;  %v576_v40 = vpop.permute.xlu0 %575 }
 0x15f   : > { %v579_v41 = vsel %vm502_vm1, %v576_v40, %v578_v39 }
 0x160   : > { %581 = vst [vmem:[#allocation2 + $0xb0] sm:$0xff] %v579_v41 }
 0x162   : > { %v589_v42 = vpop.permute.xlu1 %588  ;;  %v587_v43 = vpop.permute.xlu0 %586 }
 0x163   : > { %v590_v44 = vsel %vm514_vm0, %v587_v43, %v589_v42 }
 0x164   : > { %592 = vst [vmem:[#allocation2 + $0xa0] sm:$0xff] %v590_v44 }
 0x166   : > { %v603_v45 = vpop.permute.xlu1 %602  ;;  %v601_v46 = vpop.permute.xlu0 %600 }
 0x167   : > { %v604_v47 = vsel %vm502_vm1, %v601_v46, %v603_v45 }
 0x168   : > { %606 = vst [vmem:[#allocation2 + $0xb8] sm:$0xff] %v604_v47 }
 0x16a   : > { %v614_v48 = vpop.permute.xlu1 %613  ;;  %v612_v49 = vpop.permute.xlu0 %611 }
 0x16b   : > { %v615_v50 = vsel %vm514_vm0, %v612_v49, %v614_v48 }
 0x16c   : > { %617 = vst [vmem:[#allocation2 + $0x28] sm:$0xff] %v615_v50 }
 0x16e   : > { %v628_v51 = vpop.permute.xlu1 %627  ;;  %v626_v52 = vpop.permute.xlu0 %625 }
 0x16f   : > { %v629_v53 = vsel %vm502_vm1, %v626_v52, %v628_v51 }
 0x170   : > { %631 = vst [vmem:[#allocation2 + $0x60] sm:$0xff] %v629_v53 }
 0x172   : > { %v639_v54 = vpop.permute.xlu1 %638  ;;  %v637_v55 = vpop.permute.xlu0 %636 }
 0x173   : > { %v640_v56 = vsel %vm514_vm0, %v637_v55, %v639_v54 }
 0x174   : > { %642 = vst [vmem:[#allocation2 + $0xe8] sm:$0xff] %v640_v56 }
 0x176   : > { %v653_v57 = vpop.permute.xlu1 %652  ;;  %v651_v58 = vpop.permute.xlu0 %650 }
 0x177   : > { %v654_v59 = vsel %vm502_vm1, %v651_v58, %v653_v57 }
 0x178   : > { %656 = vst [vmem:[#allocation2 + $0x80] sm:$0xff] %v654_v59 }
 0x17a   : > { %v664_v60 = vpop.permute.xlu1 %663  ;;  %v662_v61 = vpop.permute.xlu0 %661 }
 0x17b   : > { %v665_v62 = vsel %vm514_vm0, %v662_v61, %v664_v60 }
 0x17c   : > { %667 = vst [vmem:[#allocation2 + $0x20] sm:$0xff] %v665_v62 }
 0x17e   : > { %v678_v63 = vpop.permute.xlu1 %677  ;;  %v676_v0 = vpop.permute.xlu0 %675 }
 0x17f   : > { %v679_v1 = vsel %vm502_vm1, %v676_v0, %v678_v63 }
 0x180   : > { %681 = vst [vmem:[#allocation2 + $0xa8] sm:$0xff] %v679_v1 }
 0x182   : > { %v689_v2 = vpop.permute.xlu1 %688  ;;  %v687_v3 = vpop.permute.xlu0 %686 }
 0x183   : > { %v690_v4 = vsel %vm514_vm0, %v687_v3, %v689_v2 }
 0x184   : > { %692 = vst [vmem:[#allocation2 + $0x100] sm:$0xff] %v690_v4 }
 0x186   : > { %v702_v5 = vpop.permute.xlu1 %701  ;;  %v700_v6 = vpop.permute.xlu0 %699 }
 0x187   : > { %v703_v7 = vsel %vm502_vm1, %v700_v6, %v702_v5 }
 0x188   : > { %705 = vst [vmem:[#allocation2 + $0xc8] sm:$0xff] %v703_v7 }
 0x18a   : > { %v713_v8 = vpop.permute.xlu1 %712  ;;  %v711_v9 = vpop.permute.xlu0 %710 }
 0x18b   : > { %v714_v10 = vsel %vm514_vm0, %v711_v9, %v713_v8 }
 0x18c   : > { %716 = vst [vmem:[#allocation2 + $0x30] sm:$0xff] %v714_v10 }
 0x18e   : > { %v726_v11 = vpop.permute.xlu1 %725  ;;  %v724_v12 = vpop.permute.xlu0 %723 }
 0x18f   : > { %v727_v13 = vsel %vm502_vm1, %v724_v12, %v726_v11 }
 0x190   : > { %729 = vst [vmem:[#allocation2 + $0x48] sm:$0xff] %v727_v13  ;;  %743 = sbr.rel (%p8390_p4) target bundleno = 1203 (0x4b3), region = 76 }
 0x192   : > { %v737_v14 = vpop.permute.xlu1 %736  ;;  %v735_v15 = vpop.permute.xlu0 %734 }
 0x193   : > { %v738_v16 = vsel %vm514_vm0, %v735_v15, %v737_v14 }
 0x194   : > { %740 = vst [vmem:[#allocation2 + $0xd8] sm:$0xff] %v738_v16 }
 0x195   : > { %s11671_s3 = sld [smem:[#allocation26_spill]] }
 0x19b   : > { %p8391_p10 = scmp.ne.s32.totalorder %s11671_s3, 0 }
 0x19d   : > { %746 = sbr.rel (%p8391_p10) target bundleno = 420 (0x1a4), region = 80 }
 0x1a2   : > { %vm747_vm2 = vcmask 7168   ;;  %v9071_v17 = vmov 0.0  }
 0x1a3   : > { %748 = vst.msk [vmem:[#allocation3] sm:$0xff] %vm747_vm2, %v9071_v17  ;;  %749 = vst.msk [vmem:[#allocation4] sm:$0xff] %vm747_vm2, %v9071_v17 }
 0x1a4 PF: > { %v9512_v18 = vld [vmem:[#allocation2 + $0x78] sm:$0xff]  ;;  %v9514_v19 = vld [vmem:[#allocation2 + $0x70] sm:$0xff]  ;;  %s9072_s7 = smov 127   ;;  %v9530_v23 = vld [vmem:[#allocation2 + $0x68] sm:$0xff]  ;;  %v9073_v28 = vmov 0.0   ;;  %s9074_s6 = smov 126  }
 0x1a5   : > { %845 = vrot.lane.b32.xlu0 %v9512_v18, %s9072_s7  ;;  %843 = vrot.lane.b32.xlu1 %v9514_v19, %s9072_s7  ;;  %v9520_v20 = vld [vmem:[#allocation2 + $0xf8] sm:$0xff]  ;;  %v9522_v21 = vld [vmem:[#allocation2 + $0x10] sm:$0xff]  ;;  %v9538_v25 = vld [vmem:[#allocation2 + $0x8] sm:$0xff]  ;;  %vm861_vm3 = vcmask 1039360   ;;  %vm910_vm4 = vcmask 195584   ;;  %vm1541_vm5 = vcmask 1031168  }
 0x1a6   : > { %v9528_v22 = vld [vmem:[#allocation2 + $0xf0] sm:$0xff]  ;;  %v9544_v26 = vld [vmem:[#allocation2 + $0x28] sm:$0xff]  ;;  %v9546_v27 = vld [vmem:[#allocation2 + $0xa0] sm:$0xff]  ;;  %978 = vmatprep.mubr.f32.mxu0 %v9073_v28  ;;  %1049 = vmatprep.mubr.f32.mxu1 %v9073_v28 }
 0x1a7   : > { %v9536_v24 = vld [vmem:[#allocation2 + $0xd0] sm:$0xff]  ;;  %v9556_v30 = vld [vmem:[#allocation2] sm:$0xff]  ;;  %v9562_v31 = vld [vmem:[#allocation2 + $0xe8] sm:$0xff] }
 0x1a8   : > { %v9554_v29 = vld [vmem:[#allocation2 + $0xb0] sm:$0xff]  ;;  %v9564_v32 = vld [vmem:[#allocation2 + $0xb8] sm:$0xff]  ;;  %v9572_v34 = vld [vmem:[#allocation2 + $0x20] sm:$0xff] }
 0x1a9   : > { %847 = vrot.lane.b32.xlu0 %v9520_v20, %s9072_s7  ;;  %827 = vrot.lane.b32.xlu1 %v9522_v21, %s9072_s7  ;;  %v9570_v33 = vld [vmem:[#allocation2 + $0x38] sm:$0xff]  ;;  %v9578_v35 = vld [vmem:[#allocation2 + $0x60] sm:$0xff]  ;;  %v9602_v41 = vld [vmem:[#allocation2 + $0xa8] sm:$0xff] }
 0x1aa   : > { %v9580_v36 = vld [vmem:[#allocation2 + $0xe0] sm:$0xff]  ;;  %v9586_v37 = vld [vmem:[#allocation2 + $0x18] sm:$0xff]  ;;  %v9604_v42 = vld [vmem:[#allocation2 + $0x30] sm:$0xff] }
 0x1ab   : > { %v9588_v38 = vld [vmem:[#allocation2 + $0x80] sm:$0xff]  ;;  %v9596_v40 = vld [vmem:[#allocation2 + $0x58] sm:$0xff]  ;;  %v9610_v43 = vld [vmem:[#allocation2 + $0x90] sm:$0xff] }
 0x1ac   : > { %v9594_v39 = vld [vmem:[#allocation2 + $0x100] sm:$0xff]  ;;  %v9612_v44 = vld [vmem:[#allocation2 + $0xc8] sm:$0xff]  ;;  %v9618_v45 = vld [vmem:[#allocation2 + $0x98] sm:$0xff] }
 0x1ad   : > { %829 = vrot.lane.b32.xlu0 %v9528_v22, %s9072_s7  ;;  %825 = vrot.lane.b32.xlu1 %v9530_v23, %s9072_s7  ;;  %v9711_v1 = vld [vmem:[#allocation13 + $0x8] sm:$0xff]  ;;  %v9739_v17 = vld [vmem:[#allocation2 + $0xd8] sm:$0xff] }
 0x1b1   : > { %811 = vrot.lane.b32.xlu1 %v9536_v24, %s9072_s7  ;;  %809 = vrot.lane.b32.xlu0 %v9538_v25, %s9072_s7 }
 0x1b5   : > { %851 = vrot.lane.b32.xlu1 %v9544_v26, %s9072_s7  ;;  %849 = vrot.lane.b32.xlu0 %v9546_v27, %s9072_s7 }
 0x1b9   : > { %831 = vrot.lane.b32.xlu1 %v9554_v29, %s9072_s7  ;;  %807 = vrot.lane.b32.xlu0 %v9556_v30, %s9072_s7 }
 0x1bd   : > { %853 = vrot.lane.b32.xlu1 %v9562_v31, %s9072_s7  ;;  %833 = vrot.lane.b32.xlu0 %v9564_v32, %s9072_s7 }
 0x1c1   : > { %813 = vrot.lane.b32.xlu1 %v9570_v33, %s9072_s7  ;;  %855 = vrot.lane.b32.xlu0 %v9572_v34, %s9072_s7 }
 0x1c5   : > { %835 = vrot.lane.b32.xlu1 %v9578_v35, %s9072_s7  ;;  %815 = vrot.lane.b32.xlu0 %v9580_v36, %s9072_s7 }
 0x1c9   : > { %817 = vrot.lane.b32.xlu1 %v9586_v37, %s9072_s7  ;;  %837 = vrot.lane.b32.xlu0 %v9588_v38, %s9072_s7 }
 0x1cd   : > { %857 = vrot.lane.b32.xlu1 %v9594_v39, %s9072_s7  ;;  %819 = vrot.lane.b32.xlu0 %v9596_v40, %s9072_s7 }
 0x1d1   : > { %839 = vrot.lane.b32.xlu1 %v9602_v41, %s9072_s7  ;;  %859 = vrot.lane.b32.xlu0 %v9604_v42, %s9072_s7 }
 0x1d5   : > { %821 = vrot.lane.b32.xlu1 %v9610_v43, %s9072_s7  ;;  %841 = vrot.lane.b32.xlu0 %v9612_v44, %s9072_s7 }
 0x1d9   : > { %1525 = vrot.lane.b32.xlu1 %v9512_v18, %s9074_s6  ;;  %823 = vrot.lane.b32.xlu0 %v9618_v45, %s9072_s7 }
 0x1dd   : > { %1523 = vrot.lane.b32.xlu1 %v9514_v19, %s9074_s6  ;;  %1527 = vrot.lane.b32.xlu0 %v9520_v20, %s9074_s6 }
 0x1e1   : > { %1509 = vrot.lane.b32.xlu1 %v9528_v22, %s9074_s6  ;;  %1507 = vrot.lane.b32.xlu0 %v9522_v21, %s9074_s6 }
 0x1e5   : > { %1489 = vrot.lane.b32.xlu1 %v9538_v25, %s9074_s6  ;;  %1505 = vrot.lane.b32.xlu0 %v9530_v23, %s9074_s6 }
 0x1e9   : > { %1529 = vrot.lane.b32.xlu1 %v9546_v27, %s9074_s6  ;;  %1491 = vrot.lane.b32.xlu0 %v9536_v24, %s9074_s6 }
 0x1ed   : > { %1487 = vrot.lane.b32.xlu1 %v9556_v30, %s9074_s6  ;;  %1531 = vrot.lane.b32.xlu0 %v9544_v26, %s9074_s6 }
 0x1f1   : > { %1513 = vrot.lane.b32.xlu1 %v9564_v32, %s9074_s6  ;;  %1511 = vrot.lane.b32.xlu0 %v9554_v29, %s9074_s6 }
 0x1f5   : > { %1535 = vrot.lane.b32.xlu1 %v9572_v34, %s9074_s6  ;;  %1533 = vrot.lane.b32.xlu0 %v9562_v31, %s9074_s6 }
 0x1f9   : > { %1495 = vrot.lane.b32.xlu1 %v9580_v36, %s9074_s6  ;;  %1493 = vrot.lane.b32.xlu0 %v9570_v33, %s9074_s6 }
 0x1fd   : > { %1517 = vrot.lane.b32.xlu1 %v9588_v38, %s9074_s6  ;;  %1515 = vrot.lane.b32.xlu0 %v9578_v35, %s9074_s6 }
 0x201   : > { %1499 = vrot.lane.b32.xlu1 %v9596_v40, %s9074_s6  ;;  %1497 = vrot.lane.b32.xlu0 %v9586_v37, %s9074_s6 }
 0x205   : > { %1539 = vrot.lane.b32.xlu1 %v9604_v42, %s9074_s6  ;;  %1537 = vrot.lane.b32.xlu0 %v9594_v39, %s9074_s6 }
 0x209   : > { %1521 = vrot.lane.b32.xlu1 %v9612_v44, %s9074_s6  ;;  %1519 = vrot.lane.b32.xlu0 %v9602_v41, %s9074_s6 }
 0x20d   : > { %1503 = vrot.lane.b32.xlu1 %v9618_v45, %s9074_s6  ;;  %1501 = vrot.lane.b32.xlu0 %v9610_v43, %s9074_s6 }
 0x211   : > { %2278 = vrot.lane.b32.xlu1 %v9546_v27, %s9072_s7  ;;  %2276 = vrot.lane.b32.xlu0 %v9520_v20, %s9072_s7 }
 0x215   : > { %2258 = vrot.lane.b32.xlu1 %v9528_v22, %s9072_s7  ;;  %2274 = vrot.lane.b32.xlu0 %v9512_v18, %s9072_s7 }
 0x217   : > { %v846_v46 = vpop.permute.xlu0 %845  ;;  %v844_v47 = vpop.permute.xlu1 %843 }
 0x218   : > { %v878_v51 = vsel %vm861_vm3, %v844_v47, %v846_v46 }
 0x219   : > { %2256 = vrot.lane.b32.xlu1 %v9522_v21, %s9072_s7  ;;  %2260 = vrot.lane.b32.xlu0 %v9554_v29, %s9072_s7 }
 0x21b   : > { %v848_v48 = vpop.permute.xlu0 %847  ;;  %v828_v49 = vpop.permute.xlu1 %827 }
 0x21c   : > { %v879_v50 = vsel %vm861_vm3, %v846_v46, %v848_v48 }
 0x21d   : > { %940 = vmatprep.subr.mxu0 %v879_v50  ;;  %2242 = vrot.lane.b32.xlu1 %v9570_v33, %s9072_s7  ;;  %v9750_v50 = vld [vmem:[#allocation2 + $0x48] sm:$0xff] }
 0x21e   : > { %2240 = vrot.lane.b32.xlu0 %v9536_v24, %s9072_s7  ;;  %941 = vmatpush1.msra.mxu0 %v878_v51 }
 0x21f   : > { %v830_v52 = vpop.permute.xlu0 %829  ;;  %v826_v53 = vpop.permute.xlu1 %825 }
 0x220   : > { %v871_v54 = vsel %vm861_vm3, %v828_v49, %v830_v52  ;;  %v870_v55 = vsel %vm861_vm3, %v826_v53, %v828_v49 }
 0x221   : > { %942 = vmatprep.subr.mxu0 %v871_v54  ;;  %2282 = vrot.lane.b32.xlu1 %v9562_v31, %s9072_s7 }
 0x222   : > { %2280 = vrot.lane.b32.xlu0 %v9544_v26, %s9072_s7  ;;  %943 = vmatpush1.msra.mxu0 %v870_v55 }
 0x223   : > { %v812_v56 = vpop.permute.xlu1 %811  ;;  %v810_v57 = vpop.permute.xlu0 %809 }
 0x224   : > { %v863_v58 = vsel %vm861_vm3, %v810_v57, %v812_v56 }
 0x225   : > { %944 = vmatprep.subr.mxu0 %v863_v58  ;;  %2262 = vrot.lane.b32.xlu1 %v9564_v32, %s9072_s7 }
 0x226   : > { %2238 = vrot.lane.b32.xlu0 %v9538_v25, %s9072_s7 }
 0x227   : > { %v852_v59 = vpop.permute.xlu1 %851  ;;  %v850_v60 = vpop.permute.xlu0 %849 }
 0x228   : > { %v881_v61 = vsel %vm861_vm3, %v850_v60, %v852_v59  ;;  %v880_v62 = vsel %vm861_vm3, %v848_v48, %v850_v60  ;;  %v9776_v60 = vld [vmem:[#allocation13] sm:$0xff] }
 0x229   : > { %1011 = vmatprep.subr.mxu1 %v881_v61  ;;  %2284 = vrot.lane.b32.xlu1 %v9572_v34, %s9072_s7 }
 0x22a   : > { %2264 = vrot.lane.b32.xlu0 %v9578_v35, %s9072_s7  ;;  %1012 = vmatpush1.msra.mxu1 %v880_v62 }
 0x22b   : > { %v832_v63 = vpop.permute.xlu1 %831  ;;  %v808_v0 = vpop.permute.xlu0 %807 }
 0x22c   : > { %v862_v2 = vsel %vm861_vm3, %v808_v0, %v810_v57  ;;  %v872_v6 = vsel %vm861_vm3, %v830_v52, %v832_v63  ;;  %v9769_v57 = vld [vmem:[#allocation2 + $0xc0] sm:$0xff] }
 0x22d   : > { %2244 = vrot.lane.b32.xlu1 %v9580_v36, %s9072_s7  ;;  %945 = vmatpush1.msra.mxu0 %v862_v2 }
 0x22e   : > { %2286 = vrot.lane.b32.xlu0 %v9594_v39, %s9072_s7  ;;  %8392 = vmatmul.mubr.msk.f32.vlgmr.msra.gmra.mxu0 %vm910_vm4, %v9711_v1 }
 0x22f   : > { %v854_v3 = vpop.permute.xlu1 %853  ;;  %v834_v4 = vpop.permute.xlu0 %833  ;;  %1120 = vmatprep.mubr.f32.mxu0 %v9073_v28 }
 0x230   : > { %v873_v5 = vsel %vm861_vm3, %v832_v63, %v834_v4  ;;  %v882_v10 = vsel %vm861_vm3, %v852_v59, %v854_v3 }
 0x231   : > { %2266 = vrot.lane.b32.xlu1 %v9588_v38, %s9072_s7  ;;  %1013 = vmatprep.subr.mxu1 %v873_v5 }
 0x232   : > { %2246 = vrot.lane.b32.xlu0 %v9586_v37, %s9072_s7  ;;  %1014 = vmatpush1.msra.mxu1 %v872_v6 }
 0x233   : > { %v814_v7 = vpop.permute.xlu1 %813  ;;  %v856_v8 = vpop.permute.xlu0 %855 }
 0x234   : > { %v883_v9 = vsel %vm861_vm3, %v854_v3, %v856_v8  ;;  %v864_v14 = vsel %vm861_vm3, %v812_v56, %v814_v7 }
 0x235   : > { %2248 = vrot.lane.b32.xlu1 %v9596_v40, %s9072_s7  ;;  %1082 = vmatprep.subr.mxu0 %v883_v9 }
 0x236   : > { %2268 = vrot.lane.b32.xlu0 %v9602_v41, %s9072_s7  ;;  %1083 = vmatpush1.msra.mxu0 %v882_v10 }
 0x237   : > { %v836_v11 = vpop.permute.xlu1 %835  ;;  %v816_v12 = vpop.permute.xlu0 %815 }
 0x238   : > { %v865_v13 = vsel %vm861_vm3, %v814_v7, %v816_v12  ;;  %v874_v47 = vsel %vm861_vm3, %v834_v4, %v836_v11 }
 0x239   : > { %2288 = vrot.lane.b32.xlu1 %v9604_v42, %s9072_s7  ;;  %1015 = vmatprep.subr.mxu1 %v865_v13 }
 0x23a   : > { %2250 = vrot.lane.b32.xlu0 %v9610_v43, %s9072_s7  ;;  %1016 = vmatpush1.msra.mxu1 %v864_v14 }
 0x23b   : > { %v818_v15 = vpop.permute.xlu1 %817  ;;  %v838_v16 = vpop.permute.xlu0 %837  ;;  %8393 = vmatmul.mubr.msk.f32.vlgmr.msra.gmra.mxu1 %vm910_vm4, %v9711_v1 }
 0x23c   : > { %v875_v46 = vsel %vm861_vm3, %v836_v11, %v838_v16  ;;  %1191 = vmatprep.mubr.f32.mxu1 %v9073_v28  ;;  %v866_v52 = vsel %vm861_vm3, %v816_v12, %v818_v15 }
 0x23d   : > { %2270 = vrot.lane.b32.xlu1 %v9612_v44, %s9072_s7  ;;  %1084 = vmatprep.subr.mxu0 %v875_v46  ;;  %v9844_v46 = vld [vmem:[#allocation13 + $0x10] sm:$0xff] }
 0x23e   : > { %2290 = vrot.lane.b32.xlu0 %v9739_v17, %s9072_s7  ;;  %1085 = vmatpush1.msra.mxu0 %v874_v47 }
 0x23f   : > { %v858_v48 = vpop.permute.xlu1 %857  ;;  %v820_v49 = vpop.permute.xlu0 %819 }
 0x240   : > { %v867_v51 = vsel %vm861_vm3, %v818_v15, %v820_v49  ;;  %v884_v56 = vsel %vm861_vm3, %v856_v8, %v858_v48 }
 0x241   : > { %2675 = vrot.lane.b32.xlu1 %v9520_v20, %s9074_s6  ;;  %1086 = vmatprep.subr.mxu0 %v867_v51 }
 0x242   : > { %2272 = vrot.lane.b32.xlu0 %v9750_v50, %s9072_s7  ;;  %1087 = vmatpush1.msra.mxu0 %v866_v52 }
 0x243   : > { %v840_v53 = vpop.permute.xlu1 %839  ;;  %v860_v54 = vpop.permute.xlu0 %859  ;;  %1227 = vmatprep.subr.mxu0 %v9512_v18  ;;  %8394 = vmatmul.mubr.msk.f32.vlgmr.msra.gmra.mxu0 %vm910_vm4, %v9711_v1 }
 0x244   : > { %v885_v55 = vsel %vm861_vm3, %v858_v48, %v860_v54  ;;  %1228 = vmatpush1.msra.mxu0 %v9514_v19  ;;  %1265 = vmatprep.mubr.f32.mxu0 %v9073_v28  ;;  %v876_v61 = vsel %vm861_vm3, %v838_v16, %v840_v53 }
 0x245   : > { %2673 = vrot.lane.b32.xlu1 %v9512_v18, %s9074_s6  ;;  %1153 = vmatprep.subr.mxu1 %v885_v55 }
 0x246   : > { %2677 = vrot.lane.b32.xlu0 %v9546_v27, %s9074_s6  ;;  %1154 = vmatpush1.msra.mxu1 %v884_v56 }
 0x247   : > { %v822_v58 = vpop.permute.xlu1 %821  ;;  %1229 = vmatprep.subr.mxu0 %v9522_v21  ;;  %v842_v59 = vpop.permute.xlu0 %841 }
 0x248   : > { %1230 = vmatpush1.msra.mxu0 %v9530_v23  ;;  %v877_v19 = vsel %vm861_vm3, %v840_v53, %v842_v59 }
 0x249   : > { %2254 = vrot.lane.b32.xlu1 %v9769_v57, %s9072_s7  ;;  %1155 = vmatprep.subr.mxu1 %v877_v19 }
 0x24a   : > { %2252 = vrot.lane.b32.xlu0 %v9618_v45, %s9072_s7  ;;  %1231 = vmatprep.subr.mxu0 %v9538_v25 }
 0x24b   : > { %1156 = vmatpush1.msra.mxu1 %v876_v61  ;;  %1232 = vmatpush1.msra.mxu0 %v9556_v30  ;;  %v1526_v62 = vpop.permute.xlu1 %1525  ;;  %v824_v23 = vpop.permute.xlu0 %823  ;;  %v868_v30 = vsel %vm861_vm3, %v820_v49, %v822_v58 }
 0x24c   : > { %1369 = vmatprep.subr.mxu0 %v9562_v31  ;;  %8396 = vmatmul.mubr.msk.f32.vlgmr.msra.gmra.mxu0 %vm910_vm4, %v9776_v60  ;;  %v869_v63 = vsel %vm861_vm3, %v822_v58, %v824_v23 }
 0x24d   : > { %1370 = vmatpush1.msra.mxu0 %v9544_v26  ;;  %2659 = vrot.lane.b32.xlu1 %v9554_v29, %s9074_s6 }
 0x24e   : > { %2657 = vrot.lane.b32.xlu0 %v9528_v22, %s9074_s6  ;;  %1157 = vmatprep.subr.mxu1 %v869_v63 }
 0x24f   : > { %1371 = vmatprep.subr.mxu0 %v9578_v35  ;;  %1158 = vmatpush1.msra.mxu1 %v868_v30  ;;  %v1524_v0 = vpop.permute.xlu1 %1523  ;;  %v1528_v2 = vpop.permute.xlu0 %1527 }
 0x250   : > { %1372 = vmatpush1.msra.mxu0 %v9564_v32  ;;  %1407 = vmatprep.mubr.f32.mxu0 %v9073_v28  ;;  %v1559_v3 = vsel %vm1541_vm5, %v1526_v62, %v1528_v2  ;;  %v1558_v4 = vsel %vm1541_vm5, %v1524_v0, %v1526_v62 }
 0x251   : > { %1373 = vmatprep.subr.mxu0 %v9586_v37  ;;  %2639 = vrot.lane.b32.xlu1 %v9536_v24, %s9074_s6 }
 0x252   : > { %1374 = vmatpush1.msra.mxu0 %v9580_v36  ;;  %2655 = vrot.lane.b32.xlu0 %v9522_v21, %s9074_s6 }
 0x253   : > { %1619 = vmatprep.subr.mxu0 %v1559_v3  ;;  %8398 = vmatmul.mubr.msk.f32.vlgmr.msra.gmra.mxu0 %vm910_vm4, %v9776_v60  ;;  %v1510_v5 = vpop.permute.xlu1 %1509  ;;  %v1508_v6 = vpop.permute.xlu0 %1507 }
 0x254   : > { %1620 = vmatpush1.msra.mxu0 %v1558_v4  ;;  %1298 = vmatprep.subr.mxu1 %v9546_v27  ;;  %v1551_v7 = vsel %vm1541_vm5, %v1508_v6, %v1510_v5 }
 0x255   : > { %2679 = vrot.lane.b32.xlu1 %v9544_v26, %s9074_s6  ;;  %1621 = vmatprep.subr.mxu0 %v1551_v7 }
 0x256   : > { %2641 = vrot.lane.b32.xlu0 %v9570_v33, %s9074_s6  ;;  %8395 = vmatmul.mubr.msk.f32.vlgmr.msra.gmra.mxu1 %vm910_vm4, %v9711_v1 }
 0x257   : > { %1299 = vmatpush1.msra.mxu1 %v9520_v20  ;;  %v1490_v8 = vpop.permute.xlu1 %1489  ;;  %v1506_v9 = vpop.permute.xlu0 %1505  ;;  %1336 = vmatprep.mubr.f32.mxu1 %v9073_v28 }
 0x258   : > { %1300 = vmatprep.subr.mxu1 %v9554_v29  ;;  %v1550_v10 = vsel %vm1541_vm5, %v1506_v9, %v1508_v6  ;;  %1657 = vmatprep.mubr.f32.mxu0 %v9073_v28 }
 0x259   : > { %1301 = vmatpush1.msra.mxu1 %v9528_v22  ;;  %2637 = vrot.lane.b32.xlu1 %v9538_v25, %s9074_s6 }
 0x25a   : > { %2681 = vrot.lane.b32.xlu0 %v9562_v31, %s9074_s6  ;;  %1302 = vmatprep.subr.mxu1 %v9570_v33 }
 0x25b   : > { %1622 = vmatpush1.msra.mxu0 %v1550_v10  ;;  %1303 = vmatpush1.msra.mxu1 %v9536_v24  ;;  %v1530_v1 = vpop.permute.xlu1 %1529  ;;  %v1492_v11 = vpop.permute.xlu0 %1491 }
 0x25c   : > { %1440 = vmatprep.subr.mxu1 %v9594_v39  ;;  %8397 = vmatmul.mubr.msk.f32.vlgmr.msra.gmra.mxu1 %vm910_vm4, %v9776_v60  ;;  %v1543_v12 = vsel %vm1541_vm5, %v1490_v8, %v1492_v11  ;;  %v1560_v47 = vsel %vm1541_vm5, %v1528_v2, %v1530_v1 }
 0x25d   : > { %1441 = vmatpush1.msra.mxu1 %v9572_v34  ;;  %2663 = vrot.lane.b32.xlu1 %v9578_v35, %s9074_s6 }
 0x25e   : > { %2661 = vrot.lane.b32.xlu0 %v9564_v32, %s9074_s6  ;;  %1442 = vmatprep.subr.mxu1 %v9602_v41 }
 0x25f   : > { %1623 = vmatprep.subr.mxu0 %v1543_v12  ;;  %1443 = vmatpush1.msra.mxu1 %v9588_v38  ;;  %v1488_v13 = vpop.permute.xlu1 %1487  ;;  %v1532_v14 = vpop.permute.xlu0 %1531 }
 0x260   : > { %v1542_v15 = vsel %vm1541_vm5, %v1488_v13, %v1490_v8  ;;  %1444 = vmatprep.subr.mxu1 %v9610_v43  ;;  %1478 = vmatprep.mubr.f32.mxu1 %v9073_v28  ;;  %v1561_v16 = vsel %vm1541_vm5, %v1530_v1, %v1532_v14  ;;  %v9905_v1 = vld [vmem:[#allocation13 + $0x18] sm:$0xff] }
 0x261   : > { %1445 = vmatpush1.msra.mxu1 %v9596_v40  ;;  %2685 = vrot.lane.b32.xlu1 %v9594_v39, %s9074_s6 }
 0x262   : > { %2683 = vrot.lane.b32.xlu0 %v9572_v34, %s9074_s6  ;;  %1624 = vmatpush1.msra.mxu0 %v1542_v15 }
 0x263   : > { %1690 = vmatprep.subr.mxu1 %v1561_v16  ;;  %8399 = vmatmul.mubr.msk.f32.vlgmr.msra.gmra.mxu1 %vm910_vm4, %v9776_v60  ;;  %v1514_v48 = vpop.permute.xlu1 %1513  ;;  %v1512_v49 = vpop.permute.xlu0 %1511 }
 0x264   : > { %1691 = vmatpush1.msra.mxu1 %v1560_v47  ;;  %v1553_v51 = vsel %vm1541_vm5, %v1512_v49, %v1514_v48  ;;  %v1552_v52 = vsel %vm1541_vm5, %v1510_v5, %v1512_v49  ;;  %8400 = vmatmul.mubr.msk.f32.vlgmr.msra.gmra.mxu0 %vm910_vm4, %v9844_v46 }
 0x265   : > { %2645 = vrot.lane.b32.xlu1 %v9586_v37, %s9074_s6  ;;  %1692 = vmatprep.subr.mxu1 %v1553_v51 }
 0x266   : > { %2643 = vrot.lane.b32.xlu0 %v9580_v36, %s9074_s6  ;;  %1693 = vmatpush1.msra.mxu1 %v1552_v52 }
 0x267   : > { %v1536_v53 = vpop.permute.xlu1 %1535  ;;  %v1534_v54 = vpop.permute.xlu0 %1533  ;;  %1728 = vmatprep.mubr.f32.mxu1 %v9073_v28  ;;  %1799 = vmatprep.mubr.f32.mxu0 %v9073_v28 }
 0x268   : > { %v1563_v55 = vsel %vm1541_vm5, %v1534_v54, %v1536_v53  ;;  %v1562_v56 = vsel %vm1541_vm5, %v1532_v14, %v1534_v54 }
 0x269   : > { %2667 = vrot.lane.b32.xlu1 %v9602_v41, %s9074_s6  ;;  %1761 = vmatprep.subr.mxu0 %v1563_v55 }
 0x26a   : > { %2665 = vrot.lane.b32.xlu0 %v9588_v38, %s9074_s6  ;;  %1762 = vmatpush1.msra.mxu0 %v1562_v56 }
 0x26b   : > { %v1496_v58 = vpop.permute.xlu1 %1495  ;;  %v1494_v59 = vpop.permute.xlu0 %1493 }
 0x26c   : > { %v1545_v19 = vsel %vm1541_vm5, %v1494_v59, %v1496_v58  ;;  %v1544_v60 = vsel %vm1541_vm5, %v1492_v11, %v1494_v59 }
 0x26d   : > { %2649 = vrot.lane.b32.xlu1 %v9610_v43, %s9074_s6  ;;  %1694 = vmatprep.subr.mxu1 %v1545_v19 }
 0x26e   : > { %2647 = vrot.lane.b32.xlu0 %v9596_v40, %s9074_s6  ;;  %1695 = vmatpush1.msra.mxu1 %v1544_v60 }
 0x26f   : > { %v1518_v61 = vpop.permute.xlu1 %1517  ;;  %v1516_v62 = vpop.permute.xlu0 %1515  ;;  %8401 = vmatmul.mubr.msk.f32.vlgmr.msra.gmra.mxu1 %vm910_vm4, %v9844_v46 }
 0x270   : > { %v1555_v23 = vsel %vm1541_vm5, %v1516_v62, %v1518_v61  ;;  %v1554_v63 = vsel %vm1541_vm5, %v1514_v48, %v1516_v62  ;;  %1870 = vmatprep.mubr.f32.mxu1 %v9073_v28  ;;  %v9976_v62 = vld [vmem:[#allocation13 + $0x20] sm:$0xff] }
 0x271   : > { %2689 = vrot.lane.b32.xlu1 %v9739_v17, %s9074_s6  ;;  %1763 = vmatprep.subr.mxu0 %v1555_v23 }
 0x272   : > { %2687 = vrot.lane.b32.xlu0 %v9604_v42, %s9074_s6  ;;  %1764 = vmatpush1.msra.mxu0 %v1554_v63 }
 0x273   : > { %v1500_v30 = vpop.permute.xlu1 %1499  ;;  %v1498_v0 = vpop.permute.xlu0 %1497 }
 0x274   : > { %v1547_v2 = vsel %vm1541_vm5, %v1498_v0, %v1500_v30  ;;  %v1546_v3 = vsel %vm1541_vm5, %v1496_v58, %v1498_v0 }
 0x275   : > { %2671 = vrot.lane.b32.xlu1 %v9750_v50, %s9074_s6  ;;  %1765 = vmatprep.subr.mxu0 %v1547_v2 }
 0x276   : > { %2669 = vrot.lane.b32.xlu0 %v9612_v44, %s9074_s6  ;;  %1766 = vmatpush1.msra.mxu0 %v1546_v3 }
 0x277   : > { %v1540_v4 = vpop.permute.xlu1 %1539  ;;  %v1538_v5 = vpop.permute.xlu0 %1537  ;;  %1916 = vmatprep.subr.mxu0 %v9520_v20  ;;  %8402 = vmatmul.mubr.msk.f32.vlgmr.msra.gmra.mxu0 %vm910_vm4, %v9844_v46 }
 0x278   : > { %v1565_v6 = vsel %vm1541_vm5, %v1538_v5, %v1540_v4  ;;  %v1564_v7 = vsel %vm1541_vm5, %v1536_v53, %v1538_v5  ;;  %1917 = vmatpush1.msra.mxu0 %v9512_v18  ;;  %1954 = vmatprep.mubr.f32.mxu0 %v9073_v28 }
 0x279   : > { %2653 = vrot.lane.b32.xlu1 %v9769_v57, %s9074_s6  ;;  %1832 = vmatprep.subr.mxu1 %v1565_v6 }
 0x27a   : > { %2651 = vrot.lane.b32.xlu0 %v9618_v45, %s9074_s6  ;;  %1833 = vmatpush1.msra.mxu1 %v1564_v7 }
 0x27b   : > { %v1522_v8 = vpop.permute.xlu1 %1521  ;;  %1918 = vmatprep.subr.mxu0 %v9528_v22  ;;  %v1520_v9 = vpop.permute.xlu0 %1519 }
 0x27c   : > { %1919 = vmatpush1.msra.mxu0 %v9522_v21  ;;  %v1557_v10 = vsel %vm1541_vm5, %v1520_v9, %v1522_v8  ;;  %v1556_v18 = vsel %vm1541_vm5, %v1518_v61, %v1520_v9 }
 0x27d   : > { %3427 = vrot.lane.b32.xlu1 %v9544_v26, %s9072_s7  ;;  %1834 = vmatprep.subr.mxu1 %v1557_v10 }
 0x27e   : > { %3425 = vrot.lane.b32.xlu0 %v9546_v27, %s9072_s7  ;;  %1920 = vmatprep.subr.mxu0 %v9536_v24 }
 0x27f   : > { %1835 = vmatpush1.msra.mxu1 %v1556_v18  ;;  %1921 = vmatpush1.msra.mxu0 %v9538_v25  ;;  %v1504_v11 = vpop.permute.xlu1 %1503  ;;  %v1502_v21 = vpop.permute.xlu0 %1501 }
 0x280   : > { %2058 = vmatprep.subr.mxu0 %v9572_v34  ;;  %8404 = vmatmul.mubr.msk.f32.vlgmr.msra.gmra.mxu0 %vm910_vm4, %v9905_v1  ;;  %v1549_v12 = vsel %vm1541_vm5, %v1502_v21, %v1504_v11  ;;  %v1548_v13 = vsel %vm1541_vm5, %v1500_v30, %v1502_v21 }
 0x281   : > { %2059 = vmatpush1.msra.mxu0 %v9562_v31  ;;  %3407 = vrot.lane.b32.xlu1 %v9554_v29, %s9072_s7 }
 0x282   : > { %3423 = vrot.lane.b32.xlu0 %v9520_v20, %s9072_s7  ;;  %1836 = vmatprep.subr.mxu1 %v1549_v12 }
 0x283   : > { %2060 = vmatprep.subr.mxu0 %v9588_v38  ;;  %1837 = vmatpush1.msra.mxu1 %v1548_v13  ;;  %v2279_v25 = vpop.permute.xlu1 %2278  ;;  %v2277_v14 = vpop.permute.xlu0 %2276 }
 0x284   : > { %2061 = vmatpush1.msra.mxu0 %v9578_v35  ;;  %v2309_v15 = vsel %vm861_vm3, %v2277_v14, %v2279_v25  ;;  %2096 = vmatprep.mubr.f32.mxu0 %v9073_v28 }
 0x285   : > { %2062 = vmatprep.subr.mxu0 %v9596_v40  ;;  %3405 = vrot.lane.b32.xlu1 %v9528_v22, %s9072_s7 }
 0x286   : > { %2063 = vmatpush1.msra.mxu0 %v9586_v37  ;;  %3409 = vrot.lane.b32.xlu0 %v9564_v32, %s9072_s7 }
 0x287   : > { %2369 = vmatprep.subr.mxu0 %v2309_v15  ;;  %v2259_v16 = vpop.permute.xlu1 %2258  ;;  %v2275_v47 = vpop.permute.xlu0 %2274  ;;  %1987 = vmatprep.subr.mxu1 %v9544_v26 }
 0x288   : > { %v2308_v48 = vsel %vm861_vm3, %v2275_v47, %v2277_v14  ;;  %8406 = vmatmul.mubr.msk.f32.vlgmr.msra.gmra.mxu0 %vm910_vm4, %v9905_v1  ;;  %8403 = vmatmul.mubr.msk.f32.vlgmr.msra.gmra.mxu1 %vm910_vm4, %v9844_v46 }
 0x289   : > { %3391 = vrot.lane.b32.xlu1 %v9580_v36, %s9072_s7  ;;  %2370 = vmatpush1.msra.mxu0 %v2308_v48 }
 0x28a   : > { %3389 = vrot.lane.b32.xlu0 %v9570_v33, %s9072_s7  ;;  %1988 = vmatpush1.msra.mxu1 %v9546_v27 }
 0x28b   : > { %v2257_v49 = vpop.permute.xlu1 %2256  ;;  %1989 = vmatprep.subr.mxu1 %v9564_v32  ;;  %v2261_v51 = vpop.permute.xlu0 %2260  ;;  %2025 = vmatprep.mubr.f32.mxu1 %v9073_v28 }
 0x28c   : > { %v2300_v52 = vsel %vm861_vm3, %v2257_v49, %v2259_v16  ;;  %1990 = vmatpush1.msra.mxu1 %v9554_v29  ;;  %v2301_v46 = vsel %vm861_vm3, %v2259_v16, %v2261_v51  ;;  %2407 = vmatprep.mubr.f32.mxu0 %v9073_v28 }
 0x28d   : > { %3431 = vrot.lane.b32.xlu1 %v9572_v34, %s9072_s7  ;;  %1991 = vmatprep.subr.mxu1 %v9580_v36 }
 0x28e   : > { %3429 = vrot.lane.b32.xlu0 %v9562_v31, %s9072_s7  ;;  %2371 = vmatprep.subr.mxu0 %v2301_v46 }
 0x28f   : > { %1992 = vmatpush1.msra.mxu1 %v9570_v33  ;;  %2372 = vmatpush1.msra.mxu0 %v2300_v52  ;;  %v2243_v53 = vpop.permute.xlu1 %2242 }
 0x290   : > { %2129 = vmatprep.subr.mxu1 %v9604_v42  ;;  %v2241_v54 = vpop.permute.xlu0 %2240  ;;  %8405 = vmatmul.mubr.msk.f32.vlgmr.msra.gmra.mxu1 %vm910_vm4, %v9905_v1 }
 0x291   : > { %2130 = vmatpush1.msra.mxu1 %v9594_v39  ;;  %3411 = vrot.lane.b32.xlu1 %v9578_v35, %s9072_s7  ;;  %v2293_v55 = vsel %vm861_vm3, %v2241_v54, %v2243_v53 }
 0x292   : > { %3387 = vrot.lane.b32.xlu0 %v9536_v24, %s9072_s7  ;;  %2131 = vmatprep.subr.mxu1 %v9612_v44 }
 0x293   : > { %2373 = vmatprep.subr.mxu0 %v2293_v55  ;;  %2132 = vmatpush1.msra.mxu1 %v9602_v41  ;;  %v2283_v56 = vpop.permute.xlu1 %2282 }
 0x294   : > { %2133 = vmatprep.subr.mxu1 %v9618_v45  ;;  %v2281_v58 = vpop.permute.xlu0 %2280  ;;  %2167 = vmatprep.mubr.f32.mxu1 %v9073_v28 }
 0x295   : > { %2134 = vmatpush1.msra.mxu1 %v9610_v43  ;;  %3433 = vrot.lane.b32.xlu1 %v9594_v39, %s9072_s7  ;;  %v2311_v59 = vsel %vm861_vm3, %v2281_v58, %v2283_v56  ;;  %v2310_v19 = vsel %vm861_vm3, %v2279_v25, %v2281_v58  ;;  %v10016_v25 = vld [vmem:[#allocation2 + $0x50] sm:$0xff] }
 0x296   : > { %3413 = vrot.lane.b32.xlu0 %v9588_v38, %s9072_s7  ;;  %2440 = vmatprep.subr.mxu1 %v2311_v59 }
 0x297   : > { %8407 = vmatmul.mubr.msk.f32.vlgmr.msra.gmra.mxu1 %vm910_vm4, %v9905_v1  ;;  %v2263_v60 = vpop.permute.xlu1 %2262  ;;  %v10005_v1 = vld [vmem:[#allocation2 + $0x40] sm:$0xff] }
 0x298   : > { %2441 = vmatpush1.msra.mxu1 %v2310_v19  ;;  %v2239_v61 = vpop.permute.xlu0 %2238  ;;  %2478 = vmatprep.mubr.f32.mxu1 %v9073_v28  ;;  %v2302_v2 = vsel %vm861_vm3, %v2261_v51, %v2263_v60  ;;  %v10033_v51 = vld [vmem:[#allocation2 + $0x88] sm:$0xff] }
 0x299   : > { %v2292_v23 = vsel %vm861_vm3, %v2239_v61, %v2241_v54  ;;  %3393 = vrot.lane.b32.xlu1 %v9586_v37, %s9072_s7 }
 0x29a   : > { %3435 = vrot.lane.b32.xlu0 %v9604_v42, %s9072_s7  ;;  %2374 = vmatpush1.msra.mxu0 %v2292_v23 }
 0x29b   : > { %v2285_v63 = vpop.permute.xlu1 %2284  ;;  %8408 = vmatmul.mubr.msk.f32.vlgmr.msra.gmra.mxu0 %vm910_vm4, %v9976_v62 }
 0x29c   : > { %v2265_v30 = vpop.permute.xlu0 %2264  ;;  %2549 = vmatprep.mubr.f32.mxu0 %v9073_v28  ;;  %v2312_v6 = vsel %vm861_vm3, %v2283_v56, %v2285_v63 }
 0x29d   : > { %3415 = vrot.lane.b32.xlu1 %v9602_v41, %s9072_s7  ;;  %v2303_v0 = vsel %vm861_vm3, %v2263_v60, %v2265_v30 }
 0x29e   : > { %3395 = vrot.lane.b32.xlu0 %v9596_v40, %s9072_s7  ;;  %2442 = vmatprep.subr.mxu1 %v2303_v0 }
 0x29f   : > { %2443 = vmatpush1.msra.mxu1 %v2302_v2  ;;  %v2245_v3 = vpop.permute.xlu1 %2244 }
 0x2a0   : > { %v2287_v4 = vpop.permute.xlu0 %2286  ;;  %v2294_v10 = vsel %vm861_vm3, %v2243_v53, %v2245_v3 }
 0x2a1   : > { %3397 = vrot.lane.b32.xlu1 %v9610_v43, %s9072_s7  ;;  %v2313_v5 = vsel %vm861_vm3, %v2285_v63, %v2287_v4 }
 0x2a2   : > { %3417 = vrot.lane.b32.xlu0 %v9612_v44, %s9072_s7  ;;  %2511 = vmatprep.subr.mxu0 %v2313_v5 }
 0x2a3   : > { %2512 = vmatpush1.msra.mxu0 %v2312_v6  ;;  %v2267_v7 = vpop.permute.xlu1 %2266 }
 0x2a4   : > { %v2247_v8 = vpop.permute.xlu0 %2246  ;;  %v2304_v12 = vsel %vm861_vm3, %v2265_v30, %v2267_v7 }
 0x2a5   : > { %3437 = vrot.lane.b32.xlu1 %v9739_v17, %s9072_s7  ;;  %v2295_v9 = vsel %vm861_vm3, %v2245_v3, %v2247_v8 }
 0x2a6   : > { %3399 = vrot.lane.b32.xlu0 %v9618_v45, %s9072_s7  ;;  %2444 = vmatprep.subr.mxu1 %v2295_v9 }
 0x2a7   : > { %2445 = vmatpush1.msra.mxu1 %v2294_v10  ;;  %v2249_v18 = vpop.permute.xlu1 %2248 }
 0x2a8   : > { %v2269_v11 = vpop.permute.xlu0 %2268  ;;  %8409 = vmatmul.mubr.msk.f32.vlgmr.msra.gmra.mxu1 %vm910_vm4, %v9976_v62  ;;  %v2296_v16 = vsel %vm861_vm3, %v2247_v8, %v2249_v18 }
 0x2a9   : > { %3419 = vrot.lane.b32.xlu1 %v9750_v50, %s9072_s7  ;;  %v2305_v21 = vsel %vm861_vm3, %v2267_v7, %v2269_v11  ;;  %2620 = vmatprep.mubr.f32.mxu1 %v9073_v28 }
 0x2aa   : > { %3439 = vrot.lane.b32.xlu0 %v10005_v1, %s9072_s7  ;;  %2513 = vmatprep.subr.mxu0 %v2305_v21 }
 0x2ab   : > { %2514 = vmatpush1.msra.mxu0 %v2304_v12  ;;  %v2289_v13 = vpop.permute.xlu1 %2288  ;;  %v8708_v12 = vld [vmem:[#allocation2 + $0xa0] sm:$0xff] }
 0x2ac   : > { %v2251_v14 = vpop.permute.xlu0 %2250 }
 0x2ad   : > { %3824 = vrot.lane.b32.xlu1 %v9546_v27, %s9074_s6  ;;  %v2297_v15 = vsel %vm861_vm3, %v2249_v18, %v2251_v14  ;;  %v2314_v27 = vsel %vm861_vm3, %v2287_v4, %v2289_v13 }
 0x2ae   : > { %3421 = vrot.lane.b32.xlu0 %v10016_v25, %s9072_s7  ;;  %2515 = vmatprep.subr.mxu0 %v2297_v15 }
 0x2af   : > { %2516 = vmatpush1.msra.mxu0 %v2296_v16  ;;  %v2271_v47 = vpop.permute.xlu1 %2270  ;;  %v8710_v16 = vld [vmem:[#allocation2 + $0xb0] sm:$0xff] }
 0x2b0   : > { %v2291_v48 = vpop.permute.xlu0 %2290  ;;  %8410 = vmatmul.mubr.msk.f32.vlgmr.msra.gmra.mxu0 %vm910_vm4, %v9976_v62  ;;  %v2306_v53 = vsel %vm861_vm3, %v2269_v11, %v2271_v47 }
 0x2b1   : > { %3822 = vrot.lane.b32.xlu1 %v9520_v20, %s9074_s6  ;;  %v2315_v49 = vsel %vm861_vm3, %v2289_v13, %v2291_v48  ;;  %2806 = vmatprep.mubr.f32.mxu0 %v9073_v28  ;;  %v8711_v48 = vld [vmem:[#allocation2 + $0xf0] sm:$0xff] }
 0x2b2   : > { %3826 = vrot.lane.b32.xlu0 %v9544_v26, %s9074_s6  ;;  %2582 = vmatprep.subr.mxu1 %v2315_v49 }
 0x2b3   : > { %2583 = vmatpush1.msra.mxu1 %v2314_v27  ;;  %v2676_v52 = vpop.permute.xlu1 %2675 }
 0x2b4   : > { %v2273_v46 = vpop.permute.xlu0 %2272 }
 0x2b5   : > { %3403 = vrot.lane.b32.xlu1 %v10033_v51, %s9072_s7  ;;  %v2307_v20 = vsel %vm861_vm3, %v2271_v47, %v2273_v46  ;;  %v8713_v46 = vld [vmem:[#allocation2 + $0xd0] sm:$0xff] }
 0x2b6   : > { %3401 = vrot.lane.b32.xlu0 %v9769_v57, %s9072_s7  ;;  %2584 = vmatprep.subr.mxu1 %v2307_v20 }
 0x2b7   : > { %2585 = vmatpush1.msra.mxu1 %v2306_v53  ;;  %v2674_v54 = vpop.permute.xlu1 %2673  ;;  %v8714_v53 = vld [vmem:[#allocation2 + $0x100] sm:$0xff] }
 0x2b8   : > { %v2707_v26 = vsel %vm1541_vm5, %v2674_v54, %v2676_v52  ;;  %v2678_v55 = vpop.permute.xlu0 %2677 }
 0x2b9   : > { %3808 = vrot.lane.b32.xlu1 %v9564_v32, %s9074_s6  ;;  %v2708_v56 = vsel %vm1541_vm5, %v2676_v52, %v2678_v55  ;;  %v10127_v52 = vld [vmem:[#allocation13 + $0x30] sm:$0xff] }
 0x2ba   : > { %3806 = vrot.lane.b32.xlu0 %v9554_v29, %s9074_s6  ;;  %2768 = vmatprep.subr.mxu0 %v2708_v56 }
 0x2bb   : > { %2769 = vmatpush1.msra.mxu0 %v2707_v26  ;;  %v2255_v58 = vpop.permute.xlu1 %2254 }
 0x2bc   : > { %v2253_v59 = vpop.permute.xlu0 %2252 }
 0x2bd   : > { %v2298_v19 = vsel %vm861_vm3, %v2251_v14, %v2253_v59  ;;  %3788 = vrot.lane.b32.xlu1 %v9570_v33, %s9074_s6  ;;  %v2299_v60 = vsel %vm861_vm3, %v2253_v59, %v2255_v58  ;;  %v8709_v14 = vld [vmem:[#allocation2 + $0xf8] sm:$0xff]  ;;  %v8716_v58 = vld [vmem:[#allocation2 + $0xa8] sm:$0xff]  ;;  %v8717_v59 = vld [vmem:[#allocation2 + $0x80] sm:$0xff] }
 0x2be   : > { %3804 = vrot.lane.b32.xlu0 %v9528_v22, %s9074_s6  ;;  %2586 = vmatprep.subr.mxu1 %v2299_v60  ;;  %v8718_v60 = vld [vmem:[#allocation2 + $0x90] sm:$0xff] }
 0x2bf   : > { %2587 = vmatpush1.msra.mxu1 %v2298_v19  ;;  %v2660_v32 = vpop.permute.xlu1 %2659 }
 0x2c0   : > { %v2658_v61 = vpop.permute.xlu0 %2657  ;;  %8411 = vmatmul.mubr.msk.f32.vlgmr.msra.gmra.mxu1 %vm910_vm4, %v9976_v62 }
 0x2c1   : > { %3828 = vrot.lane.b32.xlu1 %v9562_v31, %s9074_s6  ;;  %v2700_v29 = vsel %vm1541_vm5, %v2658_v61, %v2660_v32  ;;  %2877 = vmatprep.mubr.f32.mxu1 %v9073_v28 }
 0x2c2   : > { %3790 = vrot.lane.b32.xlu0 %v9580_v36, %s9074_s6  ;;  %2770 = vmatprep.subr.mxu0 %v2700_v29  ;;  %v8720_v29 = vld [vmem:[#allocation2 + $0x58] sm:$0xff] }
 0x2c3   : > { %v2640_v33 = vpop.permute.xlu1 %2639 }
 0x2c4   : > { %v2656_v22 = vpop.permute.xlu0 %2655 }
 0x2c5   : > { %v2699_v23 = vsel %vm1541_vm5, %v2656_v22, %v2658_v61  ;;  %3786 = vrot.lane.b32.xlu1 %v9536_v24, %s9074_s6  ;;  %v10072_v24 = vld [vmem:[#allocation13 + $0x28] sm:$0xff]  ;;  %v8719_v61 = vld [vmem:[#allocation2 + $0xe8] sm:$0xff] }
 0x2c6   : > { %3830 = vrot.lane.b32.xlu0 %v9572_v34, %s9074_s6  ;;  %2771 = vmatpush1.msra.mxu0 %v2699_v23  ;;  %v8721_v23 = vld [vmem:[#allocation2 + $0x28] sm:$0xff] }
 0x2c7   : > { %v2680_v31 = vpop.permute.xlu1 %2679 }
 0x2c8   : > { %v2642_v62 = vpop.permute.xlu0 %2641 }
 0x2c9   : > { %3812 = vrot.lane.b32.xlu1 %v9588_v38, %s9074_s6  ;;  %v2692_v63 = vsel %vm1541_vm5, %v2640_v33, %v2642_v62  ;;  %v2709_v38 = vsel %vm1541_vm5, %v2678_v55, %v2680_v31  ;;  %v8715_v55 = vld [vmem:[#allocation2 + $0x20] sm:$0xff] }
 0x2ca   : > { %3810 = vrot.lane.b32.xlu0 %v9578_v35, %s9074_s6  ;;  %2772 = vmatprep.subr.mxu0 %v2692_v63 }
 0x2cb   : > { %v2638_v36 = vpop.permute.xlu1 %2637 }
 0x2cc   : > { %v2691_v30 = vsel %vm1541_vm5, %v2638_v36, %v2640_v33  ;;  %v2682_v0 = vpop.permute.xlu0 %2681  ;;  %v8723_v36 = vld [vmem:[#allocation2 + $0xb8] sm:$0xff] }
 0x2cd   : > { %3794 = vrot.lane.b32.xlu1 %v9596_v40, %s9074_s6  ;;  %2773 = vmatpush1.msra.mxu0 %v2691_v30  ;;  %v2710_v34 = vsel %vm1541_vm5, %v2680_v31, %v2682_v0  ;;  %v8724_v30 = vld [vmem:[#allocation2 + $0x18] sm:$0xff] }
 0x2ce   : > { %3792 = vrot.lane.b32.xlu0 %v9586_v37, %s9074_s6  ;;  %2839 = vmatprep.subr.mxu1 %v2710_v34 }
 0x2cf   : > { %2840 = vmatpush1.msra.mxu1 %v2709_v38  ;;  %v2664_v35 = vpop.permute.xlu1 %2663  ;;  %8412 = vmatmul.mubr.msk.f32.vlgmr.msra.gmra.mxu0 %vm910_vm4, %v10072_v24 }
 0x2d0   : > { %v2662_v2 = vpop.permute.xlu0 %2661  ;;  %2948 = vmatprep.mubr.f32.mxu0 %v9073_v28 }
 0x2d1   : > { %v2701_v3 = vsel %vm1541_vm5, %v2660_v32, %v2662_v2  ;;  %3834 = vrot.lane.b32.xlu1 %v9604_v42, %s9074_s6  ;;  %v2702_v40 = vsel %vm1541_vm5, %v2662_v2, %v2664_v35  ;;  %v8726_v2 = vld [vmem:[#allocation2 + $0x30] sm:$0xff] }
 0x2d2   : > { %3832 = vrot.lane.b32.xlu0 %v9594_v39, %s9074_s6  ;;  %2841 = vmatprep.subr.mxu1 %v2702_v40  ;;  %v8727_v40 = vld [vmem:[#allocation2 + $0xc8] sm:$0xff] }
 0x2d3   : > { %2842 = vmatpush1.msra.mxu1 %v2701_v3  ;;  %v2686_v37 = vpop.permute.xlu1 %2685 }
 0x2d4   : > { %v2684_v4 = vpop.permute.xlu0 %2683 }
 0x2d5   : > { %v2711_v5 = vsel %vm1541_vm5, %v2682_v0, %v2684_v4  ;;  %3816 = vrot.lane.b32.xlu1 %v9612_v44, %s9074_s6  ;;  %v2712_v6 = vsel %vm1541_vm5, %v2684_v4, %v2686_v37  ;;  %v8728_v4 = vld [vmem:[#allocation2 + $0x98] sm:$0xff] }
 0x2d6   : > { %3814 = vrot.lane.b32.xlu0 %v9602_v41, %s9074_s6  ;;  %2910 = vmatprep.subr.mxu0 %v2712_v6 }
 0x2d7   : > { %2911 = vmatpush1.msra.mxu0 %v2711_v5  ;;  %v2646_v42 = vpop.permute.xlu1 %2645 }
 0x2d8   : > { %v2644_v7 = vpop.permute.xlu0 %2643 }
 0x2d9   : > { %v2693_v39 = vsel %vm1541_vm5, %v2642_v62, %v2644_v7  ;;  %3798 = vrot.lane.b32.xlu1 %v9618_v45, %s9074_s6  ;;  %v2694_v8 = vsel %vm1541_vm5, %v2644_v7, %v2646_v42  ;;  %v8722_v62 = vld [vmem:[#allocation2 + $0x60] sm:$0xff] }
 0x2da   : > { %3796 = vrot.lane.b32.xlu0 %v9610_v43, %s9074_s6  ;;  %2843 = vmatprep.subr.mxu1 %v2694_v8 }
 0x2db   : > { %2844 = vmatpush1.msra.mxu1 %v2693_v39  ;;  %v2668_v44 = vpop.permute.xlu1 %2667  ;;  %v10156_v39 = vld [vmem:[#allocation13 + $0x38] sm:$0xff] }
 0x2dc   : > { %v2666_v9 = vpop.permute.xlu0 %2665  ;;  %8413 = vmatmul.mubr.msk.f32.vlgmr.msra.gmra.mxu1 %vm910_vm4, %v10072_v24 }
 0x2dd   : > { %v2703_v41 = vsel %vm1541_vm5, %v2664_v35, %v2666_v9  ;;  %3838 = vrot.lane.b32.xlu1 %v10005_v1, %s9074_s6  ;;  %v2704_v10 = vsel %vm1541_vm5, %v2666_v9, %v2668_v44  ;;  %3019 = vmatprep.mubr.f32.mxu1 %v9073_v28 }
 0x2de   : > { %3836 = vrot.lane.b32.xlu0 %v9739_v17, %s9074_s6  ;;  %2912 = vmatprep.subr.mxu0 %v2704_v10 }
 0x2df   : > { %2913 = vmatpush1.msra.mxu0 %v2703_v41  ;;  %v2650_v43 = vpop.permute.xlu1 %2649 }
 0x2e0   : > { %v2648_v45 = vpop.permute.xlu0 %2647 }
 0x2e1   : > { %v2695_v18 = vsel %vm1541_vm5, %v2646_v42, %v2648_v45  ;;  %3820 = vrot.lane.b32.xlu1 %v10016_v25, %s9074_s6  ;;  %v2696_v11 = vsel %vm1541_vm5, %v2648_v45, %v2650_v43 }
 0x2e2   : > { %3818 = vrot.lane.b32.xlu0 %v9750_v50, %s9074_s6  ;;  %2914 = vmatprep.subr.mxu0 %v2696_v11 }
 0x2e3   : > { %2915 = vmatpush1.msra.mxu0 %v2695_v18  ;;  %v2690_v1 = vpop.permute.xlu1 %2689 }
 0x2e4   : > { %v2688_v21 = vpop.permute.xlu0 %2687  ;;  %3065 = vmatprep.subr.mxu0 %v8708_v12  ;;  %8414 = vmatmul.mubr.msk.f32.vlgmr.msra.gmra.mxu0 %vm910_vm4, %v10072_v24 }
 0x2e5   : > { %v2713_v13 = vsel %vm1541_vm5, %v2686_v37, %v2688_v21  ;;  %3802 = vrot.lane.b32.xlu1 %v10033_v51, %s9074_s6  ;;  %v2714_v25 = vsel %vm1541_vm5, %v2688_v21, %v2690_v1  ;;  %3066 = vmatpush1.msra.mxu0 %v8709_v14  ;;  %v8712_v51 = vld [vmem:[#allocation2 + $0x38] sm:$0xff] }
 0x2e6   : > { %3800 = vrot.lane.b32.xlu0 %v9769_v57, %s9074_s6  ;;  %2981 = vmatprep.subr.mxu1 %v2714_v25 }
 0x2e7   : > { %2982 = vmatpush1.msra.mxu1 %v2713_v13  ;;  %v2672_v15 = vpop.permute.xlu1 %2671  ;;  %3067 = vmatprep.subr.mxu0 %v8710_v16 }
 0x2e8   : > { %v2670_v47 = vpop.permute.xlu0 %2669  ;;  %3068 = vmatpush1.msra.mxu0 %v8711_v48  ;;  %3103 = vmatprep.mubr.f32.mxu0 %v9073_v28 }
 0x2e9   : > { %v2705_v49 = vsel %vm1541_vm5, %v2668_v44, %v2670_v47  ;;  %v2706_v27 = vsel %vm1541_vm5, %v2670_v47, %v2672_v15  ;;  %3069 = vmatprep.subr.mxu0 %v8712_v51 }
 0x2ea   : > { %2983 = vmatprep.subr.mxu1 %v2706_v27  ;;  %3070 = vmatpush1.msra.mxu0 %v8713_v46 }
 0x2eb   : > { %2984 = vmatpush1.msra.mxu1 %v2705_v49  ;;  %v2654_v20 = vpop.permute.xlu1 %2653  ;;  %3207 = vmatprep.subr.mxu0 %v8714_v53 }
 0x2ec   : > { %v2652_v54 = vpop.permute.xlu0 %2651  ;;  %8416 = vmatmul.mubr.msk.f32.vlgmr.msra.gmra.mxu0 %vm910_vm4, %v10127_v52 }
 0x2ed   : > { %v2697_v26 = vsel %vm1541_vm5, %v2650_v43, %v2652_v54  ;;  %3208 = vmatpush1.msra.mxu0 %v8715_v55  ;;  %v2698_v56 = vsel %vm1541_vm5, %v2652_v54, %v2654_v20  ;;  %3245 = vmatprep.mubr.f32.mxu0 %v9073_v28 }
 0x2ee   : > { %2985 = vmatprep.subr.mxu1 %v2698_v56  ;;  %3209 = vmatprep.subr.mxu0 %v8716_v58 }
 0x2ef   : > { %2986 = vmatpush1.msra.mxu1 %v2697_v26  ;;  %3210 = vmatpush1.msra.mxu0 %v8717_v59  ;;  %v3428_v19 = vpop.permute.xlu1 %3427 }
 0x2f0   : > { %3211 = vmatprep.subr.mxu0 %v8718_v60  ;;  %v3426_v32 = vpop.permute.xlu0 %3425  ;;  %3136 = vmatprep.subr.mxu1 %v8719_v61 }
 0x2f1   : > { %3212 = vmatpush1.msra.mxu0 %v8720_v29  ;;  %v3458_v33 = vsel %vm861_vm3, %v3426_v32, %v3428_v19  ;;  %8415 = vmatmul.mubr.msk.f32.vlgmr.msra.gmra.mxu1 %vm910_vm4, %v10072_v24  ;;  %v8725_v24 = vld [vmem:[#allocation2 + $0xe0] sm:$0xff] }
 0x2f2   : > { %3518 = vmatprep.subr.mxu0 %v3458_v33  ;;  %8418 = vmatmul.mubr.msk.f32.vlgmr.msra.gmra.mxu0 %vm910_vm4, %v10127_v52 }
 0x2f3   : > { %v3408_v22 = vpop.permute.xlu1 %3407  ;;  %3137 = vmatpush1.msra.mxu1 %v8721_v23  ;;  %3174 = vmatprep.mubr.f32.mxu1 %v9073_v28 }
 0x2f4   : > { %v3424_v31 = vpop.permute.xlu0 %3423  ;;  %3138 = vmatprep.subr.mxu1 %v8722_v62  ;;  %3556 = vmatprep.mubr.f32.mxu0 %v9073_v28 }
 0x2f5   : > { %v3457_v63 = vsel %vm861_vm3, %v3424_v31, %v3426_v32  ;;  %3139 = vmatpush1.msra.mxu1 %v8723_v36 }
 0x2f6   : > { %3519 = vmatpush1.msra.mxu0 %v3457_v63  ;;  %3140 = vmatprep.subr.mxu1 %v8724_v30 }
 0x2f7   : > { %v3406_v0 = vpop.permute.xlu1 %3405  ;;  %3141 = vmatpush1.msra.mxu1 %v8725_v24 }
 0x2f8   : > { %v3449_v34 = vsel %vm861_vm3, %v3406_v0, %v3408_v22  ;;  %v3410_v38 = vpop.permute.xlu0 %3409  ;;  %3278 = vmatprep.subr.mxu1 %v9739_v17  ;;  %8417 = vmatmul.mubr.msk.f32.vlgmr.msra.gmra.mxu1 %vm910_vm4, %v10127_v52 }
 0x2f9   : > { %v3450_v35 = vsel %vm861_vm3, %v3408_v22, %v3410_v38  ;;  %3279 = vmatpush1.msra.mxu1 %v8726_v2  ;;  %3316 = vmatprep.mubr.f32.mxu1 %v9073_v28 }
 0x2fa   : > { %3520 = vmatprep.subr.mxu0 %v3450_v35  ;;  %3280 = vmatprep.subr.mxu1 %v9750_v50 }
 0x2fb   : > { %3521 = vmatpush1.msra.mxu0 %v3449_v34  ;;  %v3392_v3 = vpop.permute.xlu1 %3391  ;;  %3281 = vmatpush1.msra.mxu1 %v8727_v40  ;;  %v3785_v34 = vld [vmem:[#allocation13 + $0x40] sm:$0xff] }
 0x2fc   : > { %v3390_v37 = vpop.permute.xlu0 %3389  ;;  %3282 = vmatprep.subr.mxu1 %v9769_v57 }
 0x2fd   : > { %v3442_v17 = vsel %vm861_vm3, %v3390_v37, %v3392_v3  ;;  %3283 = vmatpush1.msra.mxu1 %v8728_v4 }
 0x2fe   : > { %3522 = vmatprep.subr.mxu0 %v3442_v17  ;;  %8419 = vmatmul.mubr.msk.f32.vlgmr.msra.gmra.mxu1 %vm910_vm4, %v10127_v52 }
 0x2ff   : > { %v3432_v5 = vpop.permute.xlu1 %3431  ;;  %3627 = vmatprep.mubr.f32.mxu1 %v9073_v28 }
 0x300   : > { %v3430_v6 = vpop.permute.xlu0 %3429 }
 0x301   : > { %v3459_v50 = vsel %vm861_vm3, %v3428_v19, %v3430_v6  ;;  %v3460_v42 = vsel %vm861_vm3, %v3430_v6, %v3432_v5 }
 0x302   : > { %3589 = vmatprep.subr.mxu1 %v3460_v42 }
 0x303   : > { %3590 = vmatpush1.msra.mxu1 %v3459_v50  ;;  %v3412_v7 = vpop.permute.xlu1 %3411 }
 0x304   : > { %v3388_v57 = vpop.permute.xlu0 %3387  ;;  %v3451_v10 = vsel %vm861_vm3, %v3410_v38, %v3412_v7 }
 0x305   : > { %v3441_v8 = vsel %vm861_vm3, %v3388_v57, %v3390_v37 }
 0x306   : > { %3523 = vmatpush1.msra.mxu0 %v3441_v8 }
 0x307   : > { %8420 = vmatmul.mubr.msk.f32.vlgmr.msra.gmra.mxu0 %vm910_vm4, %v10156_v39  ;;  %v3434_v44 = vpop.permute.xlu1 %3433 }
 0x308   : > { %v3414_v9 = vpop.permute.xlu0 %3413  ;;  %3698 = vmatprep.mubr.f32.mxu0 %v9073_v28  ;;  %v3461_v11 = vsel %vm861_vm3, %v3432_v5, %v3434_v44 }
 0x309   : > { %v3452_v41 = vsel %vm861_vm3, %v3412_v7, %v3414_v9 }
 0x30a   : > { %3591 = vmatprep.subr.mxu1 %v3452_v41 }
 0x30b   : > { %3592 = vmatpush1.msra.mxu1 %v3451_v10  ;;  %v3394_v43 = vpop.permute.xlu1 %3393 }
 0x30c   : > { %v3436_v45 = vpop.permute.xlu0 %3435  ;;  %v3443_v13 = vsel %vm861_vm3, %v3392_v3, %v3394_v43 }
 0x30d   : > { %v3462_v18 = vsel %vm861_vm3, %v3434_v44, %v3436_v45 }
 0x30e   : > { %3660 = vmatprep.subr.mxu0 %v3462_v18 }
 0x30f   : > { %3661 = vmatpush1.msra.mxu0 %v3461_v11  ;;  %v3416_v1 = vpop.permute.xlu1 %3415 }
 0x310   : > { %v3396_v21 = vpop.permute.xlu0 %3395  ;;  %v3453_v16 = vsel %vm861_vm3, %v3414_v9, %v3416_v1 }
 0x311   : > { %v3444_v12 = vsel %vm861_vm3, %v3394_v43, %v3396_v21 }
 0x312   : > { %3593 = vmatprep.subr.mxu1 %v3444_v12 }
 0x313   : > { %3594 = vmatpush1.msra.mxu1 %v3443_v13  ;;  %v3398_v25 = vpop.permute.xlu1 %3397 }
 0x314   : > { %8421 = vmatmul.mubr.msk.f32.vlgmr.msra.gmra.mxu1 %vm910_vm4, %v10156_v39  ;;  %v3418_v14 = vpop.permute.xlu0 %3417  ;;  %v3445_v27 = vsel %vm861_vm3, %v3396_v21, %v3398_v25 }
 0x315   : > { %v3454_v15 = vsel %vm861_vm3, %v3416_v1, %v3418_v14  ;;  %3769 = vmatprep.mubr.f32.mxu1 %v9073_v28 }
 0x316   : > { %3662 = vmatprep.subr.mxu0 %v3454_v15 }
 0x317   : > { %3663 = vmatpush1.msra.mxu0 %v3453_v16  ;;  %v3438_v47 = vpop.permute.xlu1 %3437 }
 0x318   : > { %v3400_v48 = vpop.permute.xlu0 %3399  ;;  %v3463_v20 = vsel %vm861_vm3, %v3436_v45, %v3438_v47 }
 0x319   : > { %v3446_v49 = vsel %vm861_vm3, %v3398_v25, %v3400_v48 }
 0x31a   : > { %3664 = vmatprep.subr.mxu0 %v3446_v49 }
 0x31b   : > { %3665 = vmatpush1.msra.mxu0 %v3445_v27  ;;  %v3420_v51 = vpop.permute.xlu1 %3419  ;;  %v10217_v27 = vpop.f32.mrf.mxu0 }
 0x31c   : > { %8422 = vmatmul.mubr.msk.f32.vlgmr.msra.gmra.mxu0 %vm910_vm4, %v10156_v39  ;;  %v3440_v52 = vpop.permute.xlu0 %3439  ;;  %v3455_v55 = vsel %vm861_vm3, %v3418_v14, %v3420_v51 }
 0x31d   : > { %v3464_v46 = vsel %vm861_vm3, %v3438_v47, %v3440_v52  ;;  %3955 = vmatprep.mubr.f32.mxu0 %v9073_v28  ;;  %v10221_v52 = vpop.f32.mrf.mxu1 }
 0x31e   : > { %3731 = vmatprep.subr.mxu1 %v3464_v46 }
 0x31f   : > { %3732 = vmatpush1.msra.mxu1 %v3463_v20  ;;  %v3825_v53 = vpop.permute.xlu1 %3824  ;;  %v10225_v20 = vpop.f32.mrf.mxu1 }
 0x320   : > { %v3422_v54 = vpop.permute.xlu0 %3421 }
 0x321   : > { %v3456_v26 = vsel %vm861_vm3, %v3420_v51, %v3422_v54  ;;  %v10219_v51 = vpop.f32.mrf.mxu0  ;;  %v10229_v54 = vpop.f32.mrf.mxu1 }
 0x322   : > { %3733 = vmatprep.subr.mxu1 %v3456_v26 }
 0x323   : > { %3734 = vmatpush1.msra.mxu1 %v3455_v55  ;;  %v3823_v56 = vpop.permute.xlu1 %3822  ;;  %v10223_v46 = vpop.f32.mrf.mxu0 }
 0x324   : > { %v3856_v58 = vsel %vm1541_vm5, %v3823_v56, %v3825_v53  ;;  %v3827_v59 = vpop.permute.xlu0 %3826  ;;  %v10231_v55 = vpop.f32.mrf.mxu1 }
 0x325   : > { %v3857_v19 = vsel %vm1541_vm5, %v3825_v53, %v3827_v59  ;;  %v10227_v53 = vpop.f32.mrf.mxu0 }
 0x326   : > { %3917 = vmatprep.subr.mxu0 %v3857_v19 }
 0x327   : > { %3918 = vmatpush1.msra.mxu0 %v3856_v58  ;;  %v3404_v60 = vpop.permute.xlu1 %3403  ;;  %v1267_v26 = vpop.f32.mrf.mxu0 }
 0x328   : > { %v3402_v32 = vpop.permute.xlu0 %3401  ;;  %v10233_v58 = vpop.f32.mrf.mxu1 }
 0x329   : > { %v3447_v61 = vsel %vm861_vm3, %v3400_v48, %v3402_v32  ;;  %v3448_v29 = vsel %vm861_vm3, %v3402_v32, %v3404_v60  ;;  %v1269_v56 = vpop.f32.mrf.mxu0 }
 0x32a   : > { %3735 = vmatprep.subr.mxu1 %v3448_v29  ;;  %v10235_v19 = vpop.f32.mrf.mxu1 }
 0x32b   : > { %3736 = vmatpush1.msra.mxu1 %v3447_v61  ;;  %v3809_v33 = vpop.permute.xlu1 %3808 }
 0x32c   : > { %8423 = vmatmul.mubr.msk.f32.vlgmr.msra.gmra.mxu1 %vm910_vm4, %v10156_v39  ;;  %v3807_v22 = vpop.permute.xlu0 %3806  ;;  %v10237_v32 = vpop.f32.mrf.mxu1 }
 0x32d   : > { %v3849_v23 = vsel %vm1541_vm5, %v3807_v22, %v3809_v33  ;;  %4026 = vmatprep.mubr.f32.mxu1 %v9073_v28 }
 0x32e   : > { %3919 = vmatprep.subr.mxu0 %v3849_v23  ;;  %v10241_v29 = vpop.f32.mrf.mxu1 }
 0x32f   : > { %v3789_v31 = vpop.permute.xlu1 %3788 }
 0x330   : > { %v3805_v62 = vpop.permute.xlu0 %3804 }
 0x331   : > { %v3848_v63 = vsel %vm1541_vm5, %v3805_v62, %v3807_v22  ;;  %v10245_v22 = vpop.f32.mrf.mxu1 }
 0x332   : > { %3920 = vmatpush1.msra.mxu0 %v3848_v63 }
 0x333   : > { %v3829_v36 = vpop.permute.xlu1 %3828 }
 0x334   : > { %v3791_v30 = vpop.permute.xlu0 %3790  ;;  %v3858_v3 = vsel %vm1541_vm5, %v3827_v59, %v3829_v36  ;;  %v1409_v59 = vpop.f32.mrf.mxu0 }
 0x335   : > { %v3841_v0 = vsel %vm1541_vm5, %v3789_v31, %v3791_v30 }
 0x336   : > { %3921 = vmatprep.subr.mxu0 %v3841_v0  ;;  %v1411_v60 = vpop.f32.mrf.mxu0 }
 0x337   : > { %v3787_v24 = vpop.permute.xlu1 %3786 }
 0x338   : > { %v3840_v38 = vsel %vm1541_vm5, %v3787_v24, %v3789_v31  ;;  %v3831_v35 = vpop.permute.xlu0 %3830  ;;  %v10239_v61 = vpop.f32.mrf.mxu0 }
 0x339   : > { %3922 = vmatpush1.msra.mxu0 %v3840_v38  ;;  %v3859_v2 = vsel %vm1541_vm5, %v3829_v36, %v3831_v35  ;;  %v10249_v31 = vpop.f32.mrf.mxu1 }
 0x33a   : > { %3988 = vmatprep.subr.mxu1 %v3859_v2  ;;  %8424 = vmatmul.mubr.msk.f32.vlgmr.msra.gmra.mxu0 %vm910_vm4, %v3785_v34 }
 0x33b   : > { %3989 = vmatpush1.msra.mxu1 %v3858_v3  ;;  %v3813_v40 = vpop.permute.xlu1 %3812  ;;  %4097 = vmatprep.mubr.f32.mxu0 %v9073_v28 }
 0x33c   : > { %v3811_v37 = vpop.permute.xlu0 %3810 }
 0x33d   : > { %v3850_v17 = vsel %vm1541_vm5, %v3809_v33, %v3811_v37  ;;  %v3851_v4 = vsel %vm1541_vm5, %v3811_v37, %v3813_v40  ;;  %v10243_v33 = vpop.f32.mrf.mxu0 }
 0x33e   : > { %3990 = vmatprep.subr.mxu1 %v3851_v4 }
 0x33f   : > { %3991 = vmatpush1.msra.mxu1 %v3850_v17  ;;  %v3795_v5 = vpop.permute.xlu1 %3794  ;;  %v10247_v23 = vpop.f32.mrf.mxu0 }
 0x340   : > { %v3793_v6 = vpop.permute.xlu0 %3792 }
 0x341   : > { %v3842_v50 = vsel %vm1541_vm5, %v3791_v30, %v3793_v6  ;;  %v3843_v42 = vsel %vm1541_vm5, %v3793_v6, %v3795_v5  ;;  %v10251_v62 = vpop.f32.mrf.mxu0 }
 0x342   : > { %3992 = vmatprep.subr.mxu1 %v3843_v42  ;;  %v4183_v42 = vlaneseq }
 0x343   : > { %3993 = vmatpush1.msra.mxu1 %v3842_v50  ;;  %v3835_v7 = vpop.permute.xlu1 %3834  ;;  %v10255_v36 = vpop.f32.mrf.mxu0 }
 0x344   : > { %8425 = vmatmul.mubr.msk.f32.vlgmr.msra.gmra.mxu1 %vm910_vm4, %v3785_v34  ;;  %v3833_v57 = vpop.permute.xlu0 %3832 }
 0x345   : > { %v3860_v39 = vsel %vm1541_vm5, %v3831_v35, %v3833_v57  ;;  %v3861_v8 = vsel %vm1541_vm5, %v3833_v57, %v3835_v7  ;;  %4168 = vmatprep.mubr.f32.mxu1 %v9073_v28  ;;  %v10259_v0 = vpop.f32.mrf.mxu0 }
 0x346   : > { %4059 = vmatprep.subr.mxu0 %v3861_v8 }
 0x347   : > { %4060 = vmatpush1.msra.mxu0 %v3860_v39  ;;  %v3817_v44 = vpop.permute.xlu1 %3816  ;;  %v10291_v39 = vand.u32 127, %v4183_v42 }
 0x348   : > { %v3815_v9 = vpop.permute.xlu0 %3814  ;;  %v10253_v63 = vpop.f32.mrf.mxu1 }
 0x349   : > { %v3852_v41 = vsel %vm1541_vm5, %v3813_v40, %v3815_v9  ;;  %v3853_v10 = vsel %vm1541_vm5, %v3815_v9, %v3817_v44  ;;  %v4185_v9 = vadd.s32 128, %v10291_v39  ;;  %vm4288_vm14 = vcmp.lt.s32.totalorder %v10291_v39, 80 }
 0x34a   : > { %4061 = vmatprep.subr.mxu0 %v3853_v10  ;;  %v10257_v30 = vpop.f32.mrf.mxu1  ;;  %v4186_v10 = vadd.s32 256, %v10291_v39 }
 0x34b   : > { %4062 = vmatpush1.msra.mxu0 %v3852_v41  ;;  %v3799_v43 = vpop.permute.xlu1 %3798 }
 0x34c   : > { %v3797_v45 = vpop.permute.xlu0 %3796 }
 0x34d   : > { %v3844_v18 = vsel %vm1541_vm5, %v3795_v5, %v3797_v45  ;;  %v3845_v11 = vsel %vm1541_vm5, %v3797_v45, %v3799_v43  ;;  %v10303_v45 = vand.u32 127, %v4185_v9 }
 0x34e   : > { %4063 = vmatprep.subr.mxu0 %v3845_v11 }
 0x34f   : > { %4064 = vmatpush1.msra.mxu0 %v3844_v18  ;;  %v3839_v1 = vpop.permute.xlu1 %3838  ;;  %vm4289_vm3 = vcmp.lt.s32.totalorder %v10303_v45, 80 }
 0x350   : > { %8426 = vmatmul.mubr.msk.f32.vlgmr.msra.gmra.mxu0 %vm910_vm4, %v3785_v34  ;;  %v3837_v28 = vpop.permute.xlu0 %3836  ;;  %v10261_v24 = vpop.f32.mrf.mxu1 }
 0x351   : > { %v3862_v21 = vsel %vm1541_vm5, %v3835_v7, %v3837_v28  ;;  %v3863_v12 = vsel %vm1541_vm5, %v3837_v28, %v3839_v1  ;;  %v10308_v11 = vmul.u32.u64.low 3435973837, %v10291_v39  ;;  %v10309_v1 = vmul.u32.u64.high 3435973837, %v10291_v39, %v10308_v11 }
 0x352   : > { %4130 = vmatprep.subr.mxu1 %v3863_v12  ;;  %v10265_v38 = vpop.f32.mrf.mxu1  ;;  %v4187_v28 = vadd.s32 384, %v10291_v39 }
 0x353   : > { %4131 = vmatpush1.msra.mxu1 %v3862_v21  ;;  %v3821_v13 = vpop.permute.xlu1 %3820  ;;  %v10312_v21 = vand.u32 127, %v4186_v10  ;;  %v4302_v10 = vshrl.u32 %v10309_v1, 3 }
 0x354   : > { %v3819_v25 = vpop.permute.xlu0 %3818 }
 0x355   : > { %v3854_v14 = vsel %vm1541_vm5, %v3817_v44, %v3819_v25  ;;  %v3855_v15 = vsel %vm1541_vm5, %v3819_v25, %v3821_v13  ;;  %v10317_v13 = vmul.u32.u64.low 3435973837, %v10303_v45  ;;  %v10318_v25 = vmul.u32.u64.high 3435973837, %v10303_v45, %v10317_v13 }
 0x356   : > { %4132 = vmatprep.subr.mxu1 %v3855_v15 }
 0x357   : > { %4133 = vmatpush1.msra.mxu1 %v3854_v14  ;;  %v3803_v16 = vpop.permute.xlu1 %3802  ;;  %v10269_v2 = vpop.f32.mrf.mxu1  ;;  %v4188_v14 = vadd.s32 512, %v10291_v39  ;;  %v4313_v1 = vshrl.u32 %v10318_v25, 3 }
 0x358   : > { %v3801_v47 = vpop.permute.xlu0 %3800 }
 0x359   : > { %v3846_v48 = vsel %vm1541_vm5, %v3799_v43, %v3801_v47  ;;  %v3847_v49 = vsel %vm1541_vm5, %v3801_v47, %v3803_v16  ;;  %v10273_v40 = vpop.f32.mrf.mxu1  ;;  %v10323_v16 = vand.u32 127, %v4187_v28  ;;  %v10331_v42 = vand.u32 127, %v4188_v14 }
 0x35a   : > { %4134 = vmatprep.subr.mxu1 %v3847_v49  ;;  %11672 = vst [vmem:[#allocation43_spill] sm:$0xff] %v10273_v40  ;;  %v1268_v28 = vadd.f32 %v1267_v26, %v10217_v27  ;;  %v1339_v27 = vadd.f32 %v10233_v58, %v10221_v52  ;;  %v1481_v52 = vadd.f32 %v10237_v32, %v10229_v54 }
 0x35b   : > { %4135 = vmatpush1.msra.mxu1 %v3846_v48  ;;  %v10326_v47 = vmul.u32.u64.low 3435973837, %v10312_v21  ;;  %v10327_v48 = vmul.u32.u64.high 3435973837, %v10312_v21, %v10326_v47  ;;  %v10337_v11 = vmul.u32.u64.low 3435973837, %v10323_v16  ;;  %v10338_v13 = vmul.u32.u64.high 3435973837, %v10323_v16, %v10337_v11 }
 0x35c   : > { %8427 = vmatmul.mubr.msk.f32.vlgmr.msra.gmra.mxu1 %vm910_vm4, %v3785_v34  ;;  %v10263_v34 = vpop.f32.mrf.mxu0  ;;  %v1410_v47 = vadd.f32 %v1409_v59, %v10223_v46  ;;  %v4303_v11 = vmul.u32 10, %v4302_v10  ;;  %v1877_v26 = vadd.f32 %v10239_v61, %v1268_v28  ;;  %v1483_v54 = vadd.f32 %v10241_v29, %v10231_v55 }
 0x35d   : > { %v4324_v46 = vshrl.u32 %v10327_v48, 3  ;;  %v1879_v32 = vadd.f32 %v10245_v22, %v1339_v27 }
 0x35e   : > { %v10267_v35 = vpop.f32.mrf.mxu0  ;;  %v1881_v58 = vadd.f32 %v10247_v23, %v1410_v47 }
 0x360   : > { %v10271_v3 = vpop.f32.mrf.mxu0 }
 0x362   : > { %v10275_v37 = vpop.f32.mrf.mxu0 }
 0x368   : > { %v10277_v17 = vpop.f32.mrf.mxu1 }
 0x36a   : > { %v10281_v5 = vpop.f32.mrf.mxu1 }
 0x370   : > { %v10279_v4 = vpop.f32.mrf.mxu0 }
 0x372   : > { %v10283_v6 = vpop.f32.mrf.mxu0 }
 0x380   : > { %v10285_v50 = vpop.f32.mrf.mxu1 }
 0x381   : > { %11673 = vst [vmem:[#allocation44_spill] sm:$0xff] %v10285_v50 }
 0x382   : > { %v10289_v57 = vpop.f32.mrf.mxu1 }
 0x383   : > { %11674 = vst [vmem:[#allocation45_spill] sm:$0xff] %v10289_v57  ;;  %v1270_v57 = vadd.f32 %v1269_v56, %v10219_v51  ;;  %v1341_v51 = vadd.f32 %v10235_v19, %v10225_v20  ;;  %v4314_v19 = vmul.u32 10, %v4313_v1  ;;  %v2178_v1 = vadd.f32 %v10263_v34, %v1881_v58 }
 0x385   : > { %v1880_v23 = vadd.f32 %v10249_v31, %v1341_v51 }
 0x38f   : > { %v10287_v7 = vpop.f32.mrf.mxu0 }
 0x391   : > { %v10293_v8 = vpop.f32.mrf.mxu0 }
 0x39c   : > { %v10295_v44 = vpop.f32.mrf.mxu1 }
 0x39e   : > { %v10301_v43 = vpop.f32.mrf.mxu1 }
 0x3a4   : > { %v10298_v41 = vpop.f32.mrf.mxu0 }
 0x3a5   : > { %11675 = vst [vmem:[#allocation46_spill] sm:$0xff] %v10298_v41 }
 0x3a6   : > { %v10305_v18 = vpop.f32.mrf.mxu0 }
 0x3a7   : > { %11676 = vst [vmem:[#allocation47_spill] sm:$0xff] %v10305_v18  ;;  %v10351_v18 = vmul.u32.u64.low 3435973837, %v10331_v42  ;;  %v10352_v40 = vmul.u32.u64.high 3435973837, %v10331_v42, %v10351_v18 }
 0x3a8   : > { %v4191_v18 = vadd.s32 896, %v10291_v39 }
 0x3a9   : > { %v4346_v55 = vshrl.u32 %v10352_v40, 3 }
 0x3aa   : > { %v10393_v47 = vand.u32 127, %v4191_v18  ;;  %v1884_v18 = vadd.f32 %v10257_v30, %v1483_v54 }
 0x3ac   : > { %v10321_v15 = vpop.f32.mrf.mxu0 }
 0x3ae   : > { %v10333_v9 = vpop.f32.mrf.mxu0 }
 0x3b1   : > { %v10314_v12 = vpop.f32.mrf.mxu1 }
 0x3b2   : > { %11677 = vst [vmem:[#allocation48_spill] sm:$0xff] %v10314_v12  ;;  %v4189_v12 = vadd.s32 640, %v10291_v39  ;;  %v10346_v14 = vpop.f32.mrf.mxu0 }
 0x3b3   : > { %v10329_v49 = vpop.f32.mrf.mxu1 }
 0x3b4   : > { %11678 = vst [vmem:[#allocation49_spill] sm:$0xff] %v10329_v49  ;;  %v1412_v49 = vadd.f32 %v1411_v60, %v10227_v53  ;;  %v10354_v41 = vand.u32 127, %v4189_v12  ;;  %v1878_v53 = vadd.f32 %v10243_v33, %v1270_v57  ;;  %v10365_v59 = vpop.f32.mrf.mxu0  ;;  %v4190_v60 = vadd.s32 768, %v10291_v39 }
 0x3b5   : > { %v10378_v33 = vsub.s32 %v10291_v39, %v4303_v11  ;;  %v4335_v57 = vshrl.u32 %v10338_v13, 3  ;;  %v1883_v13 = vadd.f32 %v10253_v63, %v1481_v52  ;;  %v10398_v11 = vsub.s32 %v10303_v45, %v4314_v19 }
 0x3b6   : > { %v1882_v20 = vadd.f32 %v10251_v62, %v1412_v49  ;;  %v10382_v25 = vmul.u32.u64.low 3435973837, %v10354_v41  ;;  %v10383_v48 = vmul.u32.u64.high 3435973837, %v10354_v41, %v10382_v25  ;;  %v4325_v62 = vmul.u32 10, %v4324_v46 }
 0x3b7   : > { %v2174_v49 = vadd.f32 %v10255_v36, %v1877_v26  ;;  %v2175_v10 = vadd.f32 %v10259_v0, %v1878_v53  ;;  %v10391_v28 = vand.u32 127, %v4190_v60  ;;  %vm4384_vm6 = vcmp.ne.s32.totalorder %v10378_v33, 0 }
 0x3b8   : > { %v10344_v50 = vpop.f32.mrf.mxu1  ;;  %v2179_v29 = vadd.f32 %v10267_v35, %v1882_v20  ;;  %vm4392_vm7 = vcmp.lt.s32.totalorder %v10378_v33, 0  ;;  %v4336_v36 = vmul.u32 10, %v4335_v57  ;;  %v2176_v63 = vadd.f32 %v10261_v24, %v1879_v32 }
 0x3b9   : > { %v2177_v0 = vadd.f32 %v10265_v38, %v1880_v23  ;;  %v4408_v34 = vadd.s32 10, %v10378_v33  ;;  %v4326_v27 = vsub.s32 %v10312_v21, %v4325_v62  ;;  %v2628_v24 = vadd.f32 %v10275_v37, %v2175_v10  ;;  %vm10425_vm8 = vmand %vm4392_vm7, %vm4384_vm6 }
 0x3ba   : > { %v10363_v56 = vpop.f32.mrf.mxu1  ;;  %v10417_v51 = vmul.u32.u64.low 3435973837, %v10391_v28  ;;  %v10418_v46 = vmul.u32.u64.high 3435973837, %v10391_v28, %v10417_v51  ;;  %v10421_v26 = vmul.u32.u64.low 3435973837, %v10393_v47  ;;  %v10422_v53 = vmul.u32.u64.high 3435973837, %v10393_v47, %v10421_v26 }
 0x3bb   : > { %vm4385_vm9 = vcmp.ne.s32.totalorder %v10398_v11, 0  ;;  %vm4393_vm10 = vcmp.lt.s32.totalorder %v10398_v11, 0  ;;  %v4347_v60 = vmul.u32 10, %v4346_v55  ;;  %v2627_v52 = vadd.f32 %v10271_v3, %v2174_v49 }
 0x3bc   : > { %v10434_v58 = vsub.s32 %v10323_v16, %v4336_v36  ;;  %v4357_v20 = vshrl.u32 %v10383_v48, 3  ;;  %v2629_v37 = vadd.f32 %v10277_v17, %v2176_v63  ;;  %v4409_v19 = vadd.s32 10, %v10398_v11  ;;  %vm10455_vm13 = vmand %vm4393_vm10, %vm4385_vm9 }
 0x3bd   : > { %vm4386_vm11 = vcmp.ne.s32.totalorder %v4326_v27, 0  ;;  %vm4394_vm12 = vcmp.lt.s32.totalorder %v4326_v27, 0  ;;  %v10440_v57 = vadd.f32 %v10269_v2, %v1883_v13  ;;  %v2631_v25 = vadd.f32 %v10279_v4, %v2178_v1 }
 0x3be   : > { %v10373_v12 = vpop.f32.mrf.mxu1  ;;  %v2630_v30 = vadd.f32 %v10281_v5, %v2177_v0  ;;  %v4416_v48 = vsel %vm10425_vm8, %v4408_v34, %v10378_v33  ;;  %v2632_v2 = vadd.f32 %v10283_v6, %v2179_v29  ;;  %v3027_v4 = vadd.f32 %v10293_v8, %v2628_v24  ;;  %vm10469_vm15 = vmand %vm4394_vm12, %vm4386_vm11  ;;  %v11716_v24 = vld [vmem:[#allocation48_spill] sm:$0xff] }
 0x3bf   : > { %v4410_v5 = vadd.s32 10, %v4326_v27  ;;  %v10462_v32 = vsub.s32 %v10331_v42, %v4347_v60  ;;  %vm4387_vm0 = vcmp.ne.s32.totalorder %v10434_v58, 0  ;;  %vm4395_vm1 = vcmp.lt.s32.totalorder %v10434_v58, 0 }
 0x3c0   : > { %v10402_v22 = vpop.f32.mrf.mxu1  ;;  %v4358_v6 = vmul.u32 10, %v4357_v20  ;;  %v3026_v8 = vadd.f32 %v10287_v7, %v2627_v52  ;;  %v3028_v49 = vadd.f32 %v10295_v44, %v2629_v37  ;;  %vm10477_vm2 = vcmp.lt.s32.totalorder %v4416_v48, 8  ;;  %vm10491_vm4 = vmand %vm4395_vm1, %vm4387_vm0 }
 0x3c1   : > { %v4417_v13 = vsel %vm10455_vm13, %v4409_v19, %v10398_v11  ;;  %v4411_v1 = vadd.s32 10, %v10434_v58  ;;  %v4368_v55 = vshrl.u32 %v10418_v46, 3  ;;  %v4379_v29 = vshrl.u32 %v10422_v53, 3  ;;  %v11696_v19 = vld [vmem:[#allocation43_spill] sm:$0xff]  ;;  %vm10545_vm0 = vmand %vm4288_vm14, %vm10477_vm2 }
 0x3c2   : > { %v3324_v7 = vadd.f32 %v10333_v9, %v3027_v4  ;;  %v4418_v44 = vsel %vm10469_vm15, %v4410_v5, %v4326_v27  ;;  %vm4388_vm5 = vcmp.ne.s32.totalorder %v10462_v32, 0  ;;  %vm4396_vm6 = vcmp.lt.s32.totalorder %v10462_v32, 0 }
 0x3c3   : > { %vm10499_vm7 = vcmp.lt.s32.totalorder %v4417_v13, 8  ;;  %vm4290_vm8 = vcmp.lt.s32.totalorder %v10312_v21, 80  ;;  %v4412_v9 = vadd.s32 10, %v10462_v32  ;;  %v10506_v34 = vsub.s32 %v10354_v41, %v4358_v6  ;;  %vm10521_vm10 = vmand %vm4396_vm6, %vm4388_vm5  ;;  %v11709_v13 = vld [vmem:[#allocation45_spill] sm:$0xff] }
 0x3c4   : > { %v3029_v27 = vadd.f32 %v10301_v43, %v2630_v30  ;;  %v3323_v51 = vadd.f32 %v10321_v15, %v3026_v8  ;;  %v3325_v46 = vadd.f32 %v10344_v50, %v3028_v49  ;;  %vm10512_vm9 = vcmp.lt.s32.totalorder %v4418_v44, 8  ;;  %v11695_v50 = vld [vmem:[#allocation46_spill] sm:$0xff]  ;;  %vm10533_vm11 = vmand %vm4289_vm3, %vm10499_vm7  ;;  %v11708_v49 = vld [vmem:[#allocation44_spill] sm:$0xff] }
 0x3c5   : > { %v4419_v38 = vsel %vm10491_vm4, %v4411_v1, %v10434_v58  ;;  %v4369_v43 = vmul.u32 10, %v4368_v55  ;;  %v4380_v15 = vmul.u32 10, %v4379_v29  ;;  %v3030_v52 = vadd.f32 %v11695_v50, %v2631_v25  ;;  %vm10556_vm1 = vmand %vm4290_vm8, %vm10512_vm9  ;;  %v4464_v8 = vld [vmem:[#allocation3] sm:$0xff] }
 0x3c6   : > { %v2181_v30 = vadd.f32 %v11696_v19, %v1884_v18  ;;  %vm4291_vm12 = vcmp.lt.s32.totalorder %v10323_v16, 80  ;;  %vm4389_vm13 = vcmp.ne.s32.totalorder %v10506_v34, 0  ;;  %vm4397_vm15 = vcmp.lt.s32.totalorder %v10506_v34, 0 }
 0x3c7   : > { %v10375_v61 = vpop.f32.mrf.mxu0  ;;  %v4420_v25 = vsel %vm10521_vm10, %v4412_v9, %v10462_v32  ;;  %vm10560_vm3 = vcmp.lt.s32.totalorder %v4419_v38, 8  ;;  %v4413_v17 = vadd.s32 10, %v10506_v34  ;;  %v4370_v4 = vsub.s32 %v10391_v28, %v4369_v43  ;;  %v11705_v32 = vld [vmem:[#allocation47_spill] sm:$0xff]  ;;  %vm10576_vm14 = vmand %vm4397_vm15, %vm4389_vm13 }
 0x3c8   : > { %v4381_v5 = vsub.s32 %v10393_v47, %v4380_v15  ;;  %v3327_v33 = vadd.f32 %v10346_v14, %v3030_v52  ;;  %v2633_v10 = vadd.f32 %v11708_v49, %v10440_v57  ;;  %vm4292_vm2 = vcmp.lt.s32.totalorder %v10331_v42, 80  ;;  %vm10597_vm5 = vmand %vm4291_vm12, %vm10560_vm3  ;;  %v11719_v52 = vld [vmem:[#allocation49_spill] sm:$0xff] }
 0x3c9   : > { %v10404_v31 = vpop.f32.mrf.mxu0  ;;  %vm10584_vm4 = vcmp.lt.s32.totalorder %v4420_v25, 8  ;;  %vm4390_vm6 = vcmp.ne.s32.totalorder %v4370_v4, 0  ;;  %vm4398_vm7 = vcmp.lt.s32.totalorder %v4370_v4, 0  ;;  %v4414_v0 = vadd.s32 10, %v4370_v4 }
 0x3ca   : > { %v3777_v26 = vadd.f32 %v10404_v31, %v3324_v7  ;;  %v3776_v31 = vadd.f32 %v10375_v61, %v3323_v51  ;;  %v3326_v61 = vadd.f32 %v10363_v56, %v3029_v27  ;;  %vm4391_vm8 = vcmp.ne.s32.totalorder %v4381_v5, 0  ;;  %vm4436_vm9 = vmand %vm4292_vm2, %vm10584_vm4 }
 0x3cb   : > { %vm4399_vm10 = vcmp.lt.s32.totalorder %v4381_v5, 0  ;;  %vm10615_vm13 = vmand %vm4398_vm7, %vm4390_vm6  ;;  %v4415_v42 = vadd.s32 10, %v4381_v5  ;;  %v3032_v38 = vadd.f32 %v11716_v24, %v2633_v10  ;;  %vm4475_vm6 = vcmask 7168  }
 0x3cc   : > { %vm10621_vm15 = vmand %vm4399_vm10, %vm4391_vm8  ;;  %v4422_v50 = vsel %vm10615_vm13, %v4414_v0, %v4370_v4 }
 0x3cd   : > { %v4423_v19 = vsel %vm10621_vm15, %v4415_v42, %v4381_v5  ;;  %vm4430_vm3 = vcmp.lt.s32.totalorder %v4422_v50, 8 }
 0x3ce   : > { %vm4431_vm2 = vcmp.lt.s32.totalorder %v4423_v19, 8 }
 0x3d4   : > { %v10412_v40 = vpop.f32.mrf.mxu1 }
 0x3d5   : > { %v3778_v20 = vadd.f32 %v10412_v40, %v3325_v46 }
 0x3d6   : > { %v10444_v54 = vpop.f32.mrf.mxu1 }
 0x3d7   : > { %v3779_v21 = vadd.f32 %v10444_v54, %v3326_v61 }
 0x3dc   : > { %v10414_v35 = vpop.f32.mrf.mxu0 }
 0x3dd   : > { %v3780_v54 = vadd.f32 %v10414_v35, %v3327_v33  ;;  %v4421_v35 = vsel %vm10576_vm14, %v4413_v17, %v10506_v34  ;;  %vm4295_vm14 = vcmp.lt.s32.totalorder %v10393_v47, 80 }
 0x3de   : > { %v10446_v3 = vpop.f32.mrf.mxu0  ;;  %vm4429_vm12 = vcmp.lt.s32.totalorder %v4421_v35, 8 }
 0x3ec   : > { %v10464_v23 = vpop.f32.mrf.mxu1 }
 0x3ee   : > { %v10497_v11 = vpop.f32.mrf.mxu1 }
 0x3fa   : > { %v3957_v62 = vpop.f32.mrf.mxu0 }
 0x3fb   : > { %v4175_v40 = vadd.f32 %v3957_v62, %v3776_v31  ;;  %v3031_v62 = vadd.f32 %v11705_v32, %v2632_v2  ;;  %v2634_v2 = vadd.f32 %v11709_v13, %v2181_v30  ;;  %v3329_v30 = vadd.f32 %v10373_v12, %v3032_v38 }
 0x3fc   : > { %v3959_v63 = vpop.f32.mrf.mxu0 }
 0x3fd   : > { %v4176_v37 = vadd.f32 %v3959_v63, %v3777_v26  ;;  %v4456_v1 = vsel %vm10545_vm0, %v4175_v40, 0.0  ;;  %v3328_v36 = vadd.f32 %v10365_v59, %v3031_v62  ;;  %v3033_v31 = vadd.f32 %v11719_v52, %v2634_v2 }
 0x3fe   : > { %v4478_v9 = vmul.f32 %v4456_v1, %v4456_v1 }
 0x3ff   : > { %v4457_v6 = vsel %vm10533_vm11, %v4176_v37, 0.0  ;;  %v3781_v46 = vadd.f32 %v10446_v3, %v3328_v36  ;;  %vm4293_vm11 = vcmp.lt.s32.totalorder %v10354_v41, 80  ;;  %v3330_v18 = vadd.f32 %v10402_v22, %v3033_v31 }
 0x400   : > { %v4479_v7 = vmul.f32 %v4457_v6, %v4457_v6  ;;  %v4465_v27 = vadd.f32 %v4457_v6, %v4456_v1  ;;  %vm4437_vm0 = vmand %vm4293_vm11, %vm4429_vm12 }
 0x401   : > { %v3783_v39 = vadd.f32 %v10497_v11, %v3330_v18  ;;  %v4477_v11 = vld [vmem:[#allocation4] sm:$0xff] }
 0x402   : > { %v4486_v26 = vadd.f32 %v4479_v7, %v4478_v9 }
 0x404   : > { %v4028_v53 = vpop.f32.mrf.mxu1 }
 0x405   : > { %v4177_v45 = vadd.f32 %v4028_v53, %v3778_v20 }
 0x406   : > { %v4030_v48 = vpop.f32.mrf.mxu1 }
 0x407   : > { %v4458_v55 = vsel %vm10556_vm1, %v4177_v45, 0.0  ;;  %v4178_v29 = vadd.f32 %v4030_v48, %v3779_v21  ;;  %vm4294_vm1 = vcmp.lt.s32.totalorder %v10391_v28, 80  ;;  %v3782_v45 = vadd.f32 %v10464_v23, %v3329_v30 }
 0x408   : > { %v4480_v51 = vmul.f32 %v4458_v55, %v4458_v55  ;;  %v4466_v53 = vadd.f32 %v4465_v27, %v4458_v55  ;;  %vm4438_vm4 = vmand %vm4294_vm1, %vm4430_vm3 }
 0x409   : > { %v4459_v34 = vsel %vm10597_vm5, %v4178_v29, 0.0  ;;  %vm4439_vm5 = vmand %vm4295_vm14, %vm4431_vm2 }
 0x40a   : > { %v4487_v41 = vadd.f32 %v4486_v26, %v4480_v51  ;;  %v4481_v15 = vmul.f32 %v4459_v34, %v4459_v34  ;;  %v4467_v20 = vadd.f32 %v4466_v53, %v4459_v34 }
 0x40c   : > { %v4488_v61 = vadd.f32 %v4487_v41, %v4481_v15 }
 0x410   : > { %v4099_v44 = vpop.f32.mrf.mxu0 }
 0x411   : > { %v4179_v63 = vadd.f32 %v4099_v44, %v3780_v54 }
 0x412   : > { %v4101_v16 = vpop.f32.mrf.mxu0 }
 0x413   : > { %v4460_v60 = vsel %vm4436_vm9, %v4179_v63, 0.0  ;;  %v4180_v43 = vadd.f32 %v4101_v16, %v3781_v46 }
 0x414   : > { %v4482_v37 = vmul.f32 %v4460_v60, %v4460_v60  ;;  %v4468_v40 = vadd.f32 %v4467_v20, %v4460_v60 }
 0x415   : > { %v4461_v58 = vsel %vm4437_vm0, %v4180_v43, 0.0 }
 0x416   : > { %v4489_v25 = vadd.f32 %v4488_v61, %v4482_v37  ;;  %v4483_v56 = vmul.f32 %v4461_v58, %v4461_v58  ;;  %v4469_v17 = vadd.f32 %v4468_v40, %v4461_v58 }
 0x418   : > { %v4490_v32 = vadd.f32 %v4489_v25, %v4483_v56 }
 0x41c   : > { %v4170_v48 = vpop.f32.mrf.mxu1 }
 0x41d   : > { %v4181_v12 = vadd.f32 %v4170_v48, %v3782_v45 }
 0x41e   : > { %v4172_v4 = vpop.f32.mrf.mxu1 }
 0x41f   : > { %v4462_v28 = vsel %vm4438_vm4, %v4181_v12, 0.0  ;;  %v4182_v5 = vadd.f32 %v4172_v4, %v3783_v39 }
 0x420   : > { %v4470_v62 = vadd.f32 %v4469_v17, %v4462_v28  ;;  %v4484_v22 = vmul.f32 %v4462_v28, %v4462_v28 }
 0x421   : > { %v4463_v33 = vsel %vm4439_vm5, %v4182_v5, 0.0 }
 0x422   : > { %v4491_v23 = vadd.f32 %v4490_v32, %v4484_v22  ;;  %v4471_v21 = vadd.f32 %v4470_v62, %v4463_v33  ;;  %v4485_v47 = vmul.f32 %v4463_v33, %v4463_v33 }
 0x424   : > { %4472 = vadd.xlane.f32.xlu0 %v4471_v21  ;;  %v4492_v6 = vadd.f32 %v4491_v23, %v4485_v47 }
 0x426   : > { %4493 = vadd.xlane.f32.xlu1 %v4492_v6 }
 0x4ad   : > { %v4473_v49 = vpop.xlane.xlu0 %4472 }
 0x4ae   : > { %v4474_v10 = vadd.f32 %v4473_v49, %v4464_v8 }
 0x4af   : > { %v4494_v13 = vpop.xlane.xlu1 %4493 }
 0x4b0   : > { %4476 = vst.msk [vmem:[#allocation3] sm:$0xff] %vm4475_vm6, %v4474_v10  ;;  %v4495_v2 = vadd.f32 %v4494_v13, %v4477_v11 }
 0x4b2   : > { %4496 = vst.msk [vmem:[#allocation4] sm:$0xff] %vm4475_vm6, %v4495_v2 }
 0x4b3 PF: > { %s11720_s29 = sld [smem:[#allocation27_spill]] }
 0x4b9   : > { %p8428_p11 = scmp.ne.s32.totalorder %s11720_s29, 1 }
 0x4bb   : > { %4500 = sbr.rel (%p8428_p11) target bundleno = 2312 (0x908), region = 84 }
 0x4c0   : > { %s11721_s5 = sld [smem:[#allocation26_spill]] }
 0x4c6   : > { %p8429_p1 = scmp.ne.s32.totalorder %s11721_s5, 0 }
 0x4c7   : > { %s11722_s26 = sld [smem:[#allocation57_spill]] (!%p8429_p1) }
 0x4c8   : > { %4503 = sbr.rel (%p8429_p1) target bundleno = 1661 (0x67d), region = 88  ;;  %s11723_s17 = sld [smem:[#allocation56_spill]] (!%p8429_p1) }
 0x4c9   : > { %s11724_s23 = sld [smem:[#allocation58_spill]] (!%p8429_p1) }
 0x4ca   : > { %s11725_s30 = sld [smem:[#allocation59_spill]] (!%p8429_p1) }
 0x4cd   : > { %v4504_v14 = vld [vmem:[#allocation3] sm:$0xff]  ;;  %v4506_v54 = vld [vmem:[%s11722_s26] sm:$0xff]  ;;  %v9075_v1 = vmov 0.0   ;;  %vm9076_vm7 = vmmov 0   ;;  %vm4510_vm8 = vcmask 64512   ;;  %v4505_v9 = vld [vmem:[#allocation4] sm:$0xff] }
 0x4ce   : > { %8489 = vmatprep.subr.mxu0 %v9075_v1  ;;  %v4508_v55 = vmul.f32 1024.0, %v4506_v54  ;;  %8491 = vmatprep.mubr.msk.f32.mxu0 %vm9076_vm7, %v9075_v1  ;;  %v4507_v7 = vld [vmem:[%s11723_s17] sm:$0xff]  ;;  %vm4668_vm9 = vcmask 7168  }
 0x4cf   : > { %8494 = vmatprep.subr.mxu1 %v9075_v1  ;;  %8496 = vmatprep.mubr.msk.f32.mxu1 %vm9076_vm7, %v9075_v1  ;;  %v4666_v24 = vld [vmem:[%s11724_s23] sm:$0xff] }
 0x4d0   : > { %v4509_v29 = vadd.f32 %v4508_v55, %v4504_v14  ;;  %v4670_v43 = vld [vmem:[%s11725_s30] sm:$0xff] }
 0x4d2   : > { %8490 = vmatpush3.msra.mxu0 %v4509_v29 }
 0x4d3   : > { %8492 = vmatmul.mubr.msk.f32.vlgmr.msra.gmra.mxu0 %vm4510_vm8, %v4507_v7 }
 0x593   : > { %v4580_v57 = vpop.f32.mrf.mxu0 }
 0x594   : > { %v4584_v44 = vmul.f32 0.00024414063, %v4580_v57 }
 0x595   : > { %v8493_v35 = vpop.f32.mrf.mxu0 }
 0x596   : > { %v4585_v36 = vsub.f32 %v4506_v54, %v4584_v44 }
 0x598   : > { %v4586_v63 = vmul.f32 2.0, %v4585_v36  ;;  %v4589_v0 = vmul.f32 %v4585_v36, %v4585_v36 }
 0x59a   : > { %v4587_v27 = vmul.f32 %v4586_v63, %v4504_v14  ;;  %v4590_v16 = vmul.f32 1024.0, %v4589_v0 }
 0x59c   : > { %v4588_v51 = vadd.f32 %v4587_v27, %v4505_v9 }
 0x59e   : > { %v4591_v46 = vadd.f32 %v4590_v16, %v4588_v51 }
 0x5a0   : > { %8495 = vmatpush3.msra.mxu1 %v4591_v46 }
 0x5a1   : > { %8497 = vmatmul.mubr.msk.f32.vlgmr.msra.gmra.mxu1 %vm4510_vm8, %v4507_v7 }
 0x661   : > { %v4658_v34 = vpop.f32.mrf.mxu1 }
 0x662   : > { %v4662_v59 = vmul.f32 0.00024414063, %v4658_v34 }
 0x663   : > { %v8498_v26 = vpop.f32.mrf.mxu1 }
 0x664   : > { %v4663_v53 = vmax.f32 %v4662_v59, 0.0 }
 0x666   : > { %v4664_v42 = vadd.f32 1e-05, %v4663_v53 }
 0x668   : > { %8729 = vrsqrt.f32 %v4664_v42 }
 0x675   : > { %v8730_v38 = vpop.eup %8729 }
 0x676   : > { %v4667_v60 = vmul.f32 %v8730_v38, %v4666_v24 }
 0x678   : > { %4669 = vst.msk [vmem:[#allocation5] sm:$0xff] %vm4668_vm9, %v4667_v60  ;;  %v4671_v3 = vmul.f32 %v4667_v60, %v4585_v36 }
 0x67a   : > { %v4672_v41 = vadd.f32 %v4671_v3, %v4670_v43 }
 0x67c   : > { %4673 = vst.msk [vmem:[#allocation6] sm:$0xff] %vm4668_vm9, %v4672_v41 }
 0x67d PF: > { %v10650_v15 = vld [vmem:[#allocation2 + $0xa0] sm:$0xff]  ;;  %v10652_v50 = vld [vmem:[#allocation2 + $0x78] sm:$0xff]  ;;  %s9077_s27 = smov 127   ;;  %v10658_v52 = vld [vmem:[#allocation2 + $0x28] sm:$0xff]  ;;  %v9078_v45 = vmov 0.0   ;;  %s9079_s16 = smov 126  }
 0x67e   : > { %4773 = vrot.lane.b32.xlu1 %v10650_v15, %s9077_s27  ;;  %4769 = vrot.lane.b32.xlu0 %v10652_v50, %s9077_s27  ;;  %v10660_v31 = vld [vmem:[#allocation2 + $0xf8] sm:$0xff]  ;;  %v10666_v20 = vld [vmem:[#allocation2 + $0x70] sm:$0xff]  ;;  %v10684_v61 = vld [vmem:[#allocation2 + $0x68] sm:$0xff]  ;;  %vm4785_vm10 = vcmask 1039360   ;;  %vm4834_vm11 = vcmask 195584   ;;  %vm5465_vm12 = vcmask 1031168  }
 0x67f   : > { %v10668_v37 = vld [vmem:[#allocation2 + $0x10] sm:$0xff]  ;;  %v10682_v58 = vld [vmem:[#allocation2 + $0xb8] sm:$0xff]  ;;  %v10692_v18 = vld [vmem:[#allocation2 + $0x8] sm:$0xff]  ;;  %4902 = vmatprep.mubr.f32.mxu0 %v9078_v45  ;;  %4973 = vmatprep.mubr.f32.mxu1 %v9078_v45 }
 0x680   : > { %v10674_v19 = vld [vmem:[#allocation2 + $0xf0] sm:$0xff]  ;;  %v10700_v25 = vld [vmem:[#allocation2 + $0xe0] sm:$0xff]  ;;  %v10702_v56 = vld [vmem:[#allocation2 + $0x38] sm:$0xff] }
 0x681   : > { %v10676_v30 = vld [vmem:[#allocation2 + $0xb0] sm:$0xff]  ;;  %v10708_v48 = vld [vmem:[#allocation2 + $0xe8] sm:$0xff]  ;;  %v10710_v39 = vld [vmem:[#allocation2] sm:$0xff] }
 0x682   : > { %4775 = vrot.lane.b32.xlu1 %v10658_v52, %s9077_s27  ;;  %4771 = vrot.lane.b32.xlu0 %v10660_v31, %s9077_s27  ;;  %v10690_v40 = vld [vmem:[#allocation2 + $0xd0] sm:$0xff]  ;;  %v10716_v12 = vld [vmem:[#allocation2 + $0x100] sm:$0xff]  ;;  %v10732_v5 = vld [vmem:[#allocation2 + $0xa8] sm:$0xff] }
 0x683   : > { %v10718_v17 = vld [vmem:[#allocation2 + $0x20] sm:$0xff]  ;;  %v10726_v28 = vld [vmem:[#allocation2 + $0x30] sm:$0xff]  ;;  %v10740_v62 = vld [vmem:[#allocation2 + $0x18] sm:$0xff] }
 0x684   : > { %v10724_v4 = vld [vmem:[#allocation2 + $0x60] sm:$0xff]  ;;  %v10742_v22 = vld [vmem:[#allocation2 + $0xc8] sm:$0xff]  ;;  %v10748_v33 = vld [vmem:[#allocation2 + $0x90] sm:$0xff] }
 0x685   : > { %v10734_v32 = vld [vmem:[#allocation2 + $0x80] sm:$0xff]  ;;  %v10750_v23 = vld [vmem:[#allocation2 + $0x58] sm:$0xff]  ;;  %v10866_v53 = vld [vmem:[#allocation13 + $0x8] sm:$0xff] }
 0x686   : > { %4767 = vrot.lane.b32.xlu0 %v10666_v20, %s9077_s27  ;;  %4751 = vrot.lane.b32.xlu1 %v10668_v37, %s9077_s27  ;;  %v10756_v21 = vld [vmem:[#allocation2 + $0x98] sm:$0xff] }
 0x687   : > { %v10864_v26 = vld [vmem:[#allocation2 + $0xd8] sm:$0xff] }
 0x68a   : > { %4753 = vrot.lane.b32.xlu0 %v10674_v19, %s9077_s27  ;;  %4755 = vrot.lane.b32.xlu1 %v10676_v30, %s9077_s27 }
 0x68e   : > { %4757 = vrot.lane.b32.xlu0 %v10682_v58, %s9077_s27  ;;  %4749 = vrot.lane.b32.xlu1 %v10684_v61, %s9077_s27 }
 0x692   : > { %4735 = vrot.lane.b32.xlu1 %v10690_v40, %s9077_s27  ;;  %4733 = vrot.lane.b32.xlu0 %v10692_v18, %s9077_s27 }
 0x696   : > { %4739 = vrot.lane.b32.xlu1 %v10700_v25, %s9077_s27  ;;  %4737 = vrot.lane.b32.xlu0 %v10702_v56, %s9077_s27 }
 0x69a   : > { %4777 = vrot.lane.b32.xlu1 %v10708_v48, %s9077_s27  ;;  %4731 = vrot.lane.b32.xlu0 %v10710_v39, %s9077_s27 }
 0x69e   : > { %4781 = vrot.lane.b32.xlu1 %v10716_v12, %s9077_s27  ;;  %4779 = vrot.lane.b32.xlu0 %v10718_v17, %s9077_s27 }
 0x6a2   : > { %4759 = vrot.lane.b32.xlu1 %v10724_v4, %s9077_s27  ;;  %4783 = vrot.lane.b32.xlu0 %v10726_v28, %s9077_s27 }
 0x6a6   : > { %4763 = vrot.lane.b32.xlu1 %v10732_v5, %s9077_s27  ;;  %4761 = vrot.lane.b32.xlu0 %v10734_v32, %s9077_s27 }
 0x6aa   : > { %4741 = vrot.lane.b32.xlu1 %v10740_v62, %s9077_s27  ;;  %4765 = vrot.lane.b32.xlu0 %v10742_v22, %s9077_s27 }
 0x6ae   : > { %4745 = vrot.lane.b32.xlu1 %v10748_v33, %s9077_s27  ;;  %4743 = vrot.lane.b32.xlu0 %v10750_v23, %s9077_s27 }
 0x6b2   : > { %5449 = vrot.lane.b32.xlu1 %v10652_v50, %s9079_s16  ;;  %4747 = vrot.lane.b32.xlu0 %v10756_v21, %s9077_s27 }
 0x6b6   : > { %5453 = vrot.lane.b32.xlu1 %v10650_v15, %s9079_s16  ;;  %5451 = vrot.lane.b32.xlu0 %v10660_v31, %s9079_s16 }
 0x6ba   : > { %5447 = vrot.lane.b32.xlu1 %v10666_v20, %s9079_s16  ;;  %5455 = vrot.lane.b32.xlu0 %v10658_v52, %s9079_s16 }
 0x6be   : > { %5433 = vrot.lane.b32.xlu1 %v10674_v19, %s9079_s16  ;;  %5431 = vrot.lane.b32.xlu0 %v10668_v37, %s9079_s16 }
 0x6c2   : > { %5437 = vrot.lane.b32.xlu1 %v10682_v58, %s9079_s16  ;;  %5435 = vrot.lane.b32.xlu0 %v10676_v30, %s9079_s16 }
 0x6c6   : > { %5413 = vrot.lane.b32.xlu1 %v10692_v18, %s9079_s16  ;;  %5429 = vrot.lane.b32.xlu0 %v10684_v61, %s9079_s16 }
 0x6ca   : > { %5417 = vrot.lane.b32.xlu1 %v10702_v56, %s9079_s16  ;;  %5415 = vrot.lane.b32.xlu0 %v10690_v40, %s9079_s16 }
 0x6ce   : > { %5411 = vrot.lane.b32.xlu1 %v10710_v39, %s9079_s16  ;;  %5419 = vrot.lane.b32.xlu0 %v10700_v25, %s9079_s16 }
 0x6d2   : > { %5459 = vrot.lane.b32.xlu1 %v10718_v17, %s9079_s16  ;;  %5457 = vrot.lane.b32.xlu0 %v10708_v48, %s9079_s16 }
 0x6d6   : > { %5463 = vrot.lane.b32.xlu1 %v10726_v28, %s9079_s16  ;;  %5461 = vrot.lane.b32.xlu0 %v10716_v12, %s9079_s16 }
 0x6da   : > { %5441 = vrot.lane.b32.xlu1 %v10734_v32, %s9079_s16  ;;  %5439 = vrot.lane.b32.xlu0 %v10724_v4, %s9079_s16 }
 0x6de   : > { %5445 = vrot.lane.b32.xlu1 %v10742_v22, %s9079_s16  ;;  %5443 = vrot.lane.b32.xlu0 %v10732_v5, %s9079_s16 }
 0x6e2   : > { %5423 = vrot.lane.b32.xlu1 %v10750_v23, %s9079_s16  ;;  %5421 = vrot.lane.b32.xlu0 %v10740_v62, %s9079_s16 }
 0x6e6   : > { %5427 = vrot.lane.b32.xlu1 %v10756_v21, %s9079_s16  ;;  %5425 = vrot.lane.b32.xlu0 %v10748_v33, %s9079_s16 }
 0x6ea   : > { %6202 = vrot.lane.b32.xlu1 %v10650_v15, %s9077_s27  ;;  %6200 = vrot.lane.b32.xlu0 %v10660_v31, %s9077_s27 }
 0x6ee   : > { %6206 = vrot.lane.b32.xlu1 %v10708_v48, %s9077_s27  ;;  %6204 = vrot.lane.b32.xlu0 %v10658_v52, %s9077_s27 }
 0x6f0   : > { %v4774_v47 = vpop.permute.xlu1 %4773  ;;  %v4770_v6 = vpop.permute.xlu0 %4769 }
 0x6f2   : > { %6182 = vrot.lane.b32.xlu1 %v10674_v19, %s9077_s27  ;;  %6198 = vrot.lane.b32.xlu0 %v10652_v50, %s9077_s27 }
 0x6f4   : > { %v10826_v8 = vpop.permute.xlu1 %4775  ;;  %v4772_v49 = vpop.permute.xlu0 %4771 }
 0x6f5   : > { %v4803_v11 = vsel %vm4785_vm10, %v4770_v6, %v4772_v49  ;;  %v4805_v10 = vsel %vm4785_vm10, %v4774_v47, %v10826_v8  ;;  %v4804_v13 = vsel %vm4785_vm10, %v4772_v49, %v4774_v47  ;;  %v10886_v47 = vld [vmem:[#allocation2 + $0x48] sm:$0xff] }
 0x6f6   : > { %4864 = vmatprep.subr.mxu0 %v4803_v11  ;;  %4935 = vmatprep.subr.mxu1 %v4805_v10 }
 0x6f7   : > { %6186 = vrot.lane.b32.xlu1 %v10682_v58, %s9077_s27  ;;  %6184 = vrot.lane.b32.xlu0 %v10676_v30, %s9077_s27 }
 0x6f8   : > { %4936 = vmatpush1.msra.mxu1 %v4804_v13  ;;  %v4768_v2 = vpop.permute.xlu0 %4767  ;;  %v4752_v14 = vpop.permute.xlu1 %4751 }
 0x6f9   : > { %v4802_v54 = vsel %vm4785_vm10, %v4768_v2, %v4770_v6 }
 0x6fa   : > { %4865 = vmatpush1.msra.mxu0 %v4802_v54  ;;  %v10900_v54 = vld [vmem:[#allocation2 + $0xc0] sm:$0xff] }
 0x6fb   : > { %6180 = vrot.lane.b32.xlu1 %v10668_v37, %s9077_s27  ;;  %6188 = vrot.lane.b32.xlu0 %v10724_v4, %s9077_s27 }
 0x6fc   : > { %v4754_v1 = vpop.permute.xlu0 %4753  ;;  %v4756_v55 = vpop.permute.xlu1 %4755 }
 0x6fd   : > { %v4795_v29 = vsel %vm4785_vm10, %v4752_v14, %v4754_v1  ;;  %v4796_v36 = vsel %vm4785_vm10, %v4754_v1, %v4756_v55 }
 0x6fe   : > { %4866 = vmatprep.subr.mxu0 %v4795_v29 }
 0x6ff   : > { %6166 = vrot.lane.b32.xlu1 %v10702_v56, %s9077_s27  ;;  %6164 = vrot.lane.b32.xlu0 %v10690_v40, %s9077_s27 }
 0x700   : > { %v4758_v7 = vpop.permute.xlu0 %4757  ;;  %v4750_v57 = vpop.permute.xlu1 %4749 }
 0x701   : > { %v4794_v44 = vsel %vm4785_vm10, %v4750_v57, %v4752_v14  ;;  %v4797_v35 = vsel %vm4785_vm10, %v4756_v55, %v4758_v7 }
 0x702   : > { %4867 = vmatpush1.msra.mxu0 %v4794_v44  ;;  %4937 = vmatprep.subr.mxu1 %v4797_v35 }
 0x703   : > { %6170 = vrot.lane.b32.xlu1 %v10740_v62, %s9077_s27  ;;  %6168 = vrot.lane.b32.xlu0 %v10700_v25, %s9077_s27 }
 0x704   : > { %4938 = vmatpush1.msra.mxu1 %v4796_v36  ;;  %v4736_v63 = vpop.permute.xlu1 %4735  ;;  %v4734_v0 = vpop.permute.xlu0 %4733 }
 0x705   : > { %v4787_v9 = vsel %vm4785_vm10, %v4734_v0, %v4736_v63 }
 0x706   : > { %4868 = vmatprep.subr.mxu0 %v4787_v9 }
 0x707   : > { %6208 = vrot.lane.b32.xlu1 %v10718_v17, %s9077_s27  ;;  %6162 = vrot.lane.b32.xlu0 %v10692_v18, %s9077_s27 }
 0x708   : > { %v4740_v27 = vpop.permute.xlu1 %4739  ;;  %v4738_v51 = vpop.permute.xlu0 %4737 }
 0x709   : > { %v4789_v16 = vsel %vm4785_vm10, %v4738_v51, %v4740_v27  ;;  %v4788_v46 = vsel %vm4785_vm10, %v4736_v63, %v4738_v51 }
 0x70a   : > { %4939 = vmatprep.subr.mxu1 %v4789_v16 }
 0x70b   : > { %6212 = vrot.lane.b32.xlu1 %v10726_v28, %s9077_s27  ;;  %6210 = vrot.lane.b32.xlu0 %v10716_v12, %s9077_s27 }
 0x70c   : > { %4940 = vmatpush1.msra.mxu1 %v4788_v46  ;;  %v4778_v34 = vpop.permute.xlu1 %4777  ;;  %v4732_v59 = vpop.permute.xlu0 %4731 }
 0x70d   : > { %v4786_v42 = vsel %vm4785_vm10, %v4732_v59, %v4734_v0  ;;  %8433 = vmatmul.mubr.msk.f32.vlgmr.msra.gmra.mxu1 %vm4834_vm11, %v10866_v53  ;;  %v4806_v43 = vsel %vm4785_vm10, %v10826_v8, %v4778_v34 }
 0x70e   : > { %4869 = vmatpush1.msra.mxu0 %v4786_v42  ;;  %5115 = vmatprep.mubr.f32.mxu1 %v9078_v45 }
 0x70f   : > { %6190 = vrot.lane.b32.xlu1 %v10734_v32, %s9077_s27  ;;  %6214 = vrot.lane.b32.xlu0 %v10864_v26, %s9077_s27 }
 0x710   : > { %v4782_v24 = vpop.permute.xlu1 %4781  ;;  %v4780_v38 = vpop.permute.xlu0 %4779  ;;  %8432 = vmatmul.mubr.msk.f32.vlgmr.msra.gmra.mxu0 %vm4834_vm11, %v10866_v53 }
 0x711   : > { %v4807_v60 = vsel %vm4785_vm10, %v4778_v34, %v4780_v38  ;;  %5044 = vmatprep.mubr.f32.mxu0 %v9078_v45  ;;  %v4808_v49 = vsel %vm4785_vm10, %v4780_v38, %v4782_v24 }
 0x712   : > { %5006 = vmatprep.subr.mxu0 %v4807_v60 }
 0x713   : > { %6194 = vrot.lane.b32.xlu1 %v10742_v22, %s9077_s27  ;;  %6192 = vrot.lane.b32.xlu0 %v10732_v5, %s9077_s27 }
 0x714   : > { %5007 = vmatpush1.msra.mxu0 %v4806_v43  ;;  %v4760_v3 = vpop.permute.xlu1 %4759  ;;  %v4784_v41 = vpop.permute.xlu0 %4783 }
 0x715   : > { %v4809_v6 = vsel %vm4785_vm10, %v4782_v24, %v4784_v41  ;;  %v4798_v13 = vsel %vm4785_vm10, %v4758_v7, %v4760_v3 }
 0x716   : > { %5077 = vmatprep.subr.mxu1 %v4809_v6 }
 0x717   : > { %6172 = vrot.lane.b32.xlu1 %v10750_v23, %s9077_s27  ;;  %6196 = vrot.lane.b32.xlu0 %v10886_v47, %s9077_s27 }
 0x718   : > { %5078 = vmatpush1.msra.mxu1 %v4808_v49  ;;  %v4764_v11 = vpop.permute.xlu1 %4763  ;;  %v4762_v10 = vpop.permute.xlu0 %4761 }
 0x719   : > { %v4799_v8 = vsel %vm4785_vm10, %v4760_v3, %v4762_v10  ;;  %v4800_v55 = vsel %vm4785_vm10, %v4762_v10, %v4764_v11 }
 0x71a   : > { %5008 = vmatprep.subr.mxu0 %v4799_v8 }
 0x71b   : > { %6176 = vrot.lane.b32.xlu1 %v10756_v21, %s9077_s27  ;;  %6174 = vrot.lane.b32.xlu0 %v10748_v33, %s9077_s27 }
 0x71c   : > { %5009 = vmatpush1.msra.mxu0 %v4798_v13  ;;  %v4742_v2 = vpop.permute.xlu1 %4741  ;;  %v4766_v14 = vpop.permute.xlu0 %4765 }
 0x71d   : > { %v4801_v1 = vsel %vm4785_vm10, %v4764_v11, %v4766_v14  ;;  %v4790_v44 = vsel %vm4785_vm10, %v4740_v27, %v4742_v2 }
 0x71e   : > { %5079 = vmatprep.subr.mxu1 %v4801_v1 }
 0x71f   : > { %6599 = vrot.lane.b32.xlu1 %v10660_v31, %s9079_s16  ;;  %6178 = vrot.lane.b32.xlu0 %v10900_v54, %s9077_s27 }
 0x720   : > { %5080 = vmatpush1.msra.mxu1 %v4800_v55  ;;  %v4746_v29 = vpop.permute.xlu1 %4745  ;;  %v4744_v57 = vpop.permute.xlu0 %4743 }
 0x721   : > { %v4791_v7 = vsel %vm4785_vm10, %v4742_v2, %v4744_v57  ;;  %v4792_v0 = vsel %vm4785_vm10, %v4744_v57, %v4746_v29  ;;  %v10988_v2 = vld [vmem:[#allocation13 + $0x10] sm:$0xff] }
 0x722   : > { %5010 = vmatprep.subr.mxu0 %v4791_v7 }
 0x723   : > { %6603 = vrot.lane.b32.xlu1 %v10658_v52, %s9079_s16  ;;  %6601 = vrot.lane.b32.xlu0 %v10650_v15, %s9079_s16 }
 0x724   : > { %5011 = vmatpush1.msra.mxu0 %v4790_v44  ;;  %v5450_v35 = vpop.permute.xlu1 %5449  ;;  %v4748_v36 = vpop.permute.xlu0 %4747 }
 0x725   : > { %5151 = vmatprep.subr.mxu0 %v10652_v50  ;;  %8434 = vmatmul.mubr.msk.f32.vlgmr.msra.gmra.mxu0 %vm4834_vm11, %v10866_v53  ;;  %v4793_v63 = vsel %vm4785_vm10, %v4746_v29, %v4748_v36 }
 0x726   : > { %5152 = vmatpush1.msra.mxu0 %v10666_v20  ;;  %5081 = vmatprep.subr.mxu1 %v4793_v63  ;;  %v4698_v20 = vld [vmem:[#allocation13] sm:$0xff] }
 0x727   : > { %6597 = vrot.lane.b32.xlu1 %v10652_v50, %s9079_s16  ;;  %6605 = vrot.lane.b32.xlu0 %v10708_v48, %s9079_s16 }
 0x728   : > { %5153 = vmatprep.subr.mxu0 %v10668_v37  ;;  %5082 = vmatpush1.msra.mxu1 %v4792_v0  ;;  %v5454_v9 = vpop.permute.xlu1 %5453  ;;  %v5452_v27 = vpop.permute.xlu0 %5451 }
 0x729   : > { %5154 = vmatpush1.msra.mxu0 %v10684_v61  ;;  %5222 = vmatprep.subr.mxu1 %v10650_v15  ;;  %v5483_v59 = vsel %vm5465_vm12, %v5450_v35, %v5452_v27  ;;  %v5484_v3 = vsel %vm5465_vm12, %v5452_v27, %v5454_v9 }
 0x72a   : > { %5155 = vmatprep.subr.mxu0 %v10692_v18  ;;  %8435 = vmatmul.mubr.msk.f32.vlgmr.msra.gmra.mxu1 %vm4834_vm11, %v10866_v53 }
 0x72b   : > { %5156 = vmatpush1.msra.mxu0 %v10710_v39  ;;  %5223 = vmatpush1.msra.mxu1 %v10660_v31 }
 0x72c   : > { %6583 = vrot.lane.b32.xlu1 %v10676_v30, %s9079_s16  ;;  %6581 = vrot.lane.b32.xlu0 %v10674_v19, %s9079_s16  ;;  %v5448_v51 = vpop.permute.xlu1 %5447  ;;  %v10936_v61 = vpop.permute.xlu0 %5455 }
 0x72d   : > { %5189 = vmatprep.mubr.f32.mxu0 %v9078_v45  ;;  %5224 = vmatprep.subr.mxu1 %v10676_v30  ;;  %v5482_v53 = vsel %vm5465_vm12, %v5448_v51, %v5450_v35  ;;  %v5485_v60 = vsel %vm5465_vm12, %v5454_v9, %v10936_v61 }
 0x72e   : > { %5293 = vmatprep.subr.mxu0 %v10708_v48  ;;  %8436 = vmatmul.mubr.msk.f32.vlgmr.msra.gmra.mxu0 %vm4834_vm11, %v4698_v20 }
 0x72f   : > { %5225 = vmatpush1.msra.mxu1 %v10674_v19  ;;  %5294 = vmatpush1.msra.mxu0 %v10658_v52 }
 0x730   : > { %5226 = vmatprep.subr.mxu1 %v10702_v56  ;;  %5295 = vmatprep.subr.mxu0 %v10724_v4  ;;  %v5434_v39 = vpop.permute.xlu1 %5433  ;;  %v5432_v16 = vpop.permute.xlu0 %5431 }
 0x731   : > { %5227 = vmatpush1.msra.mxu1 %v10690_v40  ;;  %5296 = vmatpush1.msra.mxu0 %v10682_v58  ;;  %v5475_v42 = vsel %vm5465_vm12, %v5432_v16, %v5434_v39 }
 0x732   : > { %6587 = vrot.lane.b32.xlu1 %v10724_v4, %s9079_s16  ;;  %6585 = vrot.lane.b32.xlu0 %v10682_v58, %s9079_s16 }
 0x733   : > { %5260 = vmatprep.mubr.f32.mxu1 %v9078_v45  ;;  %5297 = vmatprep.subr.mxu0 %v10740_v62 }
 0x734   : > { %5364 = vmatprep.subr.mxu1 %v10716_v12  ;;  %8437 = vmatmul.mubr.msk.f32.vlgmr.msra.gmra.mxu1 %vm4834_vm11, %v4698_v20  ;;  %v10956_v46 = vpop.permute.xlu1 %5437  ;;  %v5436_v34 = vpop.permute.xlu0 %5435 }
 0x735   : > { %5298 = vmatpush1.msra.mxu0 %v10700_v25  ;;  %5365 = vmatpush1.msra.mxu1 %v10718_v17  ;;  %v5477_v43 = vsel %vm5465_vm12, %v5436_v34, %v10956_v46  ;;  %v5476_v41 = vsel %vm5465_vm12, %v5434_v39, %v5436_v34 }
 0x736   : > { %5331 = vmatprep.mubr.f32.mxu0 %v9078_v45  ;;  %5366 = vmatprep.subr.mxu1 %v10732_v5 }
 0x737   : > { %5543 = vmatprep.subr.mxu0 %v5483_v59  ;;  %8438 = vmatmul.mubr.msk.f32.vlgmr.msra.gmra.mxu0 %vm4834_vm11, %v4698_v20 }
 0x738   : > { %5367 = vmatpush1.msra.mxu1 %v10734_v32  ;;  %5544 = vmatpush1.msra.mxu0 %v5482_v53  ;;  %v5414_v24 = vpop.permute.xlu1 %5413  ;;  %v5430_v38 = vpop.permute.xlu0 %5429 }
 0x739   : > { %6563 = vrot.lane.b32.xlu1 %v10690_v40, %s9079_s16  ;;  %6579 = vrot.lane.b32.xlu0 %v10668_v37, %s9079_s16  ;;  %v5474_v6 = vsel %vm5465_vm12, %v5430_v38, %v5432_v16 }
 0x73a   : > { %5368 = vmatprep.subr.mxu1 %v10748_v33  ;;  %5545 = vmatprep.subr.mxu0 %v5475_v42 }
 0x73b   : > { %5369 = vmatpush1.msra.mxu1 %v10750_v23  ;;  %5402 = vmatprep.mubr.f32.mxu1 %v9078_v45 }
 0x73c   : > { %5614 = vmatprep.subr.mxu1 %v5485_v60  ;;  %8439 = vmatmul.mubr.msk.f32.vlgmr.msra.gmra.mxu1 %vm4834_vm11, %v4698_v20  ;;  %v5418_v49 = vpop.permute.xlu1 %5417  ;;  %v5416_v11 = vpop.permute.xlu0 %5415 }
 0x73d   : > { %5615 = vmatpush1.msra.mxu1 %v5484_v3  ;;  %6567 = vrot.lane.b32.xlu1 %v10700_v25, %s9079_s16  ;;  %v5467_v10 = vsel %vm5465_vm12, %v5414_v24, %v5416_v11  ;;  %v5468_v55 = vsel %vm5465_vm12, %v5416_v11, %v5418_v49 }
 0x73e   : > { %6565 = vrot.lane.b32.xlu0 %v10702_v56, %s9079_s16  ;;  %5616 = vmatprep.subr.mxu1 %v5477_v43 }
 0x73f   : > { %5617 = vmatpush1.msra.mxu1 %v5476_v41  ;;  %5546 = vmatpush1.msra.mxu0 %v5474_v6 }
 0x740   : > { %5547 = vmatprep.subr.mxu0 %v5467_v10  ;;  %v5412_v8 = vpop.permute.xlu1 %5411  ;;  %v5420_v13 = vpop.permute.xlu0 %5419  ;;  %5581 = vmatprep.mubr.f32.mxu0 %v9078_v45 }
 0x741   : > { %6561 = vrot.lane.b32.xlu1 %v10692_v18, %s9079_s16  ;;  %v5466_v14 = vsel %vm5465_vm12, %v5412_v8, %v5414_v24  ;;  %v5469_v1 = vsel %vm5465_vm12, %v5418_v49, %v5420_v13  ;;  %5652 = vmatprep.mubr.f32.mxu1 %v9078_v45 }
 0x742   : > { %6569 = vrot.lane.b32.xlu0 %v10740_v62, %s9079_s16  ;;  %5548 = vmatpush1.msra.mxu0 %v5466_v14 }
 0x743   : > { %5618 = vmatprep.subr.mxu1 %v5469_v1  ;;  %8440 = vmatmul.mubr.msk.f32.vlgmr.msra.gmra.mxu0 %vm4834_vm11, %v10988_v2 }
 0x744   : > { %5619 = vmatpush1.msra.mxu1 %v5468_v55  ;;  %v5460_v29 = vpop.permute.xlu1 %5459  ;;  %v5458_v57 = vpop.permute.xlu0 %5457  ;;  %5723 = vmatprep.mubr.f32.mxu0 %v9078_v45 }
 0x745   : > { %6609 = vrot.lane.b32.xlu1 %v10716_v12, %s9079_s16  ;;  %v5487_v7 = vsel %vm5465_vm12, %v5458_v57, %v5460_v29  ;;  %v5486_v44 = vsel %vm5465_vm12, %v10936_v61, %v5458_v57  ;;  %8441 = vmatmul.mubr.msk.f32.vlgmr.msra.gmra.mxu1 %vm4834_vm11, %v10988_v2 }
 0x746   : > { %6607 = vrot.lane.b32.xlu0 %v10718_v17, %s9079_s16  ;;  %5685 = vmatprep.subr.mxu0 %v5487_v7 }
 0x747   : > { %5686 = vmatpush1.msra.mxu0 %v5486_v44  ;;  %5794 = vmatprep.mubr.f32.mxu1 %v9078_v45 }
 0x748   : > { %v5464_v35 = vpop.permute.xlu1 %5463  ;;  %v5462_v36 = vpop.permute.xlu0 %5461 }
 0x749   : > { %6613 = vrot.lane.b32.xlu1 %v10864_v26, %s9079_s16  ;;  %v5489_v63 = vsel %vm5465_vm12, %v5462_v36, %v5464_v35  ;;  %v5488_v0 = vsel %vm5465_vm12, %v5460_v29, %v5462_v36 }
 0x74a   : > { %6611 = vrot.lane.b32.xlu0 %v10726_v28, %s9079_s16  ;;  %5756 = vmatprep.subr.mxu1 %v5489_v63 }
 0x74b   : > { %5757 = vmatpush1.msra.mxu1 %v5488_v0 }
 0x74c   : > { %v5442_v9 = vpop.permute.xlu1 %5441  ;;  %v5440_v27 = vpop.permute.xlu0 %5439 }
 0x74d   : > { %6591 = vrot.lane.b32.xlu1 %v10732_v5, %s9079_s16  ;;  %v5479_v20 = vsel %vm5465_vm12, %v5440_v27, %v5442_v9  ;;  %v5478_v51 = vsel %vm5465_vm12, %v10956_v46, %v5440_v27 }
 0x74e   : > { %6589 = vrot.lane.b32.xlu0 %v10734_v32, %s9079_s16  ;;  %5687 = vmatprep.subr.mxu0 %v5479_v20  ;;  %v11125_v20 = vld [vmem:[#allocation13 + $0x20] sm:$0xff] }
 0x74f   : > { %5688 = vmatpush1.msra.mxu0 %v5478_v51 }
 0x750   : > { %v5446_v61 = vpop.permute.xlu1 %5445  ;;  %v5444_v39 = vpop.permute.xlu0 %5443 }
 0x751   : > { %6595 = vrot.lane.b32.xlu1 %v10886_v47, %s9079_s16  ;;  %v5481_v16 = vsel %vm5465_vm12, %v5444_v39, %v5446_v61  ;;  %v5480_v34 = vsel %vm5465_vm12, %v5442_v9, %v5444_v39 }
 0x752   : > { %6593 = vrot.lane.b32.xlu0 %v10742_v22, %s9079_s16  ;;  %5758 = vmatprep.subr.mxu1 %v5481_v16 }
 0x753   : > { %5759 = vmatpush1.msra.mxu1 %v5480_v34 }
 0x754   : > { %v5424_v46 = vpop.permute.xlu1 %5423  ;;  %v5422_v59 = vpop.permute.xlu0 %5421 }
 0x755   : > { %6573 = vrot.lane.b32.xlu1 %v10748_v33, %s9079_s16  ;;  %v5471_v53 = vsel %vm5465_vm12, %v5422_v59, %v5424_v46  ;;  %v5470_v42 = vsel %vm5465_vm12, %v5420_v13, %v5422_v59  ;;  %v11145_v59 = vld [vmem:[#allocation2 + $0x40] sm:$0xff] }
 0x756   : > { %6571 = vrot.lane.b32.xlu0 %v10750_v23, %s9079_s16  ;;  %5689 = vmatprep.subr.mxu0 %v5471_v53 }
 0x757   : > { %5690 = vmatpush1.msra.mxu0 %v5470_v42 }
 0x758   : > { %v5428_v24 = vpop.permute.xlu1 %5427  ;;  %5840 = vmatprep.subr.mxu0 %v10660_v31  ;;  %v5426_v38 = vpop.permute.xlu0 %5425  ;;  %8442 = vmatmul.mubr.msk.f32.vlgmr.msra.gmra.mxu0 %vm4834_vm11, %v10988_v2 }
 0x759   : > { %6577 = vrot.lane.b32.xlu1 %v10900_v54, %s9079_s16  ;;  %5841 = vmatpush1.msra.mxu0 %v10652_v50  ;;  %v5473_v60 = vsel %vm5465_vm12, %v5426_v38, %v5428_v24  ;;  %v5472_v43 = vsel %vm5465_vm12, %v5424_v46, %v5426_v38  ;;  %v5810_v50 = vld [vmem:[#allocation13 + $0x18] sm:$0xff] }
 0x75a   : > { %6575 = vrot.lane.b32.xlu0 %v10756_v21, %s9079_s16  ;;  %5760 = vmatprep.subr.mxu1 %v5473_v60 }
 0x75b   : > { %5842 = vmatprep.subr.mxu0 %v10674_v19  ;;  %5761 = vmatpush1.msra.mxu1 %v5472_v43 }
 0x75c   : > { %5843 = vmatpush1.msra.mxu0 %v10668_v37  ;;  %v6203_v3 = vpop.permute.xlu1 %6202  ;;  %5911 = vmatprep.subr.mxu1 %v10658_v52  ;;  %v6201_v41 = vpop.permute.xlu0 %6200 }
 0x75d   : > { %7351 = vrot.lane.b32.xlu1 %v10658_v52, %s9077_s27  ;;  %5844 = vmatprep.subr.mxu0 %v10690_v40  ;;  %v6233_v8 = vsel %vm4785_vm10, %v6201_v41, %v6203_v3 }
 0x75e   : > { %7349 = vrot.lane.b32.xlu0 %v10650_v15, %s9077_s27  ;;  %8443 = vmatmul.mubr.msk.f32.vlgmr.msra.gmra.mxu1 %vm4834_vm11, %v10988_v2 }
 0x75f   : > { %5845 = vmatpush1.msra.mxu0 %v10692_v18  ;;  %5912 = vmatpush1.msra.mxu1 %v10650_v15 }
 0x760   : > { %5878 = vmatprep.mubr.f32.mxu0 %v9078_v45  ;;  %5913 = vmatprep.subr.mxu1 %v10682_v58  ;;  %v11060_v37 = vpop.permute.xlu1 %6206  ;;  %v6205_v6 = vpop.permute.xlu0 %6204 }
 0x761   : > { %7355 = vrot.lane.b32.xlu1 %v10718_v17, %s9077_s27  ;;  %5982 = vmatprep.subr.mxu0 %v10718_v17  ;;  %v6235_v1 = vsel %vm4785_vm10, %v6205_v6, %v11060_v37  ;;  %v6234_v29 = vsel %vm4785_vm10, %v6203_v3, %v6205_v6 }
 0x762   : > { %7353 = vrot.lane.b32.xlu0 %v10708_v48, %s9077_s27  ;;  %8444 = vmatmul.mubr.msk.f32.vlgmr.msra.gmra.mxu0 %vm4834_vm11, %v5810_v50 }
 0x763   : > { %5914 = vmatpush1.msra.mxu1 %v10676_v30  ;;  %5983 = vmatpush1.msra.mxu0 %v10708_v48 }
 0x764   : > { %5915 = vmatprep.subr.mxu1 %v10700_v25  ;;  %5984 = vmatprep.subr.mxu0 %v10734_v32  ;;  %v6183_v18 = vpop.permute.xlu1 %6182  ;;  %v6199_v49 = vpop.permute.xlu0 %6198 }
 0x765   : > { %7331 = vrot.lane.b32.xlu1 %v10676_v30, %s9077_s27  ;;  %5916 = vmatpush1.msra.mxu1 %v10702_v56  ;;  %v6232_v13 = vsel %vm4785_vm10, %v6199_v49, %v6201_v41  ;;  %v11160_v41 = vld [vmem:[#allocation2 + $0x50] sm:$0xff] }
 0x766   : > { %7347 = vrot.lane.b32.xlu0 %v10660_v31, %s9077_s27  ;;  %5985 = vmatpush1.msra.mxu0 %v10724_v4 }
 0x767   : > { %5949 = vmatprep.mubr.f32.mxu1 %v9078_v45  ;;  %5986 = vmatprep.subr.mxu0 %v10750_v23 }
 0x768   : > { %6053 = vmatprep.subr.mxu1 %v10726_v28  ;;  %8445 = vmatmul.mubr.msk.f32.vlgmr.msra.gmra.mxu1 %vm4834_vm11, %v5810_v50 }
 0x769   : > { %7335 = vrot.lane.b32.xlu1 %v10724_v4, %s9077_s27  ;;  %5987 = vmatpush1.msra.mxu0 %v10740_v62  ;;  %v6187_v11 = vpop.permute.xlu1 %6186  ;;  %v6185_v10 = vpop.permute.xlu0 %6184 }
 0x76a   : > { %7333 = vrot.lane.b32.xlu0 %v10682_v58, %s9077_s27  ;;  %6054 = vmatpush1.msra.mxu1 %v10716_v12  ;;  %v6226_v36 = vsel %vm4785_vm10, %v6185_v10, %v6187_v11 }
 0x76b   : > { %6055 = vmatprep.subr.mxu1 %v10742_v22  ;;  %6293 = vmatprep.subr.mxu0 %v6233_v8  ;;  %v11174_v8 = vld [vmem:[#allocation2 + $0x88] sm:$0xff] }
 0x76c   : > { %6020 = vmatprep.mubr.f32.mxu0 %v9078_v45  ;;  %6056 = vmatpush1.msra.mxu1 %v10732_v5 }
 0x76d   : > { %7329 = vrot.lane.b32.xlu1 %v10674_v19, %s9077_s27  ;;  %8446 = vmatmul.mubr.msk.f32.vlgmr.msra.gmra.mxu0 %vm4834_vm11, %v5810_v50  ;;  %v6181_v2 = vpop.permute.xlu1 %6180  ;;  %v11096_v14 = vpop.permute.xlu0 %6188  ;;  %v6225_v19 = vsel %vm4785_vm10, %v6183_v18, %v6185_v10 }
 0x76e   : > { %7337 = vrot.lane.b32.xlu0 %v10734_v32, %s9077_s27  ;;  %6057 = vmatprep.subr.mxu1 %v10756_v21  ;;  %v6227_v55 = vsel %vm4785_vm10, %v6187_v11, %v11096_v14  ;;  %v6224_v57 = vsel %vm4785_vm10, %v6181_v2, %v6183_v18 }
 0x76f   : > { %6294 = vmatpush1.msra.mxu0 %v6232_v13  ;;  %6058 = vmatpush1.msra.mxu1 %v10748_v33 }
 0x770   : > { %6091 = vmatprep.mubr.f32.mxu1 %v9078_v45  ;;  %6364 = vmatprep.subr.mxu1 %v6235_v1 }
 0x771   : > { %8447 = vmatmul.mubr.msk.f32.vlgmr.msra.gmra.mxu1 %vm4834_vm11, %v5810_v50  ;;  %7315 = vrot.lane.b32.xlu1 %v10700_v25, %s9077_s27  ;;  %v6167_v7 = vpop.permute.xlu1 %6166  ;;  %v6165_v44 = vpop.permute.xlu0 %6164 }
 0x772   : > { %6365 = vmatpush1.msra.mxu1 %v6234_v29  ;;  %7313 = vrot.lane.b32.xlu0 %v10702_v56, %s9077_s27  ;;  %v6217_v35 = vsel %vm4785_vm10, %v6165_v44, %v6167_v7 }
 0x773   : > { %6295 = vmatprep.subr.mxu0 %v6225_v19  ;;  %6366 = vmatprep.subr.mxu1 %v6227_v55 }
 0x774   : > { %6296 = vmatpush1.msra.mxu0 %v6224_v57  ;;  %6367 = vmatpush1.msra.mxu1 %v6226_v36  ;;  %v11213_v36 = vld [vmem:[#allocation2 + $0xf0] sm:$0xff] }
 0x775   : > { %7319 = vrot.lane.b32.xlu1 %v10750_v23, %s9077_s27  ;;  %6297 = vmatprep.subr.mxu0 %v6217_v35  ;;  %v6171_v63 = vpop.permute.xlu1 %6170  ;;  %v6169_v0 = vpop.permute.xlu0 %6168 }
 0x776   : > { %7317 = vrot.lane.b32.xlu0 %v10740_v62, %s9077_s27  ;;  %v6218_v9 = vsel %vm4785_vm10, %v6167_v7, %v6169_v0  ;;  %v6219_v27 = vsel %vm4785_vm10, %v6169_v0, %v6171_v63  ;;  %6331 = vmatprep.mubr.f32.mxu0 %v9078_v45 }
 0x777   : > { %6368 = vmatprep.subr.mxu1 %v6219_v27  ;;  %6402 = vmatprep.mubr.f32.mxu1 %v9078_v45 }
 0x778   : > { %6369 = vmatpush1.msra.mxu1 %v6218_v9 }
 0x779   : > { %7357 = vrot.lane.b32.xlu1 %v10716_v12, %s9077_s27  ;;  %v6209_v51 = vpop.permute.xlu1 %6208  ;;  %v6163_v61 = vpop.permute.xlu0 %6162  ;;  %8449 = vmatmul.mubr.msk.f32.vlgmr.msra.gmra.mxu1 %vm4834_vm11, %v11125_v20 }
 0x77a   : > { %7311 = vrot.lane.b32.xlu0 %v10690_v40, %s9077_s27  ;;  %v6216_v39 = vsel %vm4785_vm10, %v6163_v61, %v6165_v44  ;;  %6544 = vmatprep.mubr.f32.mxu1 %v9078_v45  ;;  %v6236_v46 = vsel %vm4785_vm10, %v11060_v37, %v6209_v51 }
 0x77b   : > { %6298 = vmatpush1.msra.mxu0 %v6216_v39 }
 0x77c   : > { %8448 = vmatmul.mubr.msk.f32.vlgmr.msra.gmra.mxu0 %vm4834_vm11, %v11125_v20 }
 0x77d   : > { %7361 = vrot.lane.b32.xlu1 %v10864_v26, %s9077_s27  ;;  %v6213_v16 = vpop.permute.xlu1 %6212  ;;  %v6211_v34 = vpop.permute.xlu0 %6210  ;;  %6473 = vmatprep.mubr.f32.mxu0 %v9078_v45 }
 0x77e   : > { %7359 = vrot.lane.b32.xlu0 %v10726_v28, %s9077_s27  ;;  %v6237_v40 = vsel %vm4785_vm10, %v6209_v51, %v6211_v34  ;;  %v6238_v38 = vsel %vm4785_vm10, %v6211_v34, %v6213_v16  ;;  %v11234_v51 = vld [vmem:[#allocation13 + $0x28] sm:$0xff]  ;;  %v11252_v34 = vld [vmem:[#allocation2 + $0xa8] sm:$0xff] }
 0x77f   : > { %6435 = vmatprep.subr.mxu0 %v6237_v40 }
 0x780   : > { %6436 = vmatpush1.msra.mxu0 %v6236_v46 }
 0x781   : > { %7339 = vrot.lane.b32.xlu1 %v10732_v5, %s9077_s27  ;;  %v6191_v53 = vpop.permute.xlu1 %6190  ;;  %v6215_v42 = vpop.permute.xlu0 %6214 }
 0x782   : > { %7363 = vrot.lane.b32.xlu0 %v11145_v59, %s9077_s27  ;;  %v6239_v24 = vsel %vm4785_vm10, %v6213_v16, %v6215_v42  ;;  %v6228_v3 = vsel %vm4785_vm10, %v11096_v14, %v6191_v53 }
 0x783   : > { %6506 = vmatprep.subr.mxu1 %v6239_v24 }
 0x784   : > { %6507 = vmatpush1.msra.mxu1 %v6238_v38 }
 0x785   : > { %7343 = vrot.lane.b32.xlu1 %v10886_v47, %s9077_s27  ;;  %v6195_v60 = vpop.permute.xlu1 %6194  ;;  %v6193_v43 = vpop.permute.xlu0 %6192 }
 0x786   : > { %7341 = vrot.lane.b32.xlu0 %v10742_v22, %s9077_s27  ;;  %v6229_v5 = vsel %vm4785_vm10, %v6191_v53, %v6193_v43  ;;  %v6230_v18 = vsel %vm4785_vm10, %v6193_v43, %v6195_v60  ;;  %v9080_v53 = vmov 0  }
 0x787   : > { %6437 = vmatprep.subr.mxu0 %v6229_v5  ;;  %8731 = vset.pattern.permute.xlu0 %v9080_v53  ;;  %v11268_v5 = vld [vmem:[#allocation2 + $0x90] sm:$0xff] }
 0x788   : > { %6438 = vmatpush1.msra.mxu0 %v6228_v3  ;;  %8732 = vset.pattern.permute.xlu1 %v9080_v53  ;;  %v7283_v53 = vld [vmem:[#allocation13 + $0x38] sm:$0xff] }
 0x789   : > { %7321 = vrot.lane.b32.xlu1 %v10748_v33, %s9077_s27  ;;  %v6173_v50 = vpop.permute.xlu1 %6172  ;;  %v6197_v37 = vpop.permute.xlu0 %6196 }
 0x78a   : > { %7345 = vrot.lane.b32.xlu0 %v11160_v41, %s9077_s27  ;;  %v6231_v6 = vsel %vm4785_vm10, %v6195_v60, %v6197_v37  ;;  %v6220_v10 = vsel %vm4785_vm10, %v6171_v63, %v6173_v50  ;;  %v11222_v63 = vld [vmem:[#allocation2 + $0xd0] sm:$0xff]  ;;  %v11263_v60 = vld [vmem:[#allocation2 + $0x98] sm:$0xff] }
 0x78b   : > { %6508 = vmatprep.subr.mxu1 %v6231_v6  ;;  %v8121_v6 = vld [vmem:[#allocation6] sm:$0xff] }
 0x78c   : > { %6509 = vmatpush1.msra.mxu1 %v6230_v18 }
 0x78d   : > { %7325 = vrot.lane.b32.xlu1 %v10900_v54, %s9077_s27  ;;  %v6177_v49 = vpop.permute.xlu1 %6176  ;;  %v6175_v11 = vpop.permute.xlu0 %6174 }
 0x78e   : > { %7323 = vrot.lane.b32.xlu0 %v10756_v21, %s9077_s27  ;;  %v6221_v33 = vsel %vm4785_vm10, %v6173_v50, %v6175_v11  ;;  %v6222_v14 = vsel %vm4785_vm10, %v6175_v11, %v6177_v49 }
 0x78f   : > { %6439 = vmatprep.subr.mxu0 %v6221_v33 }
 0x790   : > { %6440 = vmatpush1.msra.mxu0 %v6220_v10 }
 0x791   : > { %7748 = vrot.lane.b32.xlu1 %v10650_v15, %s9079_s16  ;;  %v6600_v13 = vpop.permute.xlu1 %6599  ;;  %v6179_v2 = vpop.permute.xlu0 %6178  ;;  %8450 = vmatmul.mubr.msk.f32.vlgmr.msra.gmra.mxu0 %vm4834_vm11, %v11125_v20 }
 0x792   : > { %7327 = vrot.lane.b32.xlu0 %v11174_v8, %s9077_s27  ;;  %v6223_v21 = vsel %vm4785_vm10, %v6177_v49, %v6179_v2  ;;  %6730 = vmatprep.mubr.f32.mxu0 %v9078_v45  ;;  %v8107_v49 = vld [vmem:[#allocation5] sm:$0xff] }
 0x793   : > { %6510 = vmatprep.subr.mxu1 %v6223_v21 }
 0x794   : > { %6511 = vmatpush1.msra.mxu1 %v6222_v14  ;;  %v8739_v14 = vld [vmem:[#allocation2 + $0xf8] sm:$0xff] }
 0x795   : > { %7752 = vrot.lane.b32.xlu1 %v10708_v48, %s9079_s16  ;;  %v6604_v15 = vpop.permute.xlu1 %6603  ;;  %v6602_v1 = vpop.permute.xlu0 %6601  ;;  %8451 = vmatmul.mubr.msk.f32.vlgmr.msra.gmra.mxu1 %vm4834_vm11, %v11125_v20 }
 0x796   : > { %7750 = vrot.lane.b32.xlu0 %v10658_v52, %s9079_s16  ;;  %v6632_v19 = vsel %vm5465_vm12, %v6600_v13, %v6602_v1  ;;  %6801 = vmatprep.mubr.f32.mxu1 %v9078_v45  ;;  %v6633_v7 = vsel %vm5465_vm12, %v6602_v1, %v6604_v15  ;;  %v8740_v1 = vld [vmem:[#allocation2 + $0xb0] sm:$0xff] }
 0x797   : > { %6692 = vmatprep.subr.mxu0 %v6632_v19 }
 0x799   : > { %7746 = vrot.lane.b32.xlu1 %v10660_v31, %s9079_s16  ;;  %v6598_v55 = vpop.permute.xlu1 %6597  ;;  %v6606_v29 = vpop.permute.xlu0 %6605 }
 0x79a   : > { %7754 = vrot.lane.b32.xlu0 %v10718_v17, %s9079_s16  ;;  %v6631_v48 = vsel %vm5465_vm12, %v6598_v55, %v6600_v13  ;;  %v6634_v57 = vsel %vm5465_vm12, %v6604_v15, %v6606_v29  ;;  %v8738_v13 = vld [vmem:[#allocation2 + $0xa0] sm:$0xff]  ;;  %v8741_v55 = vld [vmem:[#allocation2 + $0x38] sm:$0xff] }
 0x79b   : > { %6693 = vmatpush1.msra.mxu0 %v6631_v48  ;;  %6763 = vmatprep.subr.mxu1 %v6634_v57  ;;  %v6959_v57 = vld [vmem:[#allocation13 + $0x30] sm:$0xff] }
 0x79c   : > { %6764 = vmatpush1.msra.mxu1 %v6633_v7  ;;  %v8743_v7 = vld [vmem:[#allocation2 + $0x28] sm:$0xff] }
 0x79d   : > { %7732 = vrot.lane.b32.xlu1 %v10682_v58, %s9079_s16 }
 0x79e   : > { %7730 = vrot.lane.b32.xlu0 %v10676_v30, %s9079_s16  ;;  %v6584_v52 = vpop.permute.xlu1 %6583  ;;  %v6582_v31 = vpop.permute.xlu0 %6581 }
 0x79f   : > { %v6624_v44 = vsel %vm5465_vm12, %v6582_v31, %v6584_v52 }
 0x7a0   : > { %6694 = vmatprep.subr.mxu0 %v6624_v44 }
 0x7a1   : > { %7736 = vrot.lane.b32.xlu1 %v10734_v32, %s9079_s16 }
 0x7a2   : > { %7734 = vrot.lane.b32.xlu0 %v10724_v4, %s9079_s16 }
 0x7a4   : > { %v6588_v17 = vpop.permute.xlu1 %6587  ;;  %v6586_v35 = vpop.permute.xlu0 %6585 }
 0x7a5   : > { %7712 = vrot.lane.b32.xlu1 %v10702_v56, %s9079_s16  ;;  %v6625_v58 = vsel %vm5465_vm12, %v6584_v52, %v6586_v35  ;;  %v6626_v30 = vsel %vm5465_vm12, %v6586_v35, %v6588_v17  ;;  %v8744_v52 = vld [vmem:[#allocation2 + $0x100] sm:$0xff] }
 0x7a6   : > { %7728 = vrot.lane.b32.xlu0 %v11213_v36, %s9079_s16  ;;  %6765 = vmatprep.subr.mxu1 %v6626_v30  ;;  %v8747_v35 = vld [vmem:[#allocation2 + $0x20] sm:$0xff]  ;;  %v8748_v30 = vld [vmem:[#allocation2 + $0x18] sm:$0xff] }
 0x7a7   : > { %6766 = vmatpush1.msra.mxu1 %v6625_v58 }
 0x7a9   : > { %7716 = vrot.lane.b32.xlu1 %v10740_v62, %s9079_s16 }
 0x7aa   : > { %7714 = vrot.lane.b32.xlu0 %v10700_v25, %s9079_s16 }
 0x7ab   : > { %v6564_v4 = vpop.permute.xlu1 %6563  ;;  %v6580_v32 = vpop.permute.xlu0 %6579 }
 0x7ac   : > { %v6623_v56 = vsel %vm5465_vm12, %v6580_v32, %v6582_v31  ;;  %v8745_v31 = vld [vmem:[#allocation2 + $0x60] sm:$0xff] }
 0x7ad   : > { %7710 = vrot.lane.b32.xlu1 %v11222_v63, %s9079_s16  ;;  %6695 = vmatpush1.msra.mxu0 %v6623_v56 }
 0x7ae   : > { %7718 = vrot.lane.b32.xlu0 %v10750_v23, %s9079_s16 }
 0x7af   : > { %v6568_v0 = vpop.permute.xlu1 %6567 }
 0x7b0   : > { %v6566_v9 = vpop.permute.xlu0 %6565 }
 0x7b1   : > { %7758 = vrot.lane.b32.xlu1 %v10726_v28, %s9079_s16  ;;  %v6616_v25 = vsel %vm5465_vm12, %v6564_v4, %v6566_v9  ;;  %v6617_v28 = vsel %vm5465_vm12, %v6566_v9, %v6568_v0 }
 0x7b2   : > { %7756 = vrot.lane.b32.xlu0 %v10716_v12, %s9079_s16  ;;  %6696 = vmatprep.subr.mxu0 %v6616_v25 }
 0x7b3   : > { %v6562_v62 = vpop.permute.xlu1 %6561 }
 0x7b4   : > { %v6615_v27 = vsel %vm5465_vm12, %v6562_v62, %v6564_v4  ;;  %v6570_v20 = vpop.permute.xlu0 %6569  ;;  %v8750_v4 = vld [vmem:[#allocation2 + $0x80] sm:$0xff]  ;;  %v8753_v62 = vld [vmem:[#allocation2 + $0xc8] sm:$0xff] }
 0x7b5   : > { %7762 = vrot.lane.b32.xlu1 %v11145_v59, %s9079_s16  ;;  %6697 = vmatpush1.msra.mxu0 %v6615_v27  ;;  %v6618_v23 = vsel %vm5465_vm12, %v6568_v0, %v6570_v20  ;;  %v8752_v0 = vld [vmem:[#allocation2 + $0x30] sm:$0xff] }
 0x7b6   : > { %7760 = vrot.lane.b32.xlu0 %v10864_v26, %s9079_s16  ;;  %6767 = vmatprep.subr.mxu1 %v6618_v23 }
 0x7b7   : > { %6768 = vmatpush1.msra.mxu1 %v6617_v28  ;;  %v6610_v12 = vpop.permute.xlu1 %6609  ;;  %8452 = vmatmul.mubr.msk.f32.vlgmr.msra.gmra.mxu0 %vm4834_vm11, %v11234_v51 }
 0x7b8   : > { %v6608_v61 = vpop.permute.xlu0 %6607  ;;  %8453 = vmatmul.mubr.msk.f32.vlgmr.msra.gmra.mxu1 %vm4834_vm11, %v11234_v51  ;;  %6872 = vmatprep.mubr.f32.mxu0 %v9078_v45 }
 0x7b9   : > { %v6635_v39 = vsel %vm5465_vm12, %v6606_v29, %v6608_v61  ;;  %7740 = vrot.lane.b32.xlu1 %v10742_v22, %s9079_s16  ;;  %v6636_v16 = vsel %vm5465_vm12, %v6608_v61, %v6610_v12  ;;  %6943 = vmatprep.mubr.f32.mxu1 %v9078_v45  ;;  %v8742_v29 = vld [vmem:[#allocation2 + $0xe8] sm:$0xff] }
 0x7ba   : > { %7738 = vrot.lane.b32.xlu0 %v11252_v34, %s9079_s16  ;;  %6834 = vmatprep.subr.mxu0 %v6636_v16 }
 0x7bb   : > { %6835 = vmatpush1.msra.mxu0 %v6635_v39  ;;  %v6614_v40 = vpop.permute.xlu1 %6613 }
 0x7bc   : > { %v6612_v46 = vpop.permute.xlu0 %6611 }
 0x7bd   : > { %v6637_v59 = vsel %vm5465_vm12, %v6610_v12, %v6612_v46  ;;  %7744 = vrot.lane.b32.xlu1 %v11160_v41, %s9079_s16  ;;  %v6638_v22 = vsel %vm5465_vm12, %v6612_v46, %v6614_v40 }
 0x7be   : > { %7742 = vrot.lane.b32.xlu0 %v10886_v47, %s9079_s16  ;;  %6905 = vmatprep.subr.mxu1 %v6638_v22 }
 0x7bf   : > { %6906 = vmatpush1.msra.mxu1 %v6637_v59  ;;  %v6592_v42 = vpop.permute.xlu1 %6591 }
 0x7c0   : > { %v6590_v24 = vpop.permute.xlu0 %6589 }
 0x7c1   : > { %v6627_v38 = vsel %vm5465_vm12, %v6588_v17, %v6590_v24  ;;  %7722 = vrot.lane.b32.xlu1 %v11263_v60, %s9079_s16  ;;  %v6628_v43 = vsel %vm5465_vm12, %v6590_v24, %v6592_v42  ;;  %v8746_v17 = vld [vmem:[#allocation2 + $0xb8] sm:$0xff] }
 0x7c2   : > { %7720 = vrot.lane.b32.xlu0 %v11268_v5, %s9079_s16  ;;  %6836 = vmatprep.subr.mxu0 %v6628_v43 }
 0x7c3   : > { %6837 = vmatpush1.msra.mxu0 %v6627_v38  ;;  %v6596_v3 = vpop.permute.xlu1 %6595 }
 0x7c4   : > { %v6594_v41 = vpop.permute.xlu0 %6593 }
 0x7c5   : > { %v6629_v50 = vsel %vm5465_vm12, %v6592_v42, %v6594_v41  ;;  %7726 = vrot.lane.b32.xlu1 %v11174_v8, %s9079_s16  ;;  %v6630_v37 = vsel %vm5465_vm12, %v6594_v41, %v6596_v3 }
 0x7c6   : > { %7724 = vrot.lane.b32.xlu0 %v10900_v54, %s9079_s16  ;;  %6907 = vmatprep.subr.mxu1 %v6630_v37 }
 0x7c7   : > { %6908 = vmatpush1.msra.mxu1 %v6629_v50  ;;  %v6574_v18 = vpop.permute.xlu1 %6573 }
 0x7c8   : > { %v6572_v11 = vpop.permute.xlu0 %6571 }
 0x7c9   : > { %v6619_v33 = vsel %vm5465_vm12, %v6570_v20, %v6572_v11  ;;  %v6620_v10 = vsel %vm5465_vm12, %v6572_v11, %v6574_v18  ;;  %8124 = vperm.xlu1 %8732, %v8121_v6  }
 0x7ca   : > { %6838 = vmatprep.subr.mxu0 %v6620_v10  ;;  %8110 = vperm.xlu0 %8731, %v8107_v49  }
 0x7cb   : > { %6839 = vmatpush1.msra.mxu0 %v6619_v33  ;;  %v6578_v8 = vpop.permute.xlu1 %6577 }
 0x7cc   : > { %6989 = vmatprep.subr.mxu0 %v8738_v13  ;;  %v6576_v2 = vpop.permute.xlu0 %6575  ;;  %8454 = vmatmul.mubr.msk.f32.vlgmr.msra.gmra.mxu0 %vm4834_vm11, %v11234_v51 }
 0x7cd   : > { %v6621_v21 = vsel %vm5465_vm12, %v6574_v18, %v6576_v2  ;;  %6990 = vmatpush1.msra.mxu0 %v8739_v14  ;;  %v6622_v15 = vsel %vm5465_vm12, %v6576_v2, %v6578_v8  ;;  %7027 = vmatprep.mubr.f32.mxu0 %v9078_v45 }
 0x7ce   : > { %6909 = vmatprep.subr.mxu1 %v6622_v15  ;;  %6991 = vmatprep.subr.mxu0 %v8740_v1 }
 0x7cf   : > { %6910 = vmatpush1.msra.mxu1 %v6621_v21  ;;  %6992 = vmatpush1.msra.mxu0 %v11213_v36  ;;  %v7352_v19 = vpop.permute.xlu1 %7351  ;;  %v8749_v36 = vld [vmem:[#allocation2 + $0xe0] sm:$0xff] }
 0x7d0   : > { %6993 = vmatprep.subr.mxu0 %v8741_v55  ;;  %7060 = vmatprep.subr.mxu1 %v8742_v29  ;;  %v7350_v48 = vpop.permute.xlu0 %7349 }
 0x7d1   : > { %8455 = vmatmul.mubr.msk.f32.vlgmr.msra.gmra.mxu1 %vm4834_vm11, %v11234_v51  ;;  %6994 = vmatpush1.msra.mxu0 %v11222_v63  ;;  %v8751_v63 = vld [vmem:[#allocation2 + $0x58] sm:$0xff]  ;;  %v7382_v9 = vsel %vm4785_vm10, %v7350_v48, %v7352_v19 }
 0x7d2   : > { %7061 = vmatpush1.msra.mxu1 %v8743_v7  ;;  %7131 = vmatprep.subr.mxu0 %v8744_v52 }
 0x7d3   : > { %7062 = vmatprep.subr.mxu1 %v8745_v31  ;;  %8456 = vmatmul.mubr.msk.f32.vlgmr.msra.gmra.mxu0 %vm4834_vm11, %v6959_v57  ;;  %v11290_v44 = vpop.permute.xlu1 %7355 }
 0x7d4   : > { %7063 = vmatpush1.msra.mxu1 %v8746_v17  ;;  %7132 = vmatpush1.msra.mxu0 %v8747_v35  ;;  %v7354_v58 = vpop.permute.xlu0 %7353 }
 0x7d5   : > { %7064 = vmatprep.subr.mxu1 %v8748_v30  ;;  %7133 = vmatprep.subr.mxu0 %v11252_v34  ;;  %v7384_v20 = vsel %vm4785_vm10, %v7354_v58, %v11290_v44  ;;  %v7383_v51 = vsel %vm4785_vm10, %v7352_v19, %v7354_v58 }
 0x7d6   : > { %7065 = vmatpush1.msra.mxu1 %v8749_v36  ;;  %7134 = vmatpush1.msra.mxu0 %v8750_v4 }
 0x7d7   : > { %7098 = vmatprep.mubr.f32.mxu1 %v9078_v45  ;;  %7135 = vmatprep.subr.mxu0 %v11268_v5  ;;  %v7332_v32 = vpop.permute.xlu1 %7331 }
 0x7d8   : > { %7202 = vmatprep.subr.mxu1 %v10864_v26  ;;  %8457 = vmatmul.mubr.msk.f32.vlgmr.msra.gmra.mxu1 %vm4834_vm11, %v6959_v57  ;;  %v7348_v56 = vpop.permute.xlu0 %7347 }
 0x7d9   : > { %7136 = vmatpush1.msra.mxu0 %v8751_v63  ;;  %7203 = vmatpush1.msra.mxu1 %v8752_v0  ;;  %v7381_v25 = vsel %vm4785_vm10, %v7348_v56, %v7350_v48 }
 0x7da   : > { %7204 = vmatprep.subr.mxu1 %v10886_v47  ;;  %7442 = vmatprep.subr.mxu0 %v7382_v9 }
 0x7db   : > { %7169 = vmatprep.mubr.f32.mxu0 %v9078_v45  ;;  %7205 = vmatpush1.msra.mxu1 %v8753_v62  ;;  %v7336_v27 = vpop.permute.xlu1 %7335 }
 0x7dc   : > { %8458 = vmatmul.mubr.msk.f32.vlgmr.msra.gmra.mxu0 %vm4834_vm11, %v6959_v57  ;;  %7206 = vmatprep.subr.mxu1 %v10900_v54  ;;  %v7334_v26 = vpop.permute.xlu0 %7333 }
 0x7dd   : > { %7443 = vmatpush1.msra.mxu0 %v7381_v25  ;;  %7207 = vmatpush1.msra.mxu1 %v11263_v60  ;;  %v7374_v47 = vsel %vm4785_vm10, %v7332_v32, %v7334_v26  ;;  %v7375_v61 = vsel %vm4785_vm10, %v7334_v26, %v7336_v27 }
 0x7de   : > { %7240 = vmatprep.mubr.f32.mxu1 %v9078_v45  ;;  %7513 = vmatprep.subr.mxu1 %v7384_v20 }
 0x7df   : > { %8459 = vmatmul.mubr.msk.f32.vlgmr.msra.gmra.mxu1 %vm4834_vm11, %v6959_v57  ;;  %7444 = vmatprep.subr.mxu0 %v7374_v47  ;;  %v7330_v23 = vpop.permute.xlu1 %7329 }
 0x7e0   : > { %7514 = vmatpush1.msra.mxu1 %v7383_v51  ;;  %v7373_v54 = vsel %vm4785_vm10, %v7330_v23, %v7332_v32  ;;  %v7338_v28 = vpop.permute.xlu0 %7337  ;;  %7551 = vmatprep.mubr.f32.mxu1 %v9078_v45  ;;  %v7709_v51 = vld [vmem:[#allocation13 + $0x40] sm:$0xff] }
 0x7e1   : > { %7445 = vmatpush1.msra.mxu0 %v7373_v54  ;;  %v7376_v12 = vsel %vm4785_vm10, %v7336_v27, %v7338_v28  ;;  %7480 = vmatprep.mubr.f32.mxu0 %v9078_v45 }
 0x7e2   : > { %7515 = vmatprep.subr.mxu1 %v7376_v12 }
 0x7e3   : > { %7516 = vmatpush1.msra.mxu1 %v7375_v61  ;;  %v7316_v39 = vpop.permute.xlu1 %7315 }
 0x7e4   : > { %v7314_v16 = vpop.permute.xlu0 %7313 }
 0x7e5   : > { %v7366_v34 = vsel %vm4785_vm10, %v7314_v16, %v7316_v39 }
 0x7e6   : > { %7446 = vmatprep.subr.mxu0 %v7366_v34 }
 0x7e7   : > { %v7320_v40 = vpop.permute.xlu1 %7319 }
 0x7e8   : > { %v7318_v46 = vpop.permute.xlu0 %7317 }
 0x7e9   : > { %v7367_v59 = vsel %vm4785_vm10, %v7316_v39, %v7318_v46  ;;  %v7368_v22 = vsel %vm4785_vm10, %v7318_v46, %v7320_v40 }
 0x7ea   : > { %7517 = vmatprep.subr.mxu1 %v7368_v22 }
 0x7eb   : > { %7518 = vmatpush1.msra.mxu1 %v7367_v59  ;;  %v7358_v42 = vpop.permute.xlu1 %7357 }
 0x7ec   : > { %8461 = vmatmul.mubr.msk.f32.vlgmr.msra.gmra.mxu1 %vm4834_vm11, %v7283_v53  ;;  %v7312_v24 = vpop.permute.xlu0 %7311  ;;  %v7385_v3 = vsel %vm4785_vm10, %v11290_v44, %v7358_v42 }
 0x7ed   : > { %v7365_v38 = vsel %vm4785_vm10, %v7312_v24, %v7314_v16  ;;  %7693 = vmatprep.mubr.f32.mxu1 %v9078_v45 }
 0x7ee   : > { %7447 = vmatpush1.msra.mxu0 %v7365_v38 }
 0x7ef   : > { %8460 = vmatmul.mubr.msk.f32.vlgmr.msra.gmra.mxu0 %vm4834_vm11, %v7283_v53  ;;  %v7362_v60 = vpop.permute.xlu1 %7361 }
 0x7f0   : > { %v7360_v43 = vpop.permute.xlu0 %7359  ;;  %7622 = vmatprep.mubr.f32.mxu0 %v9078_v45 }
 0x7f1   : > { %v7386_v5 = vsel %vm4785_vm10, %v7358_v42, %v7360_v43  ;;  %v7387_v6 = vsel %vm4785_vm10, %v7360_v43, %v7362_v60 }
 0x7f2   : > { %7584 = vmatprep.subr.mxu0 %v7386_v5 }
 0x7f3   : > { %7585 = vmatpush1.msra.mxu0 %v7385_v3  ;;  %v7340_v41 = vpop.permute.xlu1 %7339 }
 0x7f4   : > { %v7364_v50 = vpop.permute.xlu0 %7363  ;;  %v7377_v33 = vsel %vm4785_vm10, %v7338_v28, %v7340_v41 }
 0x7f5   : > { %v7388_v37 = vsel %vm4785_vm10, %v7362_v60, %v7364_v50 }
 0x7f6   : > { %7655 = vmatprep.subr.mxu1 %v7388_v37 }
 0x7f7   : > { %7656 = vmatpush1.msra.mxu1 %v7387_v6  ;;  %v7344_v18 = vpop.permute.xlu1 %7343 }
 0x7f8   : > { %v7342_v49 = vpop.permute.xlu0 %7341 }
 0x7f9   : > { %v7378_v11 = vsel %vm4785_vm10, %v7340_v41, %v7342_v49  ;;  %v7379_v2 = vsel %vm4785_vm10, %v7342_v49, %v7344_v18 }
 0x7fa   : > { %7586 = vmatprep.subr.mxu0 %v7378_v11 }
 0x7fb   : > { %7587 = vmatpush1.msra.mxu0 %v7377_v33  ;;  %v7322_v10 = vpop.permute.xlu1 %7321  ;;  %v4904_v33 = vpop.f32.mrf.mxu0 }
 0x7fc   : > { %v7346_v8 = vpop.permute.xlu0 %7345  ;;  %v7369_v1 = vsel %vm4785_vm10, %v7320_v40, %v7322_v10 }
 0x7fd   : > { %v7380_v13 = vsel %vm4785_vm10, %v7344_v18, %v7346_v8  ;;  %v4906_v8 = vpop.f32.mrf.mxu0 }
 0x7fe   : > { %7657 = vmatprep.subr.mxu1 %v7380_v13 }
 0x7ff   : > { %7658 = vmatpush1.msra.mxu1 %v7379_v2  ;;  %v7326_v21 = vpop.permute.xlu1 %7325  ;;  %v11370_v2 = vpop.f32.mrf.mxu0 }
 0x800   : > { %v7324_v14 = vpop.permute.xlu0 %7323 }
 0x801   : > { %v7370_v15 = vsel %vm4785_vm10, %v7322_v10, %v7324_v14  ;;  %v7371_v48 = vsel %vm4785_vm10, %v7324_v14, %v7326_v21  ;;  %v4975_v10 = vpop.f32.mrf.mxu1  ;;  %v11374_v14 = vpop.f32.mrf.mxu0 }
 0x802   : > { %7588 = vmatprep.subr.mxu0 %v7370_v15 }
 0x803   : > { %7589 = vmatpush1.msra.mxu0 %v7369_v1  ;;  %v7749_v19 = vpop.permute.xlu1 %7748  ;;  %v4977_v13 = vpop.f32.mrf.mxu1 }
 0x804   : > { %8462 = vmatmul.mubr.msk.f32.vlgmr.msra.gmra.mxu0 %vm4834_vm11, %v7283_v53  ;;  %v7328_v55 = vpop.permute.xlu0 %7327  ;;  %v5191_v1 = vpop.f32.mrf.mxu0 }
 0x805   : > { %v7372_v29 = vsel %vm4785_vm10, %v7326_v21, %v7328_v55  ;;  %7879 = vmatprep.mubr.f32.mxu0 %v9078_v45  ;;  %v11372_v21 = vpop.f32.mrf.mxu1 }
 0x806   : > { %7659 = vmatprep.subr.mxu1 %v7372_v29  ;;  %v5193_v55 = vpop.f32.mrf.mxu0 }
 0x807   : > { %7660 = vmatpush1.msra.mxu1 %v7371_v48  ;;  %v7753_v57 = vpop.permute.xlu1 %7752  ;;  %v11376_v15 = vpop.f32.mrf.mxu1 }
 0x808   : > { %8463 = vmatmul.mubr.msk.f32.vlgmr.msra.gmra.mxu1 %vm4834_vm11, %v7283_v53  ;;  %v7751_v7 = vpop.permute.xlu0 %7750  ;;  %v11378_v48 = vpop.f32.mrf.mxu0 }
 0x809   : > { %v7781_v52 = vsel %vm5465_vm12, %v7749_v19, %v7751_v7  ;;  %7950 = vmatprep.mubr.f32.mxu1 %v9078_v45  ;;  %v7782_v58 = vsel %vm5465_vm12, %v7751_v7, %v7753_v57 }
 0x80a   : > { %7841 = vmatprep.subr.mxu0 %v7781_v52  ;;  %v11382_v7 = vpop.f32.mrf.mxu0 }
 0x80b   : > { %v7747_v31 = vpop.permute.xlu1 %7746 }
 0x80c   : > { %v7780_v44 = vsel %vm5465_vm12, %v7747_v31, %v7749_v19  ;;  %v7755_v17 = vpop.permute.xlu0 %7754  ;;  %v5262_v19 = vpop.f32.mrf.mxu1 }
 0x80d   : > { %7842 = vmatpush1.msra.mxu0 %v7780_v44  ;;  %v7783_v35 = vsel %vm5465_vm12, %v7753_v57, %v7755_v17  ;;  %v5583_v31 = vpop.f32.mrf.mxu0 }
 0x80e   : > { %7912 = vmatprep.subr.mxu1 %v7783_v35  ;;  %v5264_v29 = vpop.f32.mrf.mxu1 }
 0x80f   : > { %7913 = vmatpush1.msra.mxu1 %v7782_v58  ;;  %v7733_v30 = vpop.permute.xlu1 %7732 }
 0x810   : > { %v7731_v36 = vpop.permute.xlu0 %7730  ;;  %v11380_v57 = vpop.f32.mrf.mxu1 }
 0x811   : > { %v7773_v4 = vsel %vm5465_vm12, %v7731_v36, %v7733_v30 }
 0x812   : > { %7843 = vmatprep.subr.mxu0 %v7773_v4  ;;  %v11384_v52 = vpop.f32.mrf.mxu1 }
 0x813   : > { %v7737_v32 = vpop.permute.xlu1 %7736 }
 0x814   : > { %v7735_v56 = vpop.permute.xlu0 %7734  ;;  %v5654_v44 = vpop.f32.mrf.mxu1 }
 0x815   : > { %v7774_v63 = vsel %vm5465_vm12, %v7733_v30, %v7735_v56  ;;  %v7775_v0 = vsel %vm5465_vm12, %v7735_v56, %v7737_v32 }
 0x816   : > { %7914 = vmatprep.subr.mxu1 %v7775_v0  ;;  %v5656_v35 = vpop.f32.mrf.mxu1 }
 0x817   : > { %7915 = vmatpush1.msra.mxu1 %v7774_v63  ;;  %v7713_v9 = vpop.permute.xlu1 %7712 }
 0x818   : > { %v7729_v25 = vpop.permute.xlu0 %7728 }
 0x819   : > { %v7772_v62 = vsel %vm5465_vm12, %v7729_v25, %v7731_v36 }
 0x81a   : > { %7844 = vmatpush1.msra.mxu0 %v7772_v62 }
 0x81b   : > { %v7717_v27 = vpop.permute.xlu1 %7716 }
 0x81c   : > { %v7715_v26 = vpop.permute.xlu0 %7714 }
 0x81d   : > { %v7765_v20 = vsel %vm5465_vm12, %v7713_v9, %v7715_v26  ;;  %v7766_v12 = vsel %vm5465_vm12, %v7715_v26, %v7717_v27 }
 0x81e   : > { %7845 = vmatprep.subr.mxu0 %v7765_v20  ;;  %v11388_v30 = vpop.f32.mrf.mxu1 }
 0x81f   : > { %v7711_v47 = vpop.permute.xlu1 %7710 }
 0x820   : > { %v7764_v23 = vsel %vm5465_vm12, %v7711_v47, %v7713_v9  ;;  %v7719_v54 = vpop.permute.xlu0 %7718  ;;  %v11392_v4 = vpop.f32.mrf.mxu1 }
 0x821   : > { %7846 = vmatpush1.msra.mxu0 %v7764_v23  ;;  %v7767_v28 = vsel %vm5465_vm12, %v7717_v27, %v7719_v54 }
 0x822   : > { %7916 = vmatprep.subr.mxu1 %v7767_v28  ;;  %8464 = vmatmul.mubr.msk.f32.vlgmr.msra.gmra.mxu0 %vm4834_vm11, %v7709_v51 }
 0x823   : > { %7917 = vmatpush1.msra.mxu1 %v7766_v12  ;;  %v7759_v61 = vpop.permute.xlu1 %7758  ;;  %8021 = vmatprep.mubr.f32.mxu0 %v9078_v45 }
 0x824   : > { %8465 = vmatmul.mubr.msk.f32.vlgmr.msra.gmra.mxu1 %vm4834_vm11, %v7709_v51  ;;  %v7757_v39 = vpop.permute.xlu0 %7756 }
 0x825   : > { %v7784_v16 = vsel %vm5465_vm12, %v7755_v17, %v7757_v39  ;;  %v7785_v34 = vsel %vm5465_vm12, %v7757_v39, %v7759_v61  ;;  %8092 = vmatprep.mubr.f32.mxu1 %v9078_v45  ;;  %v5585_v17 = vpop.f32.mrf.mxu0 }
 0x826   : > { %7983 = vmatprep.subr.mxu0 %v7785_v34 }
 0x827   : > { %7984 = vmatpush1.msra.mxu0 %v7784_v16  ;;  %v7763_v40 = vpop.permute.xlu1 %7762  ;;  %v11386_v58 = vpop.f32.mrf.mxu0 }
 0x828   : > { %v7761_v46 = vpop.permute.xlu0 %7760  ;;  %v5951_v56 = vpop.f32.mrf.mxu1 }
 0x829   : > { %v7786_v59 = vsel %vm5465_vm12, %v7759_v61, %v7761_v46  ;;  %v7787_v22 = vsel %vm5465_vm12, %v7761_v46, %v7763_v40  ;;  %v11390_v36 = vpop.f32.mrf.mxu0 }
 0x82a   : > { %8054 = vmatprep.subr.mxu1 %v7787_v22  ;;  %v5953_v0 = vpop.f32.mrf.mxu1 }
 0x82b   : > { %8055 = vmatpush1.msra.mxu1 %v7786_v59  ;;  %v7741_v53 = vpop.permute.xlu1 %7740 }
 0x82c   : > { %v7739_v42 = vpop.permute.xlu0 %7738 }
 0x82d   : > { %v7776_v24 = vsel %vm5465_vm12, %v7737_v32, %v7739_v42  ;;  %v7777_v38 = vsel %vm5465_vm12, %v7739_v42, %v7741_v53  ;;  %v5880_v32 = vpop.f32.mrf.mxu0  ;;  %v5192_v42 = vadd.f32 %v5191_v1, %v4904_v33 }
 0x82e   : > { %7985 = vmatprep.subr.mxu0 %v7777_v38  ;;  %v5263_v38 = vadd.f32 %v5262_v19, %v4975_v10 }
 0x82f   : > { %7986 = vmatpush1.msra.mxu0 %v7776_v24  ;;  %v7745_v60 = vpop.permute.xlu1 %7744  ;;  %v5882_v63 = vpop.f32.mrf.mxu0 }
 0x830   : > { %v7743_v45 = vpop.permute.xlu0 %7742 }
 0x831   : > { %v7778_v43 = vsel %vm5465_vm12, %v7741_v53, %v7743_v45  ;;  %v7779_v5 = vsel %vm5465_vm12, %v7743_v45, %v7745_v60  ;;  %v11394_v9 = vpop.f32.mrf.mxu0  ;;  %v11396_v25 = vpop.f32.mrf.mxu1  ;;  %v5194_v60 = vadd.f32 %v5193_v55, %v4906_v8 }
 0x832   : > { %8056 = vmatprep.subr.mxu1 %v7779_v5  ;;  %v5801_v5 = vadd.f32 %v5583_v31, %v5192_v42 }
 0x833   : > { %8057 = vmatpush1.msra.mxu1 %v7778_v43  ;;  %v7723_v3 = vpop.permute.xlu1 %7722  ;;  %v11398_v62 = vpop.f32.mrf.mxu0  ;;  %v5265_v43 = vadd.f32 %v5264_v29, %v4977_v13 }
 0x834   : > { %v7721_v41 = vpop.permute.xlu0 %7720  ;;  %v11400_v27 = vpop.f32.mrf.mxu1 }
 0x835   : > { %v7768_v50 = vsel %vm5465_vm12, %v7719_v54, %v7721_v41  ;;  %v7769_v37 = vsel %vm5465_vm12, %v7721_v41, %v7723_v3 }
 0x836   : > { %7987 = vmatprep.subr.mxu0 %v7769_v37  ;;  %v5802_v37 = vadd.f32 %v5585_v17, %v5194_v60  ;;  %v5334_v60 = vadd.f32 %v11378_v48, %v11370_v2  ;;  %v5405_v2 = vadd.f32 %v11380_v57, %v11372_v21 }
 0x837   : > { %7988 = vmatpush1.msra.mxu0 %v7768_v50  ;;  %v7727_v6 = vpop.permute.xlu1 %7726  ;;  %v5803_v50 = vadd.f32 %v5654_v44, %v5263_v38 }
 0x838   : > { %8466 = vmatmul.mubr.msk.f32.vlgmr.msra.gmra.mxu0 %vm4834_vm11, %v7709_v51  ;;  %v7725_v18 = vpop.permute.xlu0 %7724  ;;  %v5805_v48 = vadd.f32 %v11386_v58, %v5334_v60 }
 0x839   : > { %v7770_v49 = vsel %vm5465_vm12, %v7723_v3, %v7725_v18  ;;  %v7771_v11 = vsel %vm5465_vm12, %v7725_v18, %v7727_v6  ;;  %v6404_v20 = vpop.f32.mrf.mxu1  ;;  %v5804_v18 = vadd.f32 %v5656_v35, %v5265_v43 }
 0x83a   : > { %8058 = vmatprep.subr.mxu1 %v7771_v11 }
 0x83b   : > { %8059 = vmatpush1.msra.mxu1 %v7770_v49  ;;  %v6098_v49 = vadd.f32 %v5880_v32, %v5801_v5  ;;  %v6101_v8 = vadd.f32 %v5953_v0, %v5804_v18 }
 0x83c   : > { %8467 = vmatmul.mubr.msk.f32.vlgmr.msra.gmra.mxu1 %vm4834_vm11, %v7709_v51  ;;  %v6333_v26 = vpop.f32.mrf.mxu0  ;;  %v6406_v51 = vpop.f32.mrf.mxu1 }
 0x83d   : > { %v6551_v1 = vadd.f32 %v6333_v26, %v6098_v49  ;;  %v6554_v31 = vadd.f32 %v6406_v51, %v6101_v8  ;;  %v5336_v51 = vadd.f32 %v11382_v7, %v11374_v14  ;;  %v5407_v7 = vadd.f32 %v11384_v52, %v11376_v15 }
 0x83e   : > { %v6335_v47 = vpop.f32.mrf.mxu0  ;;  %v6102_v8 = vadd.f32 %v11394_v9, %v5805_v48 }
 0x851   : > { %v11402_v23 = vpop.f32.mrf.mxu0 }
 0x852   : > { %v6555_v9 = vadd.f32 %v11402_v23, %v6102_v8 }
 0x853   : > { %v11406_v28 = vpop.f32.mrf.mxu0 }
 0x855   : > { %v11404_v54 = vpop.f32.mrf.mxu1 }
 0x857   : > { %v11408_v12 = vpop.f32.mrf.mxu1 }
 0x877   : > { %v6732_v61 = vpop.f32.mrf.mxu0 }
 0x878   : > { %v6803_v39 = vpop.f32.mrf.mxu1  ;;  %v6950_v44 = vadd.f32 %v6732_v61, %v6551_v1 }
 0x879   : > { %v6734_v16 = vpop.f32.mrf.mxu0 }
 0x87a   : > { %v6805_v34 = vpop.f32.mrf.mxu1 }
 0x88c   : > { %v11410_v40 = vpop.f32.mrf.mxu0 }
 0x88e   : > { %v11414_v59 = vpop.f32.mrf.mxu0 }
 0x891   : > { %v11412_v46 = vpop.f32.mrf.mxu1 }
 0x892   : > { %11726 = vst [vmem:[#allocation50_spill] sm:$0xff] %v11412_v46  ;;  %v6099_v46 = vadd.f32 %v5882_v63, %v5802_v37 }
 0x893   : > { %v11416_v22 = vpop.f32.mrf.mxu1  ;;  %v7029_v53 = vpop.f32.mrf.mxu0 }
 0x894   : > { %11727 = vst [vmem:[#allocation51_spill] sm:$0xff] %v11416_v22  ;;  %v6100_v22 = vadd.f32 %v5951_v56, %v5803_v50  ;;  %v6552_v55 = vadd.f32 %v6335_v47, %v6099_v46  ;;  %v6953_v56 = vadd.f32 %v6805_v34, %v6554_v31  ;;  %v7247_v63 = vadd.f32 %v7029_v53, %v6950_v44  ;;  %v11432_v47 = vpop.permute.xlu0 %8110  ;;  %v11436_v34 = vpop.permute.xlu1 %8124 }
 0x895   : > { %v7031_v45 = vpop.f32.mrf.mxu0 }
 0x896   : > { %v6553_v19 = vadd.f32 %v6404_v20, %v6100_v22  ;;  %v6951_v32 = vadd.f32 %v6734_v16, %v6552_v55 }
 0x898   : > { %v7100_v24 = vpop.f32.mrf.mxu1  ;;  %v6952_v35 = vadd.f32 %v6803_v39, %v6553_v19  ;;  %v7248_v43 = vadd.f32 %v7031_v45, %v6951_v32 }
 0x89a   : > { %v7102_v3 = vpop.f32.mrf.mxu1  ;;  %v7249_v26 = vadd.f32 %v7100_v24, %v6952_v35 }
 0x89b   : > { %v7250_v39 = vadd.f32 %v7102_v3, %v6953_v56  ;;  %v5806_v3 = vadd.f32 %v11390_v36, %v5336_v51  ;;  %v11729_v60 = vld [vmem:[#allocation51_spill] sm:$0xff] }
 0x89c   : > { %v11418_v41 = vpop.f32.mrf.mxu0 }
 0x89d   : > { %v6103_v19 = vadd.f32 %v11398_v62, %v5806_v3  ;;  %v6954_v62 = vadd.f32 %v11410_v40, %v6555_v9 }
 0x89e   : > { %v11422_v11 = vpop.f32.mrf.mxu0 }
 0x89f   : > { %v11420_v6 = vpop.f32.mrf.mxu1  ;;  %v6556_v35 = vadd.f32 %v11406_v28, %v6103_v19  ;;  %v7251_v23 = vadd.f32 %v11418_v41, %v6954_v62 }
 0x8a1   : > { %v11424_v33 = vpop.f32.mrf.mxu1  ;;  %v6955_v56 = vadd.f32 %v11414_v59, %v6556_v35 }
 0x8ac   : > { %v7553_v13 = vpop.f32.mrf.mxu1 }
 0x8ad   : > { %v7702_v16 = vadd.f32 %v7553_v13, %v7249_v26  ;;  %v5808_v13 = vadd.f32 %v11392_v4, %v5407_v7 }
 0x8ae   : > { %v7555_v17 = vpop.f32.mrf.mxu1 }
 0x8af   : > { %v7482_v10 = vpop.f32.mrf.mxu0  ;;  %v7703_v45 = vadd.f32 %v7555_v17, %v7250_v39  ;;  %v6105_v17 = vadd.f32 %v11400_v27, %v5808_v13 }
 0x8b0   : > { %v7700_v20 = vadd.f32 %v7482_v10, %v7247_v63  ;;  %v5807_v10 = vadd.f32 %v11388_v30, %v5405_v2  ;;  %v11728_v63 = vld [vmem:[#allocation50_spill] sm:$0xff] }
 0x8b1   : > { %v7484_v29 = vpop.f32.mrf.mxu0  ;;  %v6558_v32 = vadd.f32 %v11408_v12, %v6105_v17 }
 0x8b2   : > { %v7701_v22 = vadd.f32 %v7484_v29, %v7248_v43  ;;  %v6104_v30 = vadd.f32 %v11396_v25, %v5807_v10  ;;  %v7252_v43 = vadd.f32 %v11422_v11, %v6955_v56 }
 0x8b3   : > { %v6957_v26 = vadd.f32 %v11729_v60, %v6558_v32 }
 0x8b4   : > { %v6557_v4 = vadd.f32 %v11404_v54, %v6104_v30 }
 0x8b5   : > { %v7254_v12 = vadd.f32 %v11424_v33, %v6957_v26 }
 0x8b6   : > { %v6956_v25 = vadd.f32 %v11728_v63, %v6557_v4 }
 0x8c4   : > { %v11426_v42 = vpop.f32.mrf.mxu0 }
 0x8c5   : > { %v7704_v27 = vadd.f32 %v11426_v42, %v7251_v23 }
 0x8c6   : > { %v7626_v0 = vpop.f32.mrf.mxu0 }
 0x8c7   : > { %v7705_v54 = vadd.f32 %v7626_v0, %v7252_v43 }
 0x8c8   : > { %v11428_v38 = vpop.f32.mrf.mxu1 }
 0x8ca   : > { %v7697_v61 = vpop.f32.mrf.mxu1 }
 0x8e2   : > { %v7881_v46 = vpop.f32.mrf.mxu0 }
 0x8e3   : > { %v8099_v5 = vadd.f32 %v7881_v46, %v7700_v20  ;;  %v7253_v20 = vadd.f32 %v11420_v6, %v6956_v25 }
 0x8e4   : > { %v7952_v53 = vpop.f32.mrf.mxu1  ;;  %v7883_v24 = vpop.f32.mrf.mxu0 }
 0x8e5   : > { %v8101_v50 = vadd.f32 %v7952_v53, %v7702_v16  ;;  %v8100_v37 = vadd.f32 %v7883_v24, %v7701_v22  ;;  %v8113_v14 = vmul.f32 %v11432_v47, %v8099_v5  ;;  %v7706_v59 = vadd.f32 %v11428_v38, %v7253_v20 }
 0x8e6   : > { %v7954_v18 = vpop.f32.mrf.mxu1  ;;  %v7707_v16 = vadd.f32 %v7697_v61, %v7254_v12 }
 0x8e7   : > { %v8114_v49 = vmul.f32 %v11432_v47, %v8100_v37  ;;  %v8115_v21 = vmul.f32 %v11432_v47, %v8101_v50  ;;  %v8102_v57 = vadd.f32 %v7954_v18, %v7703_v45  ;;  %v8127_v58 = vadd.f32 %v11436_v34, %v8113_v14 }
 0x8e9   : > { %v8116_v1 = vmul.f32 %v11432_v47, %v8102_v57  ;;  %v8128_v15 = vadd.f32 %v11436_v34, %v8114_v49  ;;  %v8129_v52 = vadd.f32 %v11436_v34, %v8115_v21  ;;  %v8135_v36 = vmax.f32 %v8127_v58, 0.0 }
 0x8eb   : > { %v8130_v55 = vadd.f32 %v11436_v34, %v8116_v1  ;;  %v8136_v29 = vmax.f32 %v8128_v15, 0.0  ;;  %v8137_v31 = vmax.f32 %v8129_v52, 0.0  ;;  %8143 = vst [vmem:[%s9424_s0] sm:$0xff] %v8135_v36 }
 0x8ed   : > { %v8138_v44 = vmax.f32 %v8130_v55, 0.0  ;;  %8144 = vst [vmem:[%s9424_s0 + $0x8] sm:$0xff] %v8136_v29  ;;  %8145 = vst [vmem:[%s9424_s0 + $0x10] sm:$0xff] %v8137_v31 }
 0x8ef   : > { %8146 = vst [vmem:[%s9424_s0 + $0x18] sm:$0xff] %v8138_v44 }
 0x8f8   : > { %v8023_v28 = vpop.f32.mrf.mxu0 }
 0x8f9   : > { %v8103_v51 = vadd.f32 %v8023_v28, %v7704_v27 }
 0x8fa   : > { %v8025_v40 = vpop.f32.mrf.mxu0 }
 0x8fb   : > { %v8117_v46 = vmul.f32 %v11432_v47, %v8103_v51  ;;  %v8104_v41 = vadd.f32 %v8025_v40, %v7705_v54 }
 0x8fc   : > { %v8094_v39 = vpop.f32.mrf.mxu1 }
 0x8fd   : > { %v8131_v11 = vadd.f32 %v11436_v34, %v8117_v46  ;;  %v8118_v42 = vmul.f32 %v11432_v47, %v8104_v41  ;;  %v8105_v6 = vadd.f32 %v8094_v39, %v7706_v59 }
 0x8fe   : > { %v8096_v0 = vpop.f32.mrf.mxu1 }
 0x8ff   : > { %v8139_v22 = vmax.f32 %v8131_v11, 0.0  ;;  %v8132_v5 = vadd.f32 %v11436_v34, %v8118_v42  ;;  %v8119_v33 = vmul.f32 %v11432_v47, %v8105_v6  ;;  %v8106_v38 = vadd.f32 %v8096_v0, %v7707_v16 }
 0x901   : > { %8147 = vst [vmem:[%s9424_s0 + $0x20] sm:$0xff] %v8139_v22  ;;  %v8140_v2 = vmax.f32 %v8132_v5, 0.0  ;;  %v8133_v48 = vadd.f32 %v11436_v34, %v8119_v33  ;;  %v8120_v61 = vmul.f32 %v11432_v47, %v8106_v38 }
 0x903   : > { %8148 = vst [vmem:[%s9424_s0 + $0x28] sm:$0xff] %v8140_v2  ;;  %v8141_v53 = vmax.f32 %v8133_v48, 0.0  ;;  %v8134_v24 = vadd.f32 %v11436_v34, %v8120_v61 }
 0x905   : > { %8149 = vst [vmem:[%s9424_s0 + $0x30] sm:$0xff] %v8141_v53  ;;  %v8142_v45 = vmax.f32 %v8134_v24, 0.0 }
 0x907   : > { %8150 = vst [vmem:[%s9424_s0 + $0x38] sm:$0xff] %v8142_v45 }
 0x908 PF: > { %s11730_s2 = sld [smem:[#allocation27_spill]]  ;;  %s8169_s3 = sshll.u32 %s9424_s0, 4  ;;  %s8170_s3 = int_to_ptr.vmem [resolvable:$true] %s8169_s3 }
 0x909   : > { %s11731_s14 = sld [smem:[#allocation26_spill]]  ;;  %s8152_s19 = scalar_lea.sflag [#allocation9], %s467_s12 }
 0x90a   : > { %s11732_s4 = sld [smem:[#allocation28_spill]]  ;;  %s8860_s17 = scalar_lea.vmem %s8170_s3, 1024 }
 0x90b   : > { %s11733_s24 = sld [smem:[#allocation40_spill]]  ;;  %p8861_p3 = scmp.ne.s32.totalorder %s8170_s3, %s8860_s17 }
 0x90c   : > { %s11734_s15 = sld [smem:[#allocation60_spill]]  ;;  %s9081_s20 = smov [#allocation15]  }
 0x90d   : > { %s8864_s22 = sshll.u32 %s9081_s20, 4  ;;  %s8865_s22 = int_to_ptr.vmem [resolvable:$false] %s8864_s22 }
 0x90e   : > { %s8866_s23 = scalar_lea.vmem %s8865_s22, 2048  ;;  %p8867_p9 = scmp.lt.s32.totalorder %s8170_s3, %s8865_s22 }
 0x90f   : > { %s8159_s18 = smul.u32 %s11731_s14, %s11730_s2  ;;  %p8868_p5 = scmp.lt.s32.totalorder %s8866_s23, %s8860_s17 }
 0x910   : > { %s8470_s1 = sshll.u32 %s11732_s4, 4 }
 0x911   : > { %s8469_s7 = sshll.u32 %s8159_s18, 3  ;;  %p11736_p6 = scmp.ne.s32.totalorder %s11733_s24, 0 }
 0x912   : > { %s8165_s6 = sadd.s32 %s8470_s1, %s8469_s7  ;;  %s11735_s26 = smov %s11734_s15 }
 0x913   : > { %s8471_s29 = sshll.u32 %s8165_s6, 7  ;;  %p8862_p13 = pnand %p8861_p3, %p11736_p6 }
 0x914   : > { %s8167_s11 = scalar_lea.hbm %s11734_s15, %s8471_s29  ;;  %p8869_p7 = por %p8868_p5, %p8867_p9 }
 0x915   : > { %p8863_p0 = pneg %p8862_p13 }
 0x917   : > { %p8870_p12 = pnand %p8869_p7, %p8863_p0 }
 0x919   : > { %8873 = shalt.err (!%p8870_p12)
}
 0x91a   : > { %s8874_s0 = scalar_lea.hbm %s8167_s11, 1024  ;;  %s8878_s21 = scalar_lea.hbm %s11735_s26, 4096 }
 0x91b   : > { %p8875_p8 = scmp.ne.s32.totalorder %s8167_s11, %s8874_s0  ;;  %p8879_p10 = scmp.lt.s32.totalorder %s8167_s11, %s11735_s26 }
 0x91c   : > { %p8880_p11 = scmp.lt.s32.totalorder %s8878_s21, %s8874_s0 }
 0x91d   : > { %p8876_p2 = pnand %p8875_p8, %p11736_p6 }
 0x91e   : > { %p8881_p1 = por %p8880_p11, %p8879_p10 }
 0x91f   : > { %p8877_p4 = pneg %p8876_p2 }
 0x921   : > { %p8882_p3 = pnand %p8881_p1, %p8877_p4 }
 0x923   : > { %8885 = shalt.err (!%p8882_p3)
}
 0x924   : > { %8525 = dma.vmem_to_hbm [thread:$0]  (%p11736_p6), %s8170_s3, 1024, %s8167_s11, %s8152_s19  }
 0x925 PF: > { %s11737_s16 = sld [smem:[#allocation32_spill]] }
 0x926   : > { %s11738_s2 = sld [smem:[#allocation21_spill]] }
 0x927   : > { %s11739_s14 = sld [smem:[#allocation42_spill]] }
 0x92b   : > { %p8537_p13 = scmp.ge.s32.totalorder %s11737_s16, 2 }
 0x92c   : > { %s8181_s4 = sand.u32 1, %s11738_s2  }
 0x92d   : > { %p11740_p0 = scmp.ne.s32.totalorder %s11739_s14, 0  ;;  %s8182_s18 = scalar_lea.sflag [#allocation9], %s8181_s4 }
 0x92f   : > { %p8532_p9 = pnand %p8537_p13, %p11740_p0 }
 0x931   : > { %p8533_p5 = pneg %p8532_p9 }
 0x933   : > { %8979 = dma.done.wait (%p8533_p5), %s8182_s18, 1024  }
 0x934   : > { %8981 = vsyncadd (%p8533_p5), %s8182_s18, 4294966272  ;;  %s28_s23 = sadd.s32 1, %s11737_s16   ;;  %s11742_s24 = sld [smem:[#allocation22_spill]] }
 0x935   : > { %p11514_p7 = scmp.ge.s32.totalorder %s28_s23, 10   ;;  %s11743_s29 = sld [smem:[#allocation41_spill]] }
 0x936   : > { %s11744_s3 = sld [smem:[#allocation39_spill]]  ;;  %s11754_s27 = smov %s8990_s28 }
 0x937   : > { %s11745_s11 = sld [smem:[#allocation23_spill]]  ;;  %s11758_s30 = smov %s9002_s9 }
 0x938   : > { %s11746_s7 = sld [smem:[#allocation38_spill]]  ;;  %s11759_s9 = smov %s9006_s10 }
 0x939   : > { %s11747_s14 = sld [smem:[#allocation24_spill]]  ;;  %s11761_s12 = smov %s9018_s13 }
 0x93a   : > { %s11748_s15 = sld [smem:[#allocation25_spill]]  ;;  %s11756_s28 = smov %s11742_s24 }
 0x93b   : > { %s11749_s16 = sld [smem:[#allocation37_spill]] }
 0x93c   : > { %s11750_s17 = sld [smem:[#allocation29_spill]]  ;;  %s11760_s10 = smov %s11744_s3 }
 0x93d   : > { %s11751_s18 = sld [smem:[#allocation30_spill]]  ;;  %27 = sbr.rel (!%p11514_p7) target bundleno = 26 (0x1a), region = 168 }
 0x93e   : > { %s11752_s19 = sld [smem:[#allocation31_spill]]  ;;  %s11762_s13 = smov %s11746_s7 }
 0x93f   : > { %s11753_s20 = sld [smem:[#allocation33_spill]] }
 0x940   : > { %s11755_s21 = sld [smem:[#allocation34_spill]] }
 0x941   : > { %s11757_s22 = sld [smem:[#allocation36_spill]] }
 0x942   :  { %8187 = vsyncpa [#allocation8], 1 }
 0x943   :  { %8189 = vsyncpa [#allocation8 + $0x1], 1 }
 0x944   :  { %8190 = vsyncpa [#allocation11], 1 }
 0x945   :  { %8192 = vsyncpa [#allocation11 + $0x1], 1 }
 0x946   :  { %8193 = vsyncpa [#allocation14], 1 }
 0x947   :  { %8194 = vsyncpa [#allocation9], 1 }
 0x948   :  { %8196 = vsyncpa [#allocation9 + $0x1], 1 }

</bundles_post_ra>
